<compile_context>
chip_gen: v6e
topology: v6e:2x2x1
jax: 0.10.0
libtpu: 0.0.40
codegen_flags: <defaults>
</compile_context>

<pallas_src>
import math

import numpy as np
import jax
import jax.numpy as jnp
from jax.experimental import pallas as pl
from jax.experimental.pallas import tpu as pltpu


def _round_up(x, m):
    return ((x + m - 1) // m) * m


def _make_can_kernel(L, D, half_const):
    """half_const = 0.5 * D * log(2*pi), folded at trace time."""

    def kernel(cq_ref,                      # SMEM scalar prefetch: (L,) logdet_l - logdet_p
               x_ref, wcat_ref, bcat_ref, w2cat_ref, b2cat_ref,
               sampled_ref, logq_ref, logz_ref):
        x = x_ref[...]                                                        # (tile_n, D) bf16

        # Two independent wide MXU matmuls, f32 accumulate.
        # z for all L levels:   (tile_n, D) @ (D, L*D)
        z_cat = jnp.dot(x, wcat_ref[...],
                        preferred_element_type=jnp.float32) + bcat_ref[...]   # (tile_n, L*D) f32
        # sampled for all L levels via composed affine (W_l @ Wp, b_l @ Wp + bp):
        s_cat = jnp.dot(x, w2cat_ref[...],
                        preferred_element_type=jnp.float32) + b2cat_ref[...]  # (tile_n, L*D) f32

        # Per-level log-prob bookkeeping (L is small and static).
        for l in range(L):
            z_l = z_cat[:, l * D:(l + 1) * D]                    # lane-tile aligned slice
            s_l = s_cat[:, l * D:(l + 1) * D]
            normz = jnp.sum(z_l * z_l, axis=-1, keepdims=True)   # (tile_n, 1), XLU reduce
            norms = jnp.sum(s_l * s_l, axis=-1, keepdims=True)   # (tile_n, 1)

            sampled_ref[l] = s_l
            logz_ref[l] = -0.5 * normz - half_const
            # log_probq_l - log_probp_l
            #   = (-0.5||z||^2 - c + logdet_l) - (-0.5||s||^2 - c + logdet_p)
            #   = 0.5*(||s||^2 - ||z||^2) + (logdet_l - logdet_p)
            logq_ref[l] = 0.5 * (norms - normz) + cq_ref[l]

    return kernel


@jax.jit
def can_model_forward(x, Ws, bs, Wp, bp, logdets, logdet_p):
    """Pallas implementation of CanModel.forward (bound_q=None).

    Returns (sampled_x_ls, log_probq_ls, log_probz_ls) as lists of length L,
    mirroring the torch.chunk(..., L, dim=0) outputs of the reference module.
    """
    N, D = x.shape
    L = Ws.shape[0]
    assert D % 128 == 0, "feature dim must be lane-aligned (multiple of 128)"
    half_const = 0.5 * D * math.log(2.0 * math.pi)

    # Batch tiling: lane/sublane-friendly tiles, grid marked "parallel".
    tile_n = 256 if N >= 256 else _round_up(N, 16)
    n_pad = _round_up(N, tile_n)
    grid = (n_pad // tile_n,)

    x_p = x if n_pad == N else jnp.pad(x, ((0, n_pad - N), (0, 0)))
    x_bf = x_p.astype(jnp.bfloat16)                       # bf16 MXU operand (halves DMA)

    # Level weights fused along the output axis:  W_cat[:, l*D:(l+1)*D] == Ws[l]
    w_cat = jnp.transpose(Ws, (1, 0, 2)).reshape(D, L * D).astype(jnp.bfloat16)
    b_cat = bs.reshape(1, L * D).astype(jnp.float32)

    # Composed affine for the pretrained flow, precomputed in f32 (tiny: L * D^3 flops).
    W2 = jnp.einsum('lij,jk->lik', Ws.astype(jnp.float32), Wp.astype(jnp.float32))
    b2 = jnp.einsum('lj,jk->lk', bs.astype(jnp.float32), Wp.astype(jnp.float32)) + bp[None, :]
    w2_cat = jnp.transpose(W2, (1, 0, 2)).reshape(D, L * D).astype(jnp.bfloat16)
    b2_cat = b2.reshape(1, L * D).astype(jnp.float32)

    cq = (logdets - logdet_p[0]).astype(jnp.float32)      # (L,) per-level constants

    kernel = _make_can_kernel(L, D, half_const)

    grid_spec = pltpu.PrefetchScalarGridSpec(
        num_scalar_prefetch=1,                            # cq lands in SMEM
        grid=grid,
        in_specs=[
            pl.BlockSpec((tile_n, D), lambda n, _: (n, 0)),     # x (bf16) streamed over N
            pl.BlockSpec((D, L * D), lambda n, _: (0, 0)),      # W_cat (bf16)  resident
            pl.BlockSpec((1, L * D), lambda n, _: (0, 0)),      # b_cat (f32)   resident
            pl.BlockSpec((D, L * D), lambda n, _: (0, 0)),      # W2_cat (bf16) resident
            pl.BlockSpec((1, L * D), lambda n, _: (0, 0)),      # b2_cat (f32)  resident
        ],
        out_specs=(
            pl.BlockSpec((L, tile_n, D), lambda n, _: (0, n, 0)),   # sampled_x (stacked)
            pl.BlockSpec((L, tile_n, 1), lambda n, _: (0, n, 0)),   # log_probq - log_probp
            pl.BlockSpec((L, tile_n, 1), lambda n, _: (0, n, 0)),   # log_probz
        ),
    )

    flops = 2 * n_pad * D * (L * D) * 2                    # two wide matmuls
    bytes_accessed = (n_pad * D * 2                        # x bf16
                      + 2 * D * L * D * 2 + 2 * L * D * 4  # weights/biases
                      + L * n_pad * D * 4                  # sampled f32
                      + 2 * L * n_pad * 4)                 # logq, logz f32

    sampled, logq, logz = pl.pallas_call(
        kernel,
        out_shape=(
            jax.ShapeDtypeStruct((L, n_pad, D), jnp.float32),
            jax.ShapeDtypeStruct((L, n_pad, 1), jnp.float32),
            jax.ShapeDtypeStruct((L, n_pad, 1), jnp.float32),
        ),
        grid_spec=grid_spec,
        compiler_params=pltpu.CompilerParams(
            dimension_semantics=("parallel",),            # shard batch across TCs on v7x
            vmem_limit_bytes=32 * 1024 * 1024,            # explicit headroom; usage ~3 MiB
        ),
        cost_estimate=pl.CostEstimate(flops=flops, transcendentals=0,
                                      bytes_accessed=bytes_accessed),
    )(cq, x_bf, w_cat, b_cat, w2_cat, b2_cat)

    sampled_x_ls = [sampled[l, :N] for l in range(L)]
    log_probq_ls = [logq[l, :N, 0] for l in range(L)]
    log_probz_ls = [logz[l, :N, 0] for l in range(L)]
    return sampled_x_ls, log_probq_ls, log_probz_ls


def can_model_forward_ref(x, Ws, bs, Wp, bp, logdets, logdet_p,
                          matmul_dtype=jnp.float32, fuse_pretrained=False):
    """Pure-JAX reference.

    matmul_dtype=bf16 + fuse_pretrained=True mirrors the kernel's MXU operand
    precision and composed-affine path; the f32 / unfused variant is the exact
    module semantics.
    """
    N, D = x.shape
    L = Ws.shape[0]
    c = 0.5 * D * math.log(2.0 * math.pi)
    xm = x.astype(matmul_dtype)
    sampled_ls, logq_ls, logz_ls = [], [], []
    for l in range(L):
        z = jnp.dot(xm, Ws[l].astype(matmul_dtype),
                    preferred_element_type=jnp.float32) + bs[l]
        logz = -0.5 * jnp.sum(z * z, axis=-1) - c
        logq = logz + logdets[l]
        if fuse_pretrained:
            W2 = jnp.dot(Ws[l].astype(jnp.float32), Wp.astype(jnp.float32))
            b2 = jnp.dot(bs[l].astype(jnp.float32), Wp.astype(jnp.float32)) + bp
            s = jnp.dot(xm, W2.astype(matmul_dtype),
                        preferred_element_type=jnp.float32) + b2
        else:
            s = jnp.dot(z.astype(matmul_dtype), Wp.astype(matmul_dtype),
                        preferred_element_type=jnp.float32) + bp
        logp = -0.5 * jnp.sum(s * s, axis=-1) - c + logdet_p[0]
        sampled_ls.append(s)
        logz_ls.append(logz)
        logq_ls.append(logq - logp)
    return sampled_ls, logq_ls, logz_ls


if __name__ == "__main__":
    # Small shapes: num_samples=512 (two 256-row grid tiles), data_shape=128, ladder length 3.
    N, D, L = 512, 128, 3

    key = jax.random.PRNGKey(0)
    kx, kw, kb, kwp, kbp = jax.random.split(key, 5)

    # x = base_dist.sample(num_samples)
    x = jax.random.normal(kx, (N, D), dtype=jnp.float32)

    # Deterministic synthetic flow parameters (near-identity invertible affines).
    eye = jnp.eye(D, dtype=jnp.float32)
    Ws = eye[None] + 0.02 * jax.random.normal(kw, (L, D, D), dtype=jnp.float32)
    bs = 0.01 * jax.random.normal(kb, (L, D), dtype=jnp.float32)
    Wp = eye + 0.02 * jax.random.normal(kwp, (D, D), dtype=jnp.float32)
    bp = 0.01 * jax.random.normal(kbp, (D,), dtype=jnp.float32)
    logdets = jnp.stack([jnp.linalg.slogdet(Ws[l])[1] for l in range(L)]).astype(jnp.float32)
    logdet_p = jnp.linalg.slogdet(Wp)[1].reshape(1).astype(jnp.float32)

    outs = can_model_forward(x, Ws, bs, Wp, bp, logdets, logdet_p)
    jax.block_until_ready(outs)
    sampled_x_ls, log_probq_ls, log_probz_ls = outs

    # Tight check vs a reference mirroring the kernel's bf16 operands + composed affine.
    ref_bf = can_model_forward_ref(x, Ws, bs, Wp, bp, logdets, logdet_p,
                                   matmul_dtype=jnp.bfloat16, fuse_pretrained=True)
    # Loose check vs the full-f32 module semantics (bf16 operand cast + algebraic
    # affine fusion are the only deviations).
    ref_f32 = can_model_forward_ref(x, Ws, bs, Wp, bp, logdets, logdet_p,
                                    matmul_dtype=jnp.float32, fuse_pretrained=False)

    for l in range(L):
        np.testing.assert_allclose(np.asarray(sampled_x_ls[l]), np.asarray(ref_bf[0][l]),
                                   rtol=1e-2, atol=2e-2)
        np.testing.assert_allclose(np.asarray(log_probq_ls[l]), np.asarray(ref_bf[1][l]),
                                   rtol=1e-3, atol=1e-1)
        np.testing.assert_allclose(np.asarray(log_probz_ls[l]), np.asarray(ref_bf[2][l]),
                                   rtol=1e-3, atol=1e-1)
        np.testing.assert_allclose(np.asarray(sampled_x_ls[l]), np.asarray(ref_f32[0][l]),
                                   rtol=5e-2, atol=1e-1)
        np.testing.assert_allclose(np.asarray(log_probq_ls[l]), np.asarray(ref_f32[1][l]),
                                   rtol=1e-2, atol=1.5)
        np.testing.assert_allclose(np.asarray(log_probz_ls[l]), np.asarray(ref_f32[2][l]),
                                   rtol=1e-2, atol=1.5)

    print("KERNEL_OK")
</pallas_src>

<mosaic_0001>
module attributes {stable_mosaic.version = 11 : i64} {
  func.func @kernel(%arg0: i32, %arg1: memref<3xf32, #tpu.memory_space<smem>>, %arg2: memref<256x128xbf16, #tpu.memory_space<vmem>>, %arg3: memref<128x384xbf16, #tpu.memory_space<vmem>>, %arg4: memref<1x384xf32, #tpu.memory_space<vmem>>, %arg5: memref<128x384xbf16, #tpu.memory_space<vmem>>, %arg6: memref<1x384xf32, #tpu.memory_space<vmem>>, %arg7: memref<3x256x128xf32, #tpu.memory_space<vmem>>, %arg8: memref<3x256x1xf32, #tpu.memory_space<vmem>>, %arg9: memref<3x256x1xf32, #tpu.memory_space<vmem>>) attributes {dimension_semantics = [#tpu.dimension_semantics<parallel>], iteration_bounds = array<i64: 2>, scalar_prefetch = 1 : i64, scratch_operands = 0 : i64, tpu.core_type = #tpu.core_type<tc>, window_params = [{transform_indices = @transform_0, window_bounds = array<i64: 256, 128>}, {pipeline_mode = #tpu.pipeline_mode<synchronous>, transform_indices = @transform_1, window_bounds = array<i64: 128, 384>}, {pipeline_mode = #tpu.pipeline_mode<synchronous>, transform_indices = @transform_2, window_bounds = array<i64: 1, 384>}, {pipeline_mode = #tpu.pipeline_mode<synchronous>, transform_indices = @transform_3, window_bounds = array<i64: 128, 384>}, {pipeline_mode = #tpu.pipeline_mode<synchronous>, transform_indices = @transform_4, window_bounds = array<i64: 1, 384>}, {transform_indices = @transform_5, window_bounds = array<i64: 3, 256, 128>}, {transform_indices = @transform_6, window_bounds = array<i64: 3, 256, 1>}, {transform_indices = @transform_7, window_bounds = array<i64: 3, 256, 1>}]} {
    %c0 = arith.constant 0 : index
    %c0_0 = arith.constant 0 : index
    %0 = vector.load %arg2[%c0, %c0_0] : memref<256x128xbf16, #tpu.memory_space<vmem>>, vector<256x128xbf16>
    %c0_1 = arith.constant 0 : index
    %c0_2 = arith.constant 0 : index
    %1 = vector.load %arg3[%c0_1, %c0_2] : memref<128x384xbf16, #tpu.memory_space<vmem>>, vector<128x384xbf16>
    %cst = arith.constant dense<0.000000e+00> : vector<256x384xf32>
    %2 = tpu.matmul %0, %1, %cst {dimension_numbers = #tpu.dot_dimension_numbers<[1], [0], [0], [1], [0, 0, 1, 1], [], []>} : vector<256x128xbf16>, vector<128x384xbf16>, vector<256x384xf32> -> vector<256x384xf32>
    %c0_3 = arith.constant 0 : index
    %c0_4 = arith.constant 0 : index
    %3 = vector.load %arg4[%c0_3, %c0_4] : memref<1x384xf32, #tpu.memory_space<vmem>>, vector<1x384xf32>
    %4 = vector.broadcast %3 : vector<1x384xf32> to vector<256x384xf32>
    %5 = arith.addf %2, %4 : vector<256x384xf32>
    %c0_5 = arith.constant 0 : index
    %c0_6 = arith.constant 0 : index
    %6 = vector.load %arg5[%c0_5, %c0_6] : memref<128x384xbf16, #tpu.memory_space<vmem>>, vector<128x384xbf16>
    %cst_7 = arith.constant dense<0.000000e+00> : vector<256x384xf32>
    %7 = tpu.matmul %0, %6, %cst_7 {dimension_numbers = #tpu.dot_dimension_numbers<[1], [0], [0], [1], [0, 0, 1, 1], [], []>} : vector<256x128xbf16>, vector<128x384xbf16>, vector<256x384xf32> -> vector<256x384xf32>
    %c0_8 = arith.constant 0 : index
    %c0_9 = arith.constant 0 : index
    %8 = vector.load %arg6[%c0_8, %c0_9] : memref<1x384xf32, #tpu.memory_space<vmem>>, vector<1x384xf32>
    %9 = vector.broadcast %8 : vector<1x384xf32> to vector<256x384xf32>
    %10 = arith.addf %7, %9 : vector<256x384xf32>
    %11 = vector.extract_strided_slice %5 {offsets = [0, 0], sizes = [256, 128], strides = [1, 1]} : vector<256x384xf32> to vector<256x128xf32>
    %12 = vector.extract_strided_slice %10 {offsets = [0, 0], sizes = [256, 128], strides = [1, 1]} : vector<256x384xf32> to vector<256x128xf32>
    %13 = arith.mulf %11, %11 : vector<256x128xf32>
    %cst_10 = arith.constant dense<0.000000e+00> : vector<256xf32>
    %14 = vector.multi_reduction <add>, %13, %cst_10 [1] : vector<256x128xf32> to vector<256xf32>
    %15 = vector.shape_cast %14 : vector<256xf32> to vector<256x1xf32>
    %16 = arith.mulf %12, %12 : vector<256x128xf32>
    %cst_11 = arith.constant dense<0.000000e+00> : vector<256xf32>
    %17 = vector.multi_reduction <add>, %16, %cst_11 [1] : vector<256x128xf32> to vector<256xf32>
    %18 = vector.shape_cast %17 : vector<256xf32> to vector<256x1xf32>
    %c0_12 = arith.constant 0 : index
    %c0_13 = arith.constant 0 : index
    %c0_14 = arith.constant 0 : index
    %19 = vector.load %arg7[%c0_12, %c0_13, %c0_14] : memref<3x256x128xf32, #tpu.memory_space<vmem>>, vector<1x256x128xf32>
    %20 = vector.shape_cast %19 : vector<1x256x128xf32> to vector<256x128xf32>
    %21 = vector.shape_cast %12 : vector<256x128xf32> to vector<1x256x128xf32>
    tpu.vector_store %arg7[%c0_12, %c0_13, %c0_14], %21 {strides = array<i32>} : memref<3x256x128xf32, #tpu.memory_space<vmem>>, vector<1x256x128xf32>,
    %cst_15 = arith.constant -5.000000e-01 : f32
    %22 = vector.broadcast %cst_15 : f32 to vector<256x1xf32>
    %23 = arith.mulf %22, %15 : vector<256x1xf32>
    %cst_16 = arith.constant 117.62413 : f32
    %24 = vector.broadcast %cst_16 : f32 to vector<256x1xf32>
    %25 = arith.subf %23, %24 : vector<256x1xf32>
    %c0_17 = arith.constant 0 : index
    %c0_18 = arith.constant 0 : index
    %c0_19 = arith.constant 0 : index
    %26 = vector.load %arg9[%c0_17, %c0_18, %c0_19] : memref<3x256x1xf32, #tpu.memory_space<vmem>>, vector<1x256x1xf32>
    %27 = vector.shape_cast %26 : vector<1x256x1xf32> to vector<256x1xf32>
    %28 = vector.shape_cast %25 : vector<256x1xf32> to vector<1x256x1xf32>
    tpu.vector_store %arg9[%c0_17, %c0_18, %c0_19], %28 {strides = array<i32>} : memref<3x256x1xf32, #tpu.memory_space<vmem>>, vector<1x256x1xf32>,
    %29 = arith.subf %18, %15 : vector<256x1xf32>
    %cst_20 = arith.constant 5.000000e-01 : f32
    %30 = vector.broadcast %cst_20 : f32 to vector<256x1xf32>
    %31 = arith.mulf %30, %29 : vector<256x1xf32>
    %c0_21 = arith.constant 0 : index
    %32 = memref.load %arg1[%c0_21] : memref<3xf32, #tpu.memory_space<smem>>
    %33 = vector.broadcast %32 : f32 to vector<256x1xf32>
    %34 = arith.addf %31, %33 : vector<256x1xf32>
    %c0_22 = arith.constant 0 : index
    %c0_23 = arith.constant 0 : index
    %c0_24 = arith.constant 0 : index
    %35 = vector.load %arg8[%c0_22, %c0_23, %c0_24] : memref<3x256x1xf32, #tpu.memory_space<vmem>>, vector<1x256x1xf32>
    %36 = vector.shape_cast %35 : vector<1x256x1xf32> to vector<256x1xf32>
    %37 = vector.shape_cast %34 : vector<256x1xf32> to vector<1x256x1xf32>
    tpu.vector_store %arg8[%c0_22, %c0_23, %c0_24], %37 {strides = array<i32>} : memref<3x256x1xf32, #tpu.memory_space<vmem>>, vector<1x256x1xf32>,
    %38 = vector.extract_strided_slice %5 {offsets = [0, 128], sizes = [256, 128], strides = [1, 1]} : vector<256x384xf32> to vector<256x128xf32>
    %39 = vector.extract_strided_slice %10 {offsets = [0, 128], sizes = [256, 128], strides = [1, 1]} : vector<256x384xf32> to vector<256x128xf32>
    %40 = arith.mulf %38, %38 : vector<256x128xf32>
    %cst_25 = arith.constant dense<0.000000e+00> : vector<256xf32>
    %41 = vector.multi_reduction <add>, %40, %cst_25 [1] : vector<256x128xf32> to vector<256xf32>
    %42 = vector.shape_cast %41 : vector<256xf32> to vector<256x1xf32>
    %43 = arith.mulf %39, %39 : vector<256x128xf32>
    %cst_26 = arith.constant dense<0.000000e+00> : vector<256xf32>
    %44 = vector.multi_reduction <add>, %43, %cst_26 [1] : vector<256x128xf32> to vector<256xf32>
    %45 = vector.shape_cast %44 : vector<256xf32> to vector<256x1xf32>
    %c1 = arith.constant 1 : index
    %c0_27 = arith.constant 0 : index
    %c0_28 = arith.constant 0 : index
    %46 = vector.load %arg7[%c1, %c0_27, %c0_28] : memref<3x256x128xf32, #tpu.memory_space<vmem>>, vector<1x256x128xf32>
    %47 = vector.shape_cast %46 : vector<1x256x128xf32> to vector<256x128xf32>
    %48 = vector.shape_cast %39 : vector<256x128xf32> to vector<1x256x128xf32>
    tpu.vector_store %arg7[%c1, %c0_27, %c0_28], %48 {strides = array<i32>} : memref<3x256x128xf32, #tpu.memory_space<vmem>>, vector<1x256x128xf32>,
    %cst_29 = arith.constant -5.000000e-01 : f32
    %49 = vector.broadcast %cst_29 : f32 to vector<256x1xf32>
    %50 = arith.mulf %49, %42 : vector<256x1xf32>
    %cst_30 = arith.constant 117.62413 : f32
    %51 = vector.broadcast %cst_30 : f32 to vector<256x1xf32>
    %52 = arith.subf %50, %51 : vector<256x1xf32>
    %c1_31 = arith.constant 1 : index
    %c0_32 = arith.constant 0 : index
    %c0_33 = arith.constant 0 : index
    %53 = vector.load %arg9[%c1_31, %c0_32, %c0_33] : memref<3x256x1xf32, #tpu.memory_space<vmem>>, vector<1x256x1xf32>
    %54 = vector.shape_cast %53 : vector<1x256x1xf32> to vector<256x1xf32>
    %55 = vector.shape_cast %52 : vector<256x1xf32> to vector<1x256x1xf32>
    tpu.vector_store %arg9[%c1_31, %c0_32, %c0_33], %55 {strides = array<i32>} : memref<3x256x1xf32, #tpu.memory_space<vmem>>, vector<1x256x1xf32>,
    %56 = arith.subf %45, %42 : vector<256x1xf32>
    %cst_34 = arith.constant 5.000000e-01 : f32
    %57 = vector.broadcast %cst_34 : f32 to vector<256x1xf32>
    %58 = arith.mulf %57, %56 : vector<256x1xf32>
    %c1_35 = arith.constant 1 : index
    %59 = memref.load %arg1[%c1_35] : memref<3xf32, #tpu.memory_space<smem>>
    %60 = vector.broadcast %59 : f32 to vector<256x1xf32>
    %61 = arith.addf %58, %60 : vector<256x1xf32>
    %c1_36 = arith.constant 1 : index
    %c0_37 = arith.constant 0 : index
    %c0_38 = arith.constant 0 : index
    %62 = vector.load %arg8[%c1_36, %c0_37, %c0_38] : memref<3x256x1xf32, #tpu.memory_space<vmem>>, vector<1x256x1xf32>
    %63 = vector.shape_cast %62 : vector<1x256x1xf32> to vector<256x1xf32>
    %64 = vector.shape_cast %61 : vector<256x1xf32> to vector<1x256x1xf32>
    tpu.vector_store %arg8[%c1_36, %c0_37, %c0_38], %64 {strides = array<i32>} : memref<3x256x1xf32, #tpu.memory_space<vmem>>, vector<1x256x1xf32>,
    %65 = vector.extract_strided_slice %5 {offsets = [0, 256], sizes = [256, 128], strides = [1, 1]} : vector<256x384xf32> to vector<256x128xf32>
    %66 = vector.extract_strided_slice %10 {offsets = [0, 256], sizes = [256, 128], strides = [1, 1]} : vector<256x384xf32> to vector<256x128xf32>
    %67 = arith.mulf %65, %65 : vector<256x128xf32>
    %cst_39 = arith.constant dense<0.000000e+00> : vector<256xf32>
    %68 = vector.multi_reduction <add>, %67, %cst_39 [1] : vector<256x128xf32> to vector<256xf32>
    %69 = vector.shape_cast %68 : vector<256xf32> to vector<256x1xf32>
    %70 = arith.mulf %66, %66 : vector<256x128xf32>
    %cst_40 = arith.constant dense<0.000000e+00> : vector<256xf32>
    %71 = vector.multi_reduction <add>, %70, %cst_40 [1] : vector<256x128xf32> to vector<256xf32>
    %72 = vector.shape_cast %71 : vector<256xf32> to vector<256x1xf32>
    %c2 = arith.constant 2 : index
    %c0_41 = arith.constant 0 : index
    %c0_42 = arith.constant 0 : index
    %73 = vector.load %arg7[%c2, %c0_41, %c0_42] : memref<3x256x128xf32, #tpu.memory_space<vmem>>, vector<1x256x128xf32>
    %74 = vector.shape_cast %73 : vector<1x256x128xf32> to vector<256x128xf32>
    %75 = vector.shape_cast %66 : vector<256x128xf32> to vector<1x256x128xf32>
    tpu.vector_store %arg7[%c2, %c0_41, %c0_42], %75 {strides = array<i32>} : memref<3x256x128xf32, #tpu.memory_space<vmem>>, vector<1x256x128xf32>,
    %cst_43 = arith.constant -5.000000e-01 : f32
    %76 = vector.broadcast %cst_43 : f32 to vector<256x1xf32>
    %77 = arith.mulf %76, %69 : vector<256x1xf32>
    %cst_44 = arith.constant 117.62413 : f32
    %78 = vector.broadcast %cst_44 : f32 to vector<256x1xf32>
    %79 = arith.subf %77, %78 : vector<256x1xf32>
    %c2_45 = arith.constant 2 : index
    %c0_46 = arith.constant 0 : index
    %c0_47 = arith.constant 0 : index
    %80 = vector.load %arg9[%c2_45, %c0_46, %c0_47] : memref<3x256x1xf32, #tpu.memory_space<vmem>>, vector<1x256x1xf32>
    %81 = vector.shape_cast %80 : vector<1x256x1xf32> to vector<256x1xf32>
    %82 = vector.shape_cast %79 : vector<256x1xf32> to vector<1x256x1xf32>
    tpu.vector_store %arg9[%c2_45, %c0_46, %c0_47], %82 {strides = array<i32>} : memref<3x256x1xf32, #tpu.memory_space<vmem>>, vector<1x256x1xf32>,
    %83 = arith.subf %72, %69 : vector<256x1xf32>
    %cst_48 = arith.constant 5.000000e-01 : f32
    %84 = vector.broadcast %cst_48 : f32 to vector<256x1xf32>
    %85 = arith.mulf %84, %83 : vector<256x1xf32>
    %c2_49 = arith.constant 2 : index
    %86 = memref.load %arg1[%c2_49] : memref<3xf32, #tpu.memory_space<smem>>
    %87 = vector.broadcast %86 : f32 to vector<256x1xf32>
    %88 = arith.addf %85, %87 : vector<256x1xf32>
    %c2_50 = arith.constant 2 : index
    %c0_51 = arith.constant 0 : index
    %c0_52 = arith.constant 0 : index
    %89 = vector.load %arg8[%c2_50, %c0_51, %c0_52] : memref<3x256x1xf32, #tpu.memory_space<vmem>>, vector<1x256x1xf32>
    %90 = vector.shape_cast %89 : vector<1x256x1xf32> to vector<256x1xf32>
    %91 = vector.shape_cast %88 : vector<256x1xf32> to vector<1x256x1xf32>
    tpu.vector_store %arg8[%c2_50, %c0_51, %c0_52], %91 {strides = array<i32>} : memref<3x256x1xf32, #tpu.memory_space<vmem>>, vector<1x256x1xf32>,
    return
  }
  func.func @transform_0(%arg0: i32, %arg1: memref<3xf32, #tpu.memory_space<smem>>) -> (i32, i32) {
    %c0_i32 = arith.constant 0 : i32
    %c0_i32_0 = arith.constant 0 : i32
    return %arg0, %c0_i32 : i32, i32
  }
  func.func @transform_1(%arg0: i32, %arg1: memref<3xf32, #tpu.memory_space<smem>>) -> (i32, i32) {
    %c0_i32 = arith.constant 0 : i32
    %c0_i32_0 = arith.constant 0 : i32
    %c0_i32_1 = arith.constant 0 : i32
    return %c0_i32, %c0_i32_0 : i32, i32
  }
  func.func @transform_2(%arg0: i32, %arg1: memref<3xf32, #tpu.memory_space<smem>>) -> (i32, i32) {
    %c0_i32 = arith.constant 0 : i32
    %c0_i32_0 = arith.constant 0 : i32
    %c0_i32_1 = arith.constant 0 : i32
    return %c0_i32, %c0_i32_0 : i32, i32
  }
  func.func @transform_3(%arg0: i32, %arg1: memref<3xf32, #tpu.memory_space<smem>>) -> (i32, i32) {
    %c0_i32 = arith.constant 0 : i32
    %c0_i32_0 = arith.constant 0 : i32
    %c0_i32_1 = arith.constant 0 : i32
    return %c0_i32, %c0_i32_0 : i32, i32
  }
  func.func @transform_4(%arg0: i32, %arg1: memref<3xf32, #tpu.memory_space<smem>>) -> (i32, i32) {
    %c0_i32 = arith.constant 0 : i32
    %c0_i32_0 = arith.constant 0 : i32
    %c0_i32_1 = arith.constant 0 : i32
    return %c0_i32, %c0_i32_0 : i32, i32
  }
  func.func @transform_5(%arg0: i32, %arg1: memref<3xf32, #tpu.memory_space<smem>>) -> (i32, i32, i32) {
    %c0_i32 = arith.constant 0 : i32
    %c0_i32_0 = arith.constant 0 : i32
    %c0_i32_1 = arith.constant 0 : i32
    return %c0_i32, %arg0, %c0_i32_0 : i32, i32, i32
  }
  func.func @transform_6(%arg0: i32, %arg1: memref<3xf32, #tpu.memory_space<smem>>) -> (i32, i32, i32) {
    %c0_i32 = arith.constant 0 : i32
    %c0_i32_0 = arith.constant 0 : i32
    %c0_i32_1 = arith.constant 0 : i32
    return %c0_i32, %arg0, %c0_i32_0 : i32, i32, i32
  }
  func.func @transform_7(%arg0: i32, %arg1: memref<3xf32, #tpu.memory_space<smem>>) -> (i32, i32, i32) {
    %c0_i32 = arith.constant 0 : i32
    %c0_i32_0 = arith.constant 0 : i32
    %c0_i32_1 = arith.constant 0 : i32
    return %c0_i32, %arg0, %c0_i32_0 : i32, i32, i32
  }
}

</mosaic_0001>

<bundles_post_ra>
// kernel: can_model_forward.1
= control target key start
LH: loop header
LB: loop body
LE: loop exit
PB: predicated region body
PF: predicated region fallthrough
CT: control target
= control target key end

     0   :  { %s7644_s0 = inlined_call_operand.vmem [shape: f32[3], index: 0, kind: input, shape index: {}]   ;;  %s7645_s1 = inlined_call_operand.vmem [shape: bf16[512,128], index: 1, kind: input, shape index: {}]   ;;  %s7646_s2 = inlined_call_operand.vmem [shape: bf16[128,384], index: 2, kind: input, shape index: {}]   ;;  %s7647_s3 = inlined_call_operand.vmem [shape: f32[1,384], index: 3, kind: input, shape index: {}]   ;;  %s7648_s4 = inlined_call_operand.vmem [shape: bf16[128,384], index: 4, kind: input, shape index: {}]   ;;  %s7649_s5 = inlined_call_operand.vmem [shape: f32[1,384], index: 5, kind: input, shape index: {}]   ;;  %s7650_s6 = inlined_call_operand.vmem [shape: f32[3,512,128], index: 6, kind: output, shape index: {0}]   ;;  %s7651_s7 = inlined_call_operand.vmem [shape: f32[3,512,1], index: 7, kind: output, shape index: {1}]   ;;  %s7652_s8 = inlined_call_operand.vmem [shape: f32[3,512,1], index: 8, kind: output, shape index: {2}]  }
   0x1   :  { %s14_s29 = sshll.u32 %s7644_s0, 4  ;;  %s15_s29 = int_to_ptr.vmem [resolvable:$true] %s14_s29 }
   0x2   :  { %s4886_s30 = scalar_lea.vmem %s15_s29, 16  ;;  %p4891_p1 = scmp.lt.s32.totalorder %s15_s29, %s15_s29 }
   0x3   :  { %p4887_p0 = scmp.ne.s32.totalorder %s15_s29, %s4886_s30  ;;  %p4892_p2 = scmp.lt.s32.totalorder %s4886_s30, %s4886_s30 }
   0x5   :  { %p4893_p3 = por %p4892_p2, %p4891_p1 }
   0x7   :  { %p4894_p4 = pnand %p4893_p3, %p4887_p0 }
   0x9   :  { %4897 = shalt.err (!%p4894_p4)  }
   0xa   :  { %s4924_s9 = smov [#allocation3]  }
   0xb   :  { %17 = dma.vmem_to_smem %s15_s29, 16, %s4924_s9, [#allocation2] }
   0xc   :  { %4910 = dma.done.wait [#allocation2], 16 }
   0xd   :  { %4911 = vsyncadd [#allocation2], 4294967280 }
   0xe   :  { %19 = sfence }
   0xf   :  { %s4974_s10 = smov 0   ;;  %s4976_s11 = smov 0  }
  0x10   :  { %s4978_s12 = smov 0  }
  0x11 LB: > { %s4987_s0 = sadd.s32 4294967295, %s4922_s12   ;;  %s4989_s13 = sadd.s32 1, %s4922_s12   ;;  %s4922_s12 = sphi %s4978_s12, %s7836_s12   ;;  %s4918_s11 = sphi %s4976_s11, %s7835_s11   ;;  %s4914_s10 = sphi %s4974_s10, %s7834_s10  }
  0x12   : > { %s139_s14 = ssub.s32 %s4922_s12, %s4989_s13  ;;  %s142_s15 = sadd.s32 1, %s4918_s11 }
  0x13   : > { %p140_p5 = scmp.eq.s32.totalorder %s139_s14, 0  ;;  %p152_p6 = scmp.ne.s32.totalorder %s4918_s11, %s4914_s10 }
  0x14   : > { %p153_p7 = scmp.eq.s32.totalorder %s4987_s0, 1  ;;  %p4225_p8 = scmp.ge.s32.totalorder %s4922_s12, 1 }
  0x15   : > { %s4997_s16 = scalar_select %p140_p5, %s4918_s11, %s142_s15  }
  0x16   : > { %p4999_p9 = por %p153_p7, %p152_p6  ;;  %p250_p10 = scmp.lt.s32.totalorder %s4922_s12, 3 }
  0x18   : > { %p251_p11 = pnand %p4225_p8, %p250_p10 }
  0x1a   : > { %254 = sbr.rel (%p251_p11) target bundleno = 916 (0x394), region = 40 }
  0x1f   : > { %v4764_v0 = vld [vmem:[%s7646_s2 + $0xac] ss:$12 sps:$4 sm:$0xff]   ;;  %s4226_s20 = sshll.u32 %s4987_s0, 5  ;;  %v4766_v1 = vld [vmem:[%s7646_s2 + $0xb0] ss:$12 sps:$4 sm:$0xff]   ;;  %v4925_v2 = vmov 0  }
  0x20   : > { %636 = vmatprep.mubr.bf16.mxu0 %v4925_v2  ;;  %604 = vmatprep.subr.bf16.mxu0 %v4764_v0  ;;  %v4767_v3 = vld [vmem:[%s7646_s2 + $0xa8] ss:$12 sps:$4 sm:$0xff]   ;;  %p290_p12 = scmp.lt.s32.totalorder %s4226_s20, 63  ;;  %v4770_v5 = vld [vmem:[%s7646_s2 + $0x98] ss:$12 sps:$4 sm:$0xff]   ;;  %s274_s23 = sand.u32 1, %s4914_s10  }
  0x21   : > { %4641 = vmatprep.subr.bf16.mxu1 %v4766_v1  ;;  %v4768_v4 = vld [vmem:[%s7646_s2 + $0x94] ss:$12 sps:$4 sm:$0xff]   ;;  %605 = vmatpush1.bf16.msra.mxu0 %v4767_v3  ;;  %v4771_v6 = vld [vmem:[%s7646_s2 + $0x90] ss:$12 sps:$4 sm:$0xff]   ;;  %v4775_v9 = vld [vmem:[%s7646_s2 + $0x78] ss:$12 sps:$4 sm:$0xff]  }
  0x22   : > { %4642 = vmatpush3.bf16.msra.mxu1 %v4766_v1  ;;  %606 = vmatprep.subr.bf16.mxu0 %v4768_v4  ;;  %v4772_v7 = vld [vmem:[%s7646_s2 + $0x7c] ss:$12 sps:$4 sm:$0xff]   ;;  %v4774_v8 = vld [vmem:[%s7646_s2 + $0x80] ss:$12 sps:$4 sm:$0xff]   ;;  %s7838_s20 = smov (!%p290_p12, %s4226_s20), 63  ;;  %v365_v1 = vlaneseq  ;;  %s5434_s10 = smul.u32 768, %s274_s23 }
  0x23   : > { %4643 = vmatprep.subr.bf16.mxu1 %v4770_v5  ;;  %v4776_v10 = vld [vmem:[%s7646_s2 + $0x64] ss:$12 sps:$4 sm:$0xff]   ;;  %v4778_v11 = vld [vmem:[%s7646_s2 + $0x68] ss:$12 sps:$4 sm:$0xff]   ;;  %v4779_v12 = vld [vmem:[%s7646_s2 + $0x60] ss:$12 sps:$4 sm:$0xff]  }
  0x24   : > { %s4227_s27 = sshll.u32 %s7838_s20, 2  ;;  %v4780_v13 = vld [vmem:[%s7646_s2 + $0x4c] ss:$12 sps:$4 sm:$0xff]   ;;  %v4782_v14 = vld [vmem:[%s7646_s2 + $0x50] ss:$12 sps:$4 sm:$0xff]   ;;  %v5295_v3 = vshrl.u32 %v365_v1, 7 }
  0x25   : > { %607 = vmatpush1.bf16.msra.mxu0 %v4771_v6  ;;  %v4783_v15 = vld [vmem:[%s7646_s2 + $0x48] ss:$12 sps:$4 sm:$0xff]   ;;  %s5056_s21 = scalar_lea.vmem %s7645_s1, %s4227_s27  ;;  %v4786_v17 = vld [vmem:[%s7646_s2 + $0x38] ss:$12 sps:$4 sm:$0xff]   ;;  %v4787_v18 = vld [vmem:[%s7646_s2 + $0x30] ss:$12 sps:$4 sm:$0xff]  }
  0x26   : > { %4644 = vmatpush3.bf16.msra.mxu1 %v4770_v5  ;;  %608 = vmatprep.subr.bf16.mxu0 %v4772_v7  ;;  %v4784_v16 = vld [vmem:[%s7646_s2 + $0x34] ss:$12 sps:$4 sm:$0xff]   ;;  %v4788_v20 = vld [vmem:[%s7646_s2 + $0x1c] ss:$12 sps:$4 sm:$0xff]   ;;  %v4791_v22 = vld [vmem:[%s7646_s2 + $0x18] ss:$12 sps:$4 sm:$0xff]  }
  0x27   : > { %4645 = vmatprep.subr.bf16.mxu1 %v4774_v8  ;;  %v5065_v19 = vld [vmem:[%s5056_s21] sm:$0xff]   ;;  %v4794_v24 = vld [vmem:[%s7646_s2 + $0x8] ss:$12 sps:$4 sm:$0xff]   ;;  %v4808_v26 = vld [vmem:[%s7648_s4 + $0xac] ss:$12 sps:$4 sm:$0xff]   ;;  %v367_v4 = vsub.s32 0, %v5295_v3 }
  0x28   : > { %v4790_v21 = vld [vmem:[%s7646_s2 + $0x20] ss:$12 sps:$4 sm:$0xff]   ;;  %4657 = vmatprep.mubr.bf16.mxu1 %v5065_v19  ;;  %v4792_v23 = vld [vmem:[%s7646_s2 + $0x4] ss:$12 sps:$4 sm:$0xff]   ;;  %v4806_v29 = vld [vmem:[%s7648_s4 + $0xa8] ss:$12 sps:$4 sm:$0xff]  }
  0x29   : > { %609 = vmatpush1.bf16.msra.mxu0 %v4775_v9  ;;  %v4795_v25 = vld [vmem:[%s7646_s2] ss:$12 sps:$4 sm:$0xff]   ;;  %v5093_v28 = vld [vmem:[%s5056_s21 + $0x10] sm:$0xff]   ;;  %v4816_v32 = vld [vmem:[%s7648_s4 + $0x7c] ss:$12 sps:$4 sm:$0xff]   ;;  %v7653_v6 = vsub.s32 2, %v5295_v3 }
  0x2a   : > { %4646 = vmatpush3.bf16.msra.mxu1 %v4774_v8  ;;  %610 = vmatprep.subr.bf16.mxu0 %v4776_v10  ;;  %v5090_v27 = vld [vmem:[%s5056_s21 + $0x8] sm:$0xff]   ;;  %v4811_v30 = vld [vmem:[%s7648_s4 + $0x94] ss:$12 sps:$4 sm:$0xff]   ;;  %v4809_v31 = vld [vmem:[%s7648_s4 + $0x90] ss:$12 sps:$4 sm:$0xff]   ;;  %v371_v8 = vsub.s32 1, %v5295_v3 }
  0x2b   : > { %4647 = vmatprep.subr.bf16.mxu1 %v4778_v11  ;;  %v5112_v33 = vld [vmem:[%s5056_s21 + $0x18] sm:$0xff]   ;;  %v5115_v34 = vld [vmem:[%s5056_s21 + $0x20] sm:$0xff]   ;;  %v5131_v38 = vld [vmem:[%s5056_s21 + $0x28] sm:$0xff]   ;;  %s5470_s26 = scalar_lea.vmem [#allocation4], %s5434_s10  ;;  %vm1777_vm0 = vcmask 7168   ;;  %s5779_s28 = scalar_lea.vmem [#allocation6], %s5434_s10 }
  0x2c   : > { %v4814_v35 = vld [vmem:[%s7648_s4 + $0x78] ss:$12 sps:$4 sm:$0xff]   ;;  %v4817_v37 = vld [vmem:[%s7648_s4 + $0x60] ss:$12 sps:$4 sm:$0xff]   ;;  %v5137_v40 = vld [vmem:[%s5056_s21 + $0x30] sm:$0xff]   ;;  %s1874_s27 = sld [smem:[#allocation3]] }
  0x2d   : > { %611 = vmatpush1.bf16.msra.mxu0 %v4779_v12  ;;  %v4819_v36 = vld [vmem:[%s7648_s4 + $0x64] ss:$12 sps:$4 sm:$0xff]   ;;  %v4824_v39 = vld [vmem:[%s7648_s4 + $0x4c] ss:$12 sps:$4 sm:$0xff]   ;;  %v4822_v42 = vld [vmem:[%s7648_s4 + $0x48] ss:$12 sps:$4 sm:$0xff]  }
  0x2e   : > { %4648 = vmatpush3.bf16.msra.mxu1 %v4778_v11  ;;  %612 = vmatprep.subr.bf16.mxu0 %v4780_v13  ;;  %v4836_v41 = vld [vmem:[%s7648_s4 + $0xb0] ss:$12 sps:$4 sm:$0xff]   ;;  %v4837_v43 = vld [vmem:[%s7648_s4 + $0x98] ss:$12 sps:$4 sm:$0xff]   ;;  %v4827_v44 = vld [vmem:[%s7648_s4 + $0x34] ss:$12 sps:$4 sm:$0xff]  }
  0x2f   : > { %4649 = vmatprep.subr.bf16.mxu1 %v4782_v14  ;;  %v4838_v45 = vld [vmem:[%s7648_s4 + $0x80] ss:$12 sps:$4 sm:$0xff]   ;;  %v4825_v46 = vld [vmem:[%s7648_s4 + $0x30] ss:$12 sps:$4 sm:$0xff]   ;;  %v4839_v48 = vld [vmem:[%s7648_s4 + $0x68] ss:$12 sps:$4 sm:$0xff]  }
  0x30   : > { %v4832_v47 = vld [vmem:[%s7648_s4 + $0x1c] ss:$12 sps:$4 sm:$0xff]   ;;  %v5171_v50 = vld [vmem:[%s5056_s21 + $0x40] sm:$0xff]   ;;  %v5190_v55 = vld [vmem:[%s5056_s21 + $0x50] sm:$0xff]   ;;  %s6405_s29 = sld [smem:[#allocation3 + $0x1]]  ;;  %s6417_s30 = scalar_lea.vmem [#allocation5], %s5434_s10 }
  0x31   : > { %613 = vmatpush1.bf16.msra.mxu0 %v4783_v15  ;;  %v5168_v49 = vld [vmem:[%s5056_s21 + $0x38] sm:$0xff]   ;;  %v4835_v52 = vld [vmem:[%s7648_s4 + $0x4] ss:$12 sps:$4 sm:$0xff]   ;;  %v4833_v53 = vld [vmem:[%s7648_s4] ss:$12 sps:$4 sm:$0xff]   ;;  %s4549_s9 = sld [smem:[#allocation3 + $0x2]] }
  0x32   : > { %4650 = vmatpush3.bf16.msra.mxu1 %v4782_v14  ;;  %614 = vmatprep.subr.bf16.mxu0 %v4784_v16  ;;  %v4830_v51 = vld [vmem:[%s7648_s4 + $0x18] ss:$12 sps:$4 sm:$0xff]   ;;  %v5187_v54 = vld [vmem:[%s5056_s21 + $0x48] sm:$0xff]   ;;  %v5210_v59 = vld [vmem:[%s5056_s21 + $0x70] sm:$0xff]  }
  0x33   : > { %4651 = vmatprep.subr.bf16.mxu1 %v4786_v17  ;;  %v5197_v56 = vld [vmem:[%s5056_s21 + $0x58] sm:$0xff]   ;;  %v5200_v57 = vld [vmem:[%s5056_s21 + $0x60] sm:$0xff]   ;;  %v5207_v58 = vld [vmem:[%s5056_s21 + $0x68] sm:$0xff]  }
  0x34   : > { %v5217_v60 = vld [vmem:[%s5056_s21 + $0x78] sm:$0xff]   ;;  %v4842_v63 = vld [vmem:[%s7648_s4 + $0x20] ss:$12 sps:$4 sm:$0xff]   ;;  %v4843_v0 = vld [vmem:[%s7648_s4 + $0x8] ss:$12 sps:$4 sm:$0xff]   ;;  %s4590_s21 = sshll.u32 (%p4999_p9), %s4987_s0, 8 }
  0x35   : > { %615 = vmatpush1.bf16.msra.mxu0 %v4787_v18  ;;  %v4840_v61 = vld [vmem:[%s7648_s4 + $0x50] ss:$12 sps:$4 sm:$0xff]   ;;  %v4841_v62 = vld [vmem:[%s7648_s4 + $0x38] ss:$12 sps:$4 sm:$0xff]   ;;  %v363_v5 = vld [vmem:[%s7647_s3] sm:$0x7]  ;;  %s7043_s15 = scalar_lea.vmem (%p4999_p9), %s7650_s6, %s4590_s21 }
  0x36   : > { %4652 = vmatpush3.bf16.msra.mxu1 %v4786_v17  ;;  %616 = vmatprep.subr.bf16.mxu0 %v4788_v20  ;;  %v5306_v7 = vrot.slane %v363_v5, %v367_v4  ;;  %v5317_v15 = vrot.slane %v363_v5, %v371_v8 }
  0x37   : > { %4653 = vmatprep.subr.bf16.mxu1 %v4790_v21 }
  0x39   : > { %617 = vmatpush1.bf16.msra.mxu0 %v4791_v22 }
  0x3a   : > { %4654 = vmatpush3.bf16.msra.mxu1 %v4790_v21  ;;  %618 = vmatprep.subr.bf16.mxu0 %v4792_v23 }
  0x3b   : > { %4655 = vmatprep.subr.bf16.mxu1 %v4794_v24 }
  0x3d   : > { %619 = vmatpush1.bf16.msra.mxu0 %v4795_v25 }
  0x3e   : > { %4656 = vmatpush3.bf16.msra.mxu1 %v4794_v24  ;;  %4689 = vmatprep.subr.bf16.mxu0 %v4836_v41 }
  0x3f   : > { %1135 = vmatprep.subr.bf16.mxu1 %v4808_v26 }
  0x40   : > { %637 = vmatmul.mubr.bf16.vlgmr.msra.gmra.mxu0 %v5065_v19 }
  0x41   : > { %4658 = vmatmul.mubr.bf16.vlgmr.msra.gmra.mxu1 %v5090_v27  ;;  %646 = vmatprep.mubr.bf16.mxu0 %v4925_v2 }
  0x42   : > { %4661 = vmatprep.mubr.bf16.mxu1 %v5093_v28  ;;  %1136 = vmatpush1.bf16.msra.mxu1 %v4806_v29 }
  0x43   : > { %1137 = vmatprep.subr.bf16.mxu1 %v4811_v30  ;;  %4690 = vmatpush3.bf16.msra.mxu0 %v4836_v41 }
  0x44   : > { %4691 = vmatprep.subr.bf16.mxu0 %v4837_v43 }
  0x46   : > { %1138 = vmatpush1.bf16.msra.mxu1 %v4809_v31 }
  0x47   : > { %1139 = vmatprep.subr.bf16.mxu1 %v4816_v32  ;;  %4692 = vmatpush3.bf16.msra.mxu0 %v4837_v43 }
  0x48   : > { %647 = vmatmul.mubr.bf16.gmra.mxu0 %v5090_v27  ;;  %4693 = vmatprep.subr.bf16.mxu0 %v4838_v45 }
  0x49   : > { %4662 = vmatmul.mubr.bf16.gmra.mxu1 %v5112_v33  ;;  %656 = vmatprep.mubr.bf16.mxu0 %v4925_v2 }
  0x4a   : > { %4665 = vmatprep.mubr.bf16.mxu1 %v5115_v34  ;;  %1140 = vmatpush1.bf16.msra.mxu1 %v4814_v35 }
  0x4b   : > { %1141 = vmatprep.subr.bf16.mxu1 %v4819_v36  ;;  %4694 = vmatpush3.bf16.msra.mxu0 %v4838_v45 }
  0x4c   : > { %4695 = vmatprep.subr.bf16.mxu0 %v4839_v48 }
  0x4e   : > { %1142 = vmatpush1.bf16.msra.mxu1 %v4817_v37 }
  0x4f   : > { %1143 = vmatprep.subr.bf16.mxu1 %v4824_v39  ;;  %4696 = vmatpush3.bf16.msra.mxu0 %v4839_v48 }
  0x50   : > { %657 = vmatmul.mubr.bf16.gmra.mxu0 %v5093_v28  ;;  %4697 = vmatprep.subr.bf16.mxu0 %v4840_v61 }
  0x51   : > { %4666 = vmatmul.mubr.bf16.gmra.mxu1 %v5131_v38  ;;  %666 = vmatprep.mubr.bf16.mxu0 %v4925_v2 }
  0x52   : > { %4669 = vmatprep.mubr.bf16.mxu1 %v5137_v40  ;;  %1144 = vmatpush1.bf16.msra.mxu1 %v4822_v42 }
  0x53   : > { %1145 = vmatprep.subr.bf16.mxu1 %v4827_v44  ;;  %4698 = vmatpush3.bf16.msra.mxu0 %v4840_v61 }
  0x54   : > { %4699 = vmatprep.subr.bf16.mxu0 %v4841_v62 }
  0x56   : > { %1146 = vmatpush1.bf16.msra.mxu1 %v4825_v46 }
  0x57   : > { %1147 = vmatprep.subr.bf16.mxu1 %v4832_v47  ;;  %4700 = vmatpush3.bf16.msra.mxu0 %v4841_v62 }
  0x58   : > { %667 = vmatmul.mubr.bf16.gmra.mxu0 %v5112_v33  ;;  %4701 = vmatprep.subr.bf16.mxu0 %v4842_v63 }
  0x59   : > { %4670 = vmatmul.mubr.bf16.gmra.mxu1 %v5168_v49  ;;  %676 = vmatprep.mubr.bf16.mxu0 %v4925_v2 }
  0x5a   : > { %4673 = vmatprep.mubr.bf16.mxu1 %v5171_v50  ;;  %1148 = vmatpush1.bf16.msra.mxu1 %v4830_v51 }
  0x5b   : > { %1149 = vmatprep.subr.bf16.mxu1 %v4835_v52  ;;  %4702 = vmatpush3.bf16.msra.mxu0 %v4842_v63 }
  0x5c   : > { %4703 = vmatprep.subr.bf16.mxu0 %v4843_v0 }
  0x5e   : > { %1150 = vmatpush1.bf16.msra.mxu1 %v4833_v53 }
  0x5f   : > { %4704 = vmatpush3.bf16.msra.mxu0 %v4843_v0 }
  0x60   : > { %677 = vmatmul.mubr.bf16.gmra.mxu0 %v5115_v34 }
  0x61   : > { %4674 = vmatmul.mubr.bf16.gmra.mxu1 %v5187_v54  ;;  %686 = vmatprep.mubr.bf16.mxu0 %v4925_v2 }
  0x62   : > { %4677 = vmatprep.mubr.bf16.mxu1 %v5190_v55 }
  0x68   : > { %687 = vmatmul.mubr.bf16.gmra.mxu0 %v5131_v38 }
  0x69   : > { %4678 = vmatmul.mubr.bf16.gmra.mxu1 %v5197_v56  ;;  %696 = vmatprep.mubr.bf16.mxu0 %v4925_v2 }
  0x6a   : > { %4681 = vmatprep.mubr.bf16.mxu1 %v5200_v57 }
  0x70   : > { %697 = vmatmul.mubr.bf16.gmra.mxu0 %v5137_v40 }
  0x71   : > { %4682 = vmatmul.mubr.bf16.gmra.mxu1 %v5207_v58  ;;  %706 = vmatprep.mubr.bf16.mxu0 %v4925_v2 }
  0x72   : > { %4685 = vmatprep.mubr.bf16.mxu1 %v5210_v59 }
  0x78   : > { %707 = vmatmul.mubr.bf16.gmra.mxu0 %v5168_v49 }
  0x79   : > { %4686 = vmatmul.mubr.bf16.gmra.mxu1 %v5217_v60  ;;  %716 = vmatprep.mubr.bf16.mxu0 %v4925_v2 }
  0x7a   : > { %1167 = vmatprep.mubr.bf16.mxu1 %v4925_v2 }
  0x80   : > { %717 = vmatmul.mubr.bf16.gmra.mxu0 %v5171_v50 }
  0x81   : > { %1168 = vmatmul.mubr.bf16.vlgmr.msra.gmra.mxu1 %v5065_v19  ;;  %726 = vmatprep.mubr.bf16.mxu0 %v4925_v2 }
  0x82   : > { %1177 = vmatprep.mubr.bf16.mxu1 %v4925_v2 }
  0x88   : > { %727 = vmatmul.mubr.bf16.gmra.mxu0 %v5187_v54 }
  0x89   : > { %1178 = vmatmul.mubr.bf16.gmra.mxu1 %v5090_v27  ;;  %736 = vmatprep.mubr.bf16.mxu0 %v4925_v2 }
  0x8a   : > { %1187 = vmatprep.mubr.bf16.mxu1 %v4925_v2 }
  0x90   : > { %737 = vmatmul.mubr.bf16.gmra.mxu0 %v5190_v55 }
  0x91   : > { %1188 = vmatmul.mubr.bf16.gmra.mxu1 %v5093_v28  ;;  %746 = vmatprep.mubr.bf16.mxu0 %v4925_v2 }
  0x92   : > { %1197 = vmatprep.mubr.bf16.mxu1 %v4925_v2 }
  0x98   : > { %747 = vmatmul.mubr.bf16.gmra.mxu0 %v5197_v56 }
  0x99   : > { %1198 = vmatmul.mubr.bf16.gmra.mxu1 %v5112_v33  ;;  %756 = vmatprep.mubr.bf16.mxu0 %v4925_v2 }
  0x9a   : > { %1207 = vmatprep.mubr.bf16.mxu1 %v4925_v2 }
  0xa0   : > { %757 = vmatmul.mubr.bf16.gmra.mxu0 %v5200_v57 }
  0xa1   : > { %1208 = vmatmul.mubr.bf16.gmra.mxu1 %v5115_v34  ;;  %766 = vmatprep.mubr.bf16.mxu0 %v4925_v2 }
  0xa2   : > { %1217 = vmatprep.mubr.bf16.mxu1 %v4925_v2 }
  0xa8   : > { %767 = vmatmul.mubr.bf16.gmra.mxu0 %v5207_v58 }
  0xa9   : > { %1218 = vmatmul.mubr.bf16.gmra.mxu1 %v5131_v38  ;;  %776 = vmatprep.mubr.bf16.mxu0 %v4925_v2 }
  0xaa   : > { %1227 = vmatprep.mubr.bf16.mxu1 %v4925_v2 }
  0xb0   : > { %777 = vmatmul.mubr.bf16.gmra.mxu0 %v5210_v59 }
  0xb1   : > { %1228 = vmatmul.mubr.bf16.gmra.mxu1 %v5137_v40  ;;  %786 = vmatprep.mubr.bf16.mxu0 %v4925_v2 }
  0xb2   : > { %1237 = vmatprep.mubr.bf16.mxu1 %v4925_v2 }
  0xb8   : > { %787 = vmatmul.mubr.bf16.gmra.mxu0 %v5217_v60 }
  0xb9   : > { %1238 = vmatmul.mubr.bf16.gmra.mxu1 %v5168_v49  ;;  %4705 = vmatprep.mubr.bf16.mxu0 %v5065_v19 }
  0xba   : > { %1247 = vmatprep.mubr.bf16.mxu1 %v4925_v2 }
  0xc0   : > { %4706 = vmatmul.mubr.bf16.vlgmr.msra.gmra.mxu0 %v5090_v27 }
  0xc1   : > { %1248 = vmatmul.mubr.bf16.gmra.mxu1 %v5171_v50  ;;  %4709 = vmatprep.mubr.bf16.mxu0 %v5093_v28 }
  0xc2   : > { %1257 = vmatprep.mubr.bf16.mxu1 %v4925_v2 }
  0xc8   : > { %4710 = vmatmul.mubr.bf16.gmra.mxu0 %v5112_v33 }
  0xc9   : > { %1258 = vmatmul.mubr.bf16.gmra.mxu1 %v5187_v54  ;;  %4713 = vmatprep.mubr.bf16.mxu0 %v5115_v34 }
  0xca   : > { %1267 = vmatprep.mubr.bf16.mxu1 %v4925_v2 }
  0xd0   : > { %4714 = vmatmul.mubr.bf16.gmra.mxu0 %v5131_v38 }
  0xd1   : > { %1268 = vmatmul.mubr.bf16.gmra.mxu1 %v5190_v55  ;;  %4717 = vmatprep.mubr.bf16.mxu0 %v5137_v40 }
  0xd2   : > { %1277 = vmatprep.mubr.bf16.mxu1 %v4925_v2 }
  0xd8   : > { %4718 = vmatmul.mubr.bf16.gmra.mxu0 %v5168_v49 }
  0xd9   : > { %1278 = vmatmul.mubr.bf16.gmra.mxu1 %v5197_v56  ;;  %4721 = vmatprep.mubr.bf16.mxu0 %v5171_v50 }
  0xda   : > { %1287 = vmatprep.mubr.bf16.mxu1 %v4925_v2 }
  0xe0   : > { %4722 = vmatmul.mubr.bf16.gmra.mxu0 %v5187_v54 }
  0xe1   : > { %1288 = vmatmul.mubr.bf16.gmra.mxu1 %v5200_v57  ;;  %4725 = vmatprep.mubr.bf16.mxu0 %v5190_v55 }
  0xe2   : > { %1297 = vmatprep.mubr.bf16.mxu1 %v4925_v2 }
  0xe8   : > { %4726 = vmatmul.mubr.bf16.gmra.mxu0 %v5197_v56 }
  0xe9   : > { %1298 = vmatmul.mubr.bf16.gmra.mxu1 %v5207_v58  ;;  %4729 = vmatprep.mubr.bf16.mxu0 %v5200_v57 }
  0xea   : > { %1307 = vmatprep.mubr.bf16.mxu1 %v4925_v2 }
  0xf0   : > { %4730 = vmatmul.mubr.bf16.gmra.mxu0 %v5207_v58 }
  0xf1   : > { %1308 = vmatmul.mubr.bf16.gmra.mxu1 %v5210_v59  ;;  %4733 = vmatprep.mubr.bf16.mxu0 %v5210_v59 }
  0xf2   : > { %1317 = vmatprep.mubr.bf16.mxu1 %v4925_v2  ;;  %v5310_v2 = vrot.slane %v363_v5, %v7653_v6 }
  0xf8   : > { %4734 = vmatmul.mubr.bf16.gmra.mxu0 %v5217_v60 }
  0xf9   : > { %1318 = vmatmul.mubr.bf16.gmra.mxu1 %v5217_v60 }
 0x100   : > { %v638_v9 = vpop.f32.mrf.mxu0 }
 0x101   : > { %v4659_v10 = vpop.f32.mrf.mxu1  ;;  %v639_v11 = vadd.f32 %v638_v9, %v5306_v7 }
 0x102   : > { %v640_v12 = vpop.f32.mrf.mxu0  ;;  %v840_v14 = vadd.f32 %v4659_v10, %v5310_v2 }
 0x103   : > { %v831_v13 = vpop.f32.mrf.mxu1  ;;  %v1489_v16 = vmul.f32 %v639_v11, %v639_v11  ;;  %v641_v23 = vadd.f32 %v640_v12, %v5317_v15 }
 0x104   : > { %v642_v17 = vpop.f32.mrf.mxu0  ;;  %v2395_v22 = vmul.f32 %v840_v14, %v840_v14  ;;  %v832_v31 = vadd.f32 %v831_v13, %v5310_v2 }
 0x105   : > { %v4660_v18 = vpop.f32.mrf.mxu1  ;;  %1521 = vadd.xlane.f32.xlu0 %v1489_v16  ;;  %v1940_v30 = vmul.f32 %v641_v23, %v641_v23  ;;  %v643_v40 = vadd.f32 %v642_v17, %v5306_v7 }
 0x106   : > { %v843_v19 = vadd.f32 %v4660_v18, %v5310_v2  ;;  %v644_v20 = vpop.f32.mrf.mxu0  ;;  %v2393_v39 = vmul.f32 %v832_v31, %v832_v31 }
 0x107   : > { %v834_v21 = vpop.f32.mrf.mxu1  ;;  %v645_v24 = vadd.f32 %v644_v20, %v5317_v15  ;;  %v1490_v48 = vmul.f32 %v643_v40, %v643_v40 }
 0x108   : > { %v2396_v25 = vmul.f32 %v843_v19, %v843_v19  ;;  %v648_v26 = vpop.f32.mrf.mxu0  ;;  %v835_v33 = vadd.f32 %v834_v21, %v5310_v2 }
 0x109   : > { %v4663_v27 = vpop.f32.mrf.mxu1  ;;  %2429 = vadd.xlane.f32.xlu0 %v2395_v22  ;;  %v1941_v32 = vmul.f32 %v645_v24, %v645_v24  ;;  %v649_v36 = vadd.f32 %v648_v26, %v5306_v7 }
 0x10a   : > { %2431 = vadd.xlane.f32.xlu1 %v2396_v25  ;;  %v650_v28 = vpop.f32.mrf.mxu0  ;;  %v2394_v41 = vmul.f32 %v835_v33, %v835_v33  ;;  %v856_v45 = vadd.f32 %v4663_v27, %v5310_v2 }
 0x10b   : > { %v847_v29 = vpop.f32.mrf.mxu1  ;;  %v1491_v44 = vmul.f32 %v649_v36, %v649_v36  ;;  %v651_v55 = vadd.f32 %v650_v28, %v5317_v15 }
 0x10c   : > { %v652_v34 = vpop.f32.mrf.mxu0  ;;  %v2399_v52 = vmul.f32 %v856_v45, %v856_v45  ;;  %v848_v0 = vadd.f32 %v847_v29, %v5310_v2 }
 0x10d   : > { %v4664_v35 = vpop.f32.mrf.mxu1  ;;  %1972 = vadd.xlane.f32.xlu0 %v1940_v30  ;;  %v653_v49 = vadd.f32 %v652_v34, %v5306_v7  ;;  %v1942_v62 = vmul.f32 %v651_v55, %v651_v55 }
 0x10e   : > { %1974 = vadd.xlane.f32.xlu1 %v1941_v32  ;;  %v654_v37 = vpop.f32.mrf.mxu0  ;;  %v859_v57 = vadd.f32 %v4664_v35, %v5310_v2  ;;  %v2397_v14 = vmul.f32 %v848_v0, %v848_v0 }
 0x10f   : > { %v850_v38 = vpop.f32.mrf.mxu1  ;;  %v1492_v56 = vmul.f32 %v653_v49, %v653_v49  ;;  %v655_v63 = vadd.f32 %v654_v37, %v5317_v15 }
 0x110   : > { %v658_v42 = vpop.f32.mrf.mxu0  ;;  %v2400_v1 = vmul.f32 %v859_v57, %v859_v57  ;;  %v851_v16 = vadd.f32 %v850_v38, %v5310_v2 }
 0x111   : > { %v4667_v43 = vpop.f32.mrf.mxu1  ;;  %2425 = vadd.xlane.f32.xlu0 %v2393_v39  ;;  %v659_v10 = vadd.f32 %v658_v42, %v5306_v7  ;;  %v1943_v13 = vmul.f32 %v655_v63, %v655_v63 }
 0x112   : > { %2427 = vadd.xlane.f32.xlu1 %v2394_v41  ;;  %v660_v46 = vpop.f32.mrf.mxu0  ;;  %v872_v20 = vadd.f32 %v4667_v43, %v5310_v2  ;;  %v2398_v23 = vmul.f32 %v851_v16, %v851_v16 }
 0x113   : > { %v863_v47 = vpop.f32.mrf.mxu1  ;;  %v1493_v19 = vmul.f32 %v659_v10, %v659_v10  ;;  %v661_v30 = vadd.f32 %v660_v46, %v5317_v15 }
 0x114   : > { %v662_v50 = vpop.f32.mrf.mxu0  ;;  %v2403_v27 = vmul.f32 %v872_v20, %v872_v20  ;;  %v864_v39 = vadd.f32 %v863_v47, %v5310_v2 }
 0x115   : > { %v4668_v51 = vpop.f32.mrf.mxu1  ;;  %1523 = vadd.xlane.f32.xlu0 %v1490_v48  ;;  %v663_v24 = vadd.f32 %v662_v50, %v5306_v7  ;;  %v1944_v37 = vmul.f32 %v661_v30, %v661_v30 }
 0x116   : > { %1525 = vadd.xlane.f32.xlu1 %v1491_v44  ;;  %v664_v53 = vpop.f32.mrf.mxu0  ;;  %v875_v32 = vadd.f32 %v4668_v51, %v5310_v2  ;;  %v2401_v48 = vmul.f32 %v864_v39, %v864_v39 }
 0x117   : > { %v5328_v54 = vpop.f32.mrf.mxu1  ;;  %v1494_v31 = vmul.f32 %v663_v24, %v663_v24  ;;  %v665_v38 = vadd.f32 %v664_v53, %v5317_v15  ;;  %v5426_v24 = vld [vmem:[%s7649_s5] sm:$0x7] }
 0x118   : > { %v668_v58 = vpop.f32.mrf.mxu0  ;;  %v2404_v40 = vmul.f32 %v875_v32, %v875_v32  ;;  %v867_v49 = vadd.f32 %v5328_v54, %v5310_v2  ;;  %v5441_v32 = vrot.slane %v5426_v24, %v367_v4 }
 0x119   : > { %v4671_v59 = vpop.f32.mrf.mxu1  ;;  %2437 = vadd.xlane.f32.xlu0 %v2399_v52  ;;  %v669_v43 = vadd.f32 %v668_v58, %v5306_v7  ;;  %v1945_v46 = vmul.f32 %v665_v38, %v665_v38 }
 0x11a   : > { %1527 = vadd.xlane.f32.xlu1 %v1492_v56  ;;  %v5332_v60 = vpop.f32.mrf.mxu0  ;;  %v888_v52 = vadd.f32 %v4671_v59, %v5310_v2  ;;  %v2402_v56 = vmul.f32 %v867_v49, %v867_v49 }
 0x11b   : > { %v5334_v61 = vpop.f32.mrf.mxu1  ;;  %v1495_v51 = vmul.f32 %v669_v43, %v669_v43  ;;  %v671_v0 = vadd.f32 %v5332_v60, %v5317_v15 }
 0x11c   : > { %v672_v5 = vpop.f32.mrf.mxu0  ;;  %v2407_v54 = vmul.f32 %v888_v52, %v888_v52 }
 0x11d   : > { %v5338_v9 = vpop.f32.mrf.mxu1  ;;  %1976 = vadd.xlane.f32.xlu0 %v1942_v62  ;;  %v673_v57 = vadd.f32 %v672_v5, %v5306_v7  ;;  %v1946_v20 = vmul.f32 %v671_v0, %v671_v0 }
 0x11e   : > { %2439 = vadd.xlane.f32.xlu1 %v2400_v1  ;;  %v5341_v11 = vpop.f32.mrf.mxu0  ;;  %v891_v10 = vadd.f32 %v5338_v9, %v5310_v2 }
 0x11f   : > { %v5343_v12 = vpop.f32.mrf.mxu1  ;;  %v1496_v1 = vmul.f32 %v673_v57, %v673_v57  ;;  %v675_v60 = vadd.f32 %v5341_v11, %v5317_v15 }
 0x120   : > { %v5346_v17 = vpop.f32.mrf.mxu0 }
 0x121   : > { %v5348_v18 = vpop.f32.mrf.mxu1  ;;  %2433 = vadd.xlane.f32.xlu0 %v2397_v14  ;;  %v880_v14 = vadd.f32 %v5334_v61, %v5310_v2  ;;  %v679_v30 = vadd.f32 %v5346_v17, %v5306_v7  ;;  %v1947_v38 = vmul.f32 %v675_v60, %v675_v60  ;;  %v883_v17 = vadd.f32 %v5343_v12, %v5310_v2 }
 0x122   : > { %1978 = vadd.xlane.f32.xlu1 %v1943_v13  ;;  %v5351_v21 = vpop.f32.mrf.mxu0  ;;  %v904_v4 = vadd.f32 %v5348_v18, %v5310_v2 }
 0x123   : > { %v5353_v22 = vpop.f32.mrf.mxu1  ;;  %v2405_v39 = vmul.f32 %v880_v14, %v880_v14  ;;  %v2406_v52 = vmul.f32 %v883_v17, %v883_v17 }
 0x124   : > { %v5356_v25 = vpop.f32.mrf.mxu0 }
 0x125   : > { %v5358_v26 = vpop.f32.mrf.mxu1  ;;  %1529 = vadd.xlane.f32.xlu0 %v1493_v19  ;;  %v683_v12 = vadd.f32 %v5356_v25, %v5306_v7 }
 0x126   : > { %2435 = vadd.xlane.f32.xlu1 %v2398_v23  ;;  %v5360_v28 = vpop.f32.mrf.mxu0  ;;  %v2408_v23 = vmul.f32 %v891_v10, %v891_v10  ;;  %v681_v10 = vadd.f32 %v5351_v21, %v5317_v15 }
 0x127   : > { %v5362_v29 = vpop.f32.mrf.mxu1  ;;  %v1498_v14 = vmul.f32 %v683_v12, %v683_v12 }
 0x128   : > { %v5366_v33 = vpop.f32.mrf.mxu0 }
 0x129   : > { %v5368_v34 = vpop.f32.mrf.mxu1  ;;  %2445 = vadd.xlane.f32.xlu0 %v2403_v27 }
 0x12a   : > { %1531 = vadd.xlane.f32.xlu1 %v1494_v31  ;;  %v5370_v35 = vpop.f32.mrf.mxu0 }
 0x12b   : > { %v5372_v36 = vpop.f32.mrf.mxu1 }
 0x12c   : > { %v5376_v41 = vpop.f32.mrf.mxu0 }
 0x12d   : > { %v5378_v42 = vpop.f32.mrf.mxu1  ;;  %1980 = vadd.xlane.f32.xlu0 %v1944_v37  ;;  %v5446_v37 = vrot.slane %v5426_v24, %v371_v8 }
 0x12e   : > { %2447 = vadd.xlane.f32.xlu1 %v2404_v40  ;;  %v5381_v44 = vpop.f32.mrf.mxu0 }
 0x12f   : > { %v5383_v45 = vpop.f32.mrf.mxu1 }
 0x130   : > { %v5387_v50 = vpop.f32.mrf.mxu0 }
 0x131   : > { %v5389_v47 = vpop.f32.mrf.mxu1  ;;  %2441 = vadd.xlane.f32.xlu0 %v2401_v48  ;;  %v1497_v48 = vmul.f32 %v679_v30, %v679_v30  ;;  %v896_v30 = vadd.f32 %v5353_v22, %v5310_v2  ;;  %v689_v22 = vadd.f32 %v5366_v33, %v5306_v7 }
 0x132   : > { %1982 = vadd.xlane.f32.xlu1 %v1945_v46  ;;  %v5392_v53 = vpop.f32.mrf.mxu0 }
 0x133   : > { %v5394_v55 = vpop.f32.mrf.mxu1 }
 0x134   : > { %v5397_v58 = vpop.f32.mrf.mxu0 }
 0x135   : > { %v5399_v62 = vpop.f32.mrf.mxu1  ;;  %1533 = vadd.xlane.f32.xlu0 %v1495_v51 }
 0x136   : > { %2443 = vadd.xlane.f32.xlu1 %v2402_v56  ;;  %v5401_v63 = vpop.f32.mrf.mxu0 }
 0x137   : > { %v5403_v59 = vpop.f32.mrf.mxu1 }
 0x138   : > { %v5409_v5 = vpop.f32.mrf.mxu0 }
 0x139   : > { %v5411_v13 = vpop.f32.mrf.mxu1  ;;  %2453 = vadd.xlane.f32.xlu0 %v2407_v54  ;;  %v2411_v54 = vmul.f32 %v904_v4, %v904_v4 }
 0x13a   : > { %1535 = vadd.xlane.f32.xlu1 %v1496_v1  ;;  %v5415_v16 = vpop.f32.mrf.mxu0 }
 0x13b   : > { %v943_v19 = vpop.f32.mrf.mxu1 }
 0x13c   : > { %v5421_v9 = vadd.f32 %v943_v19, %v5310_v2  ;;  %v5428_v27 = vpop.f32.mrf.mxu0  ;;  %v907_v19 = vadd.f32 %v5358_v26, %v5310_v2 }
 0x13d   : > { %v5430_v61 = vpop.f32.mrf.mxu1  ;;  %1984 = vadd.xlane.f32.xlu0 %v1946_v20 }
 0x13e   : > { %2455 = vadd.xlane.f32.xlu1 %v2408_v23  ;;  %v5436_v11 = vpop.f32.mrf.mxu0  ;;  %v2412_v17 = vmul.f32 %v907_v19, %v907_v19  ;;  %v920_v19 = vadd.f32 %v5368_v34, %v5310_v2 }
 0x13f   : > { %v946_v31 = vpop.f32.mrf.mxu1 }
 0x140   : > { %v5451_v40 = vadd.f32 %v946_v31, %v5310_v2  ;;  %v5453_v43 = vpop.f32.mrf.mxu0 }
 0x141   : > { %v1169_v46 = vpop.f32.mrf.mxu1  ;;  %2449 = vadd.xlane.f32.xlu0 %v2405_v39  ;;  %v685_v39 = vadd.f32 %v5360_v28, %v5317_v15 }
 0x142   : > { %1986 = vadd.xlane.f32.xlu1 %v1947_v38  ;;  %v5457_v8 = vpop.f32.mrf.mxu0  ;;  %v5460_v49 = vadd.f32 %v1169_v46, %v5441_v32  ;;  %v1948_v38 = vmul.f32 %v681_v10, %v681_v10 }
 0x143   : > { %v1171_v51 = vpop.f32.mrf.mxu1  ;;  %v1949_v12 = vmul.f32 %v685_v39, %v685_v39 }
 0x144   : > { %v5465_v56 = vadd.f32 %v1171_v51, %v5446_v37  ;;  %v5467_v57 = vpop.f32.mrf.mxu0  ;;  %1681 = vst [vmem:[%s5470_s26] sm:$0xff] %v5460_v49 }
 0x145   : > { %v1173_v18 = vpop.f32.mrf.mxu1  ;;  %1537 = vadd.xlane.f32.xlu0 %v1497_v48 }
 0x146   : > { %2451 = vadd.xlane.f32.xlu1 %v2406_v52  ;;  %4324 = vst [vmem:[%s5470_s26 + $0x100] sm:$0xff] %v5465_v56  ;;  %v5477_v25 = vadd.f32 %v1173_v18, %v5441_v32  ;;  %v5479_v0 = vpop.f32.mrf.mxu0  ;;  %v2409_v18 = vmul.f32 %v896_v30, %v896_v30 }
 0x147   : > { %v1175_v1 = vpop.f32.mrf.mxu1 }
 0x148   : > { %1682 = vst [vmem:[%s5470_s26 + $0x8] sm:$0xff] %v5477_v25  ;;  %v5488_v20 = vadd.f32 %v1175_v1, %v5446_v37  ;;  %v5490_v60 = vpop.f32.mrf.mxu0 }
 0x149   : > { %v1179_v23 = vpop.f32.mrf.mxu1  ;;  %2461 = vadd.xlane.f32.xlu0 %v2411_v54  ;;  %v899_v54 = vadd.f32 %v5362_v29, %v5310_v2 }
 0x14a   : > { %1539 = vadd.xlane.f32.xlu1 %v1498_v14  ;;  %4325 = vst [vmem:[%s5470_s26 + $0x108] sm:$0xff] %v5488_v20  ;;  %v5495_v21 = vadd.f32 %v1179_v23, %v5441_v32  ;;  %v5499_v26 = vpop.f32.mrf.mxu0  ;;  %v1499_v14 = vmul.f32 %v689_v22, %v689_v22 }
 0x14b   : > { %v1181_v31 = vpop.f32.mrf.mxu1 }
 0x14c   : > { %1683 = vst [vmem:[%s5470_s26 + $0x10] sm:$0xff] %v5495_v21  ;;  %v5506_v46 = vadd.f32 %v1181_v31, %v5446_v37  ;;  %v5508_v48 = vpop.f32.mrf.mxu0  ;;  %v2410_v31 = vmul.f32 %v899_v54, %v899_v54  ;;  %v923_v54 = vadd.f32 %v5378_v42, %v5310_v2 }
 0x14d   : > { %v1183_v4 = vpop.f32.mrf.mxu1  ;;  %1988 = vadd.xlane.f32.xlu0 %v1948_v38  ;;  %v693_v38 = vadd.f32 %v5376_v41, %v5306_v7 }
 0x14e   : > { %2463 = vadd.xlane.f32.xlu1 %v2412_v17  ;;  %4326 = vst [vmem:[%s5470_s26 + $0x110] sm:$0xff] %v5506_v46  ;;  %v5515_v28 = vadd.f32 %v1183_v4, %v5441_v32  ;;  %v5517_v51 = vpop.f32.mrf.mxu0  ;;  %v2415_v4 = vmul.f32 %v920_v19, %v920_v19 }
 0x14f   : > { %v1185_v52 = vpop.f32.mrf.mxu1 }
 0x150   : > { %1684 = vst [vmem:[%s5470_s26 + $0x18] sm:$0xff] %v5515_v28  ;;  %v5524_v33 = vadd.f32 %v1185_v52, %v5446_v37  ;;  %v5526_v1 = vpop.f32.mrf.mxu0 }
 0x151   : > { %v1189_v10 = vpop.f32.mrf.mxu1  ;;  %2457 = vadd.xlane.f32.xlu0 %v2409_v18  ;;  %v1500_v18 = vmul.f32 %v693_v38, %v693_v38 }
 0x152   : > { %1990 = vadd.xlane.f32.xlu1 %v1949_v12  ;;  %4327 = vst [vmem:[%s5470_s26 + $0x118] sm:$0xff] %v5524_v33  ;;  %v5533_v23 = vadd.f32 %v1189_v10, %v5441_v32  ;;  %v5535_v29 = vpop.f32.mrf.mxu0  ;;  %v691_v12 = vadd.f32 %v5370_v35, %v5317_v15 }
 0x153   : > { %v1191_v30 = vpop.f32.mrf.mxu1 }
 0x154   : > { %1685 = vst [vmem:[%s5470_s26 + $0x20] sm:$0xff] %v5533_v23  ;;  %v5542_v34 = vadd.f32 %v1191_v30, %v5446_v37  ;;  %v5544_v39 = vpop.f32.mrf.mxu0  ;;  %v912_v30 = vadd.f32 %v5372_v36, %v5310_v2  ;;  %v1950_v38 = vmul.f32 %v691_v12, %v691_v12  ;;  %v699_v36 = vadd.f32 %v5387_v50, %v5306_v7 }
 0x155   : > { %v1193_v17 = vpop.f32.mrf.mxu1  ;;  %1541 = vadd.xlane.f32.xlu0 %v1499_v14 }
 0x156   : > { %2459 = vadd.xlane.f32.xlu1 %v2410_v31  ;;  %4328 = vst [vmem:[%s5470_s26 + $0x120] sm:$0xff] %v5542_v34  ;;  %v5549_v22 = vadd.f32 %v1193_v17, %v5441_v32  ;;  %v5551_v52 = vpop.f32.mrf.mxu0  ;;  %v695_v17 = vadd.f32 %v5381_v44, %v5317_v15 }
 0x157   : > { %v1195_v41 = vpop.f32.mrf.mxu1 }
 0x158   : > { %1686 = vst [vmem:[%s5470_s26 + $0x28] sm:$0xff] %v5549_v22  ;;  %v5560_v10 = vadd.f32 %v1195_v41, %v5446_v37  ;;  %v5562_v14 = vpop.f32.mrf.mxu0  ;;  %v2416_v41 = vmul.f32 %v923_v54, %v923_v54  ;;  %v1951_v6 = vmul.f32 %v695_v17, %v695_v17 }
 0x159   : > { %v1199_v19 = vpop.f32.mrf.mxu1  ;;  %2469 = vadd.xlane.f32.xlu0 %v2415_v4 }
 0x15a   : > { %1543 = vadd.xlane.f32.xlu1 %v1500_v18  ;;  %4329 = vst [vmem:[%s5470_s26 + $0x128] sm:$0xff] %v5560_v10  ;;  %v5567_v35 = vadd.f32 %v1199_v19, %v5441_v32  ;;  %v5571_v42 = vpop.f32.mrf.mxu0 }
 0x15b   : > { %7709 = vst [vmem:[#allocation8_spill] sm:$0xff] %v5571_v42  ;;  %v1201_v31 = vpop.f32.mrf.mxu1  ;;  %v915_v42 = vadd.f32 %v5383_v45, %v5310_v2 }
 0x15c   : > { %1687 = vst [vmem:[%s5470_s26 + $0x30] sm:$0xff] %v5567_v35  ;;  %v5578_v4 = vadd.f32 %v1201_v31, %v5446_v37  ;;  %v5580_v18 = vpop.f32.mrf.mxu0  ;;  %v2413_v31 = vmul.f32 %v912_v30, %v912_v30 }
 0x15d   : > { %v1203_v19 = vpop.f32.mrf.mxu1  ;;  %1992 = vadd.xlane.f32.xlu0 %v1950_v38 }
 0x15e   : > { %7710 = vst [vmem:[#allocation9_spill] sm:$0xff] %v5578_v4  ;;  %2471 = vadd.xlane.f32.xlu1 %v2416_v41  ;;  %4330 = vst [vmem:[%s5470_s26 + $0x130] sm:$0xff] %v5578_v4  ;;  %v5587_v44 = vadd.f32 %v1203_v19, %v5441_v32  ;;  %v5589_v12 = vpop.f32.mrf.mxu0  ;;  %v1501_v4 = vmul.f32 %v699_v36, %v699_v36  ;;  %v936_v19 = vadd.f32 %v5389_v47, %v5310_v2 }
 0x15f   : > { %v1205_v54 = vpop.f32.mrf.mxu1 }
 0x160   : > { %1688 = vst [vmem:[%s5470_s26 + $0x38] sm:$0xff] %v5587_v44  ;;  %v5596_v50 = vadd.f32 %v1205_v54, %v5446_v37  ;;  %v5598_v38 = vpop.f32.mrf.mxu0  ;;  %v2414_v54 = vmul.f32 %v915_v42, %v915_v42 }
 0x161   : > { %7711 = vst [vmem:[#allocation10_spill] sm:$0xff] %v5598_v38  ;;  %v1209_v41 = vpop.f32.mrf.mxu1  ;;  %2465 = vadd.xlane.f32.xlu0 %v2413_v31  ;;  %v703_v38 = vadd.f32 %v5397_v58, %v5306_v7  ;;  %v2419_v31 = vmul.f32 %v936_v19, %v936_v19 }
 0x162   : > { %1994 = vadd.xlane.f32.xlu1 %v1951_v6  ;;  %4331 = vst [vmem:[%s5470_s26 + $0x138] sm:$0xff] %v5596_v50  ;;  %v5605_v30 = vadd.f32 %v1209_v41, %v5441_v32  ;;  %v5607_v45 = vpop.f32.mrf.mxu0 }
 0x163   : > { %7713 = vst [vmem:[#allocation12_spill] sm:$0xff] %v5607_v45  ;;  %v1211_v17 = vpop.f32.mrf.mxu1  ;;  %v701_v45 = vadd.f32 %v5392_v53, %v5317_v15  ;;  %v928_v53 = vadd.f32 %v5394_v55, %v5310_v2 }
 0x164   : > { %7712 = vst [vmem:[#allocation11_spill] sm:$0xff] %v5605_v30  ;;  %1689 = vst [vmem:[%s5470_s26 + $0x40] sm:$0xff] %v5605_v30  ;;  %v5614_v47 = vadd.f32 %v1211_v17, %v5446_v37  ;;  %v5616_v6 = vpop.f32.mrf.mxu0  ;;  %v1502_v17 = vmul.f32 %v703_v38, %v703_v38  ;;  %v939_v30 = vadd.f32 %v5399_v62, %v5310_v2 }
 0x165   : > { %v1213_v36 = vpop.f32.mrf.mxu1  ;;  %1545 = vadd.xlane.f32.xlu0 %v1501_v4 }
 0x166   : > { %7714 = vst [vmem:[#allocation13_spill] sm:$0xff] %v5614_v47  ;;  %2467 = vadd.xlane.f32.xlu1 %v2414_v54  ;;  %4332 = vst [vmem:[%s5470_s26 + $0x140] sm:$0xff] %v5614_v47  ;;  %v5620_v41 = vpop.f32.mrf.mxu0  ;;  %v5623_v42 = vadd.f32 %v1213_v36, %v5441_v32  ;;  %v705_v47 = vadd.f32 %v5401_v63, %v5317_v15 }
 0x167   : > { %v1215_v58 = vpop.f32.mrf.mxu1 }
 0x168   : > { %v5630_v19 = vadd.f32 %v1215_v58, %v5446_v37  ;;  %1690 = vst [vmem:[%s5470_s26 + $0x48] sm:$0xff] %v5623_v42  ;;  %v5634_v4 = vpop.f32.mrf.mxu0  ;;  %v1952_v58 = vmul.f32 %v701_v45, %v701_v45 }
 0x169   : > { %7715 = vst [vmem:[#allocation14_spill] sm:$0xff] %v5634_v4  ;;  %v1219_v54 = vpop.f32.mrf.mxu1  ;;  %2477 = vadd.xlane.f32.xlu0 %v2419_v31  ;;  %v2420_v4 = vmul.f32 %v939_v30, %v939_v30 }
 0x16a   : > { %1547 = vadd.xlane.f32.xlu1 %v1502_v17  ;;  %4333 = vst [vmem:[%s5470_s26 + $0x148] sm:$0xff] %v5630_v19  ;;  %v5640_v38 = vpop.f32.mrf.mxu0  ;;  %v5643_v62 = vadd.f32 %v1219_v54, %v5441_v32  ;;  %v1953_v54 = vmul.f32 %v705_v47, %v705_v47 }
 0x16b   : > { %7716 = vst [vmem:[#allocation15_spill] sm:$0xff] %v5640_v38  ;;  %v1221_v36 = vpop.f32.mrf.mxu1  ;;  %v709_v38 = vadd.f32 %v5409_v5, %v5306_v7 }
 0x16c   : > { %7717 = vst [vmem:[#allocation16_spill] sm:$0xff] %v5643_v62  ;;  %v5648_v31 = vadd.f32 %v1221_v36, %v5446_v37  ;;  %v5650_v17 = vpop.f32.mrf.mxu0  ;;  %1691 = vst [vmem:[%s5470_s26 + $0x50] sm:$0xff] %v5643_v62  ;;  %v2417_v36 = vmul.f32 %v928_v53, %v928_v53  ;;  %v931_v62 = vadd.f32 %v5403_v59, %v5310_v2 }
 0x16d   : > { %7719 = vst [vmem:[#allocation18_spill] sm:$0xff] %v5650_v17  ;;  %v1223_v55 = vpop.f32.mrf.mxu1  ;;  %1996 = vadd.xlane.f32.xlu0 %v1952_v58  ;;  %v1503_v58 = vmul.f32 %v709_v38, %v709_v38 }
 0x16e   : > { %7718 = vst [vmem:[#allocation17_spill] sm:$0xff] %v5648_v31  ;;  %2479 = vadd.xlane.f32.xlu1 %v2420_v4  ;;  %4334 = vst [vmem:[%s5470_s26 + $0x150] sm:$0xff] %v5648_v31  ;;  %v5658_v45 = vpop.f32.mrf.mxu0  ;;  %v5661_v63 = vadd.f32 %v1223_v55, %v5441_v32  ;;  %v952_v55 = vadd.f32 %v5411_v13, %v5310_v2  ;;  %v713_v31 = vadd.f32 %v5428_v27, %v5306_v7 }
 0x16f   : > { %v1225_v30 = vpop.f32.mrf.mxu1  ;;  %v711_v27 = vadd.f32 %v5415_v16, %v5317_v15 }
 0x170   : > { %v5666_v17 = vadd.f32 %v1225_v30, %v5446_v37  ;;  %1692 = vst [vmem:[%s5470_s26 + $0x58] sm:$0xff] %v5661_v63  ;;  %v5670_v5 = vpop.f32.mrf.mxu0  ;;  %v2418_v30 = vmul.f32 %v931_v62, %v931_v62 }
 0x171   : > { %7720 = vst [vmem:[#allocation19_spill] sm:$0xff] %v5670_v5  ;;  %v1229_v4 = vpop.f32.mrf.mxu1  ;;  %2473 = vadd.xlane.f32.xlu0 %v2417_v36 }
 0x172   : > { %1998 = vadd.xlane.f32.xlu1 %v1953_v54  ;;  %4335 = vst [vmem:[%s5470_s26 + $0x158] sm:$0xff] %v5666_v17  ;;  %v5676_v47 = vpop.f32.mrf.mxu0  ;;  %v5679_v59 = vadd.f32 %v1229_v4, %v5441_v32  ;;  %v2423_v54 = vmul.f32 %v952_v55, %v952_v55 }
 0x173   : > { %7721 = vst [vmem:[#allocation20_spill] sm:$0xff] %v5676_v47  ;;  %v1231_v53 = vpop.f32.mrf.mxu1  ;;  %v1504_v47 = vmul.f32 %v713_v31, %v713_v31  ;;  %v1954_v31 = vmul.f32 %v711_v27, %v711_v27 }
 0x174   : > { %7722 = vst [vmem:[#allocation21_spill] sm:$0xff] %v5679_v59  ;;  %v1232_v38 = vadd.f32 %v1231_v53, %v5446_v37  ;;  %v5684_v5 = vpop.f32.mrf.mxu0  ;;  %1693 = vst [vmem:[%s5470_s26 + $0x60] sm:$0xff] %v5679_v59  ;;  %v955_v53 = vadd.f32 %v5430_v61, %v5310_v2  ;;  %v715_v2 = vadd.f32 %v5436_v11, %v5317_v15 }
 0x175   : > { %v1233_v13 = vpop.f32.mrf.mxu1  ;;  %1549 = vadd.xlane.f32.xlu0 %v1503_v58 }
 0x176   : > { %2475 = vadd.xlane.f32.xlu1 %v2418_v30  ;;  %4336 = vst [vmem:[%s5470_s26 + $0x160] sm:$0xff] %v1232_v38  ;;  %v5689_v36 = vpop.f32.mrf.mxu0  ;;  %v1234_v62 = vadd.f32 %v1233_v13, %v5441_v32  ;;  %v2424_v61 = vmul.f32 %v955_v53, %v955_v53  ;;  %v1955_v27 = vmul.f32 %v715_v2, %v715_v2 }
 0x177   : > { %v1235_v4 = vpop.f32.mrf.mxu1  ;;  %v2421_v53 = vmul.f32 %v5421_v9, %v5421_v9 }
 0x178   : > { %v1236_v59 = vadd.f32 %v1235_v4, %v5446_v37  ;;  %1694 = vst [vmem:[%s5470_s26 + $0x68] sm:$0xff] %v1234_v62  ;;  %v5698_v55 = vpop.f32.mrf.mxu0 }
 0x179   : > { %v1239_v58 = vpop.f32.mrf.mxu1  ;;  %2485 = vadd.xlane.f32.xlu0 %v2423_v54 }
 0x17a   : > { %1551 = vadd.xlane.f32.xlu1 %v1504_v47  ;;  %4337 = vst [vmem:[%s5470_s26 + $0x168] sm:$0xff] %v1236_v59  ;;  %v5701_v30 = vpop.f32.mrf.mxu0  ;;  %v1240_v38 = vadd.f32 %v1239_v58, %v5441_v32  ;;  %v719_v59 = vadd.f32 %v5453_v43, %v5306_v7 }
 0x17b   : > { %v1241_v16 = vpop.f32.mrf.mxu1 }
 0x17c   : > { %v1242_v13 = vadd.f32 %v1241_v16, %v5446_v37  ;;  %v5707_v62 = vpop.f32.mrf.mxu0  ;;  %1695 = vst [vmem:[%s5470_s26 + $0x70] sm:$0xff] %v1240_v38  ;;  %v7723_v38 = vsub.s32 2, %v5295_v3  ;;  %v2422_v3 = vmul.f32 %v5451_v40, %v5451_v40 }
 0x17d   : > { %v1243_v47 = vpop.f32.mrf.mxu1  ;;  %2000 = vadd.xlane.f32.xlu0 %v1954_v31 }
 0x17e   : > { %2487 = vadd.xlane.f32.xlu1 %v2424_v61  ;;  %4338 = vst [vmem:[%s5470_s26 + $0x170] sm:$0xff] %v1242_v13  ;;  %v5713_v54 = vpop.f32.mrf.mxu0  ;;  %v1244_v4 = vadd.f32 %v1243_v47, %v5441_v32  ;;  %v5722_v43 = vrot.slane %v5426_v24, %v7723_v38  ;;  %v1505_v61 = vmul.f32 %v719_v59, %v719_v59 }
 0x17f   : > { %v1245_v11 = vpop.f32.mrf.mxu1  ;;  %v723_v24 = vadd.f32 %v5467_v57, %v5306_v7 }
 0x180   : > { %v1246_v58 = vadd.f32 %v1245_v11, %v5446_v37  ;;  %1696 = vst [vmem:[%s5470_s26 + $0x78] sm:$0xff] %v1244_v4  ;;  %v4707_v31 = vpop.f32.mrf.mxu0 }
 0x181   : > { %v1249_v16 = vpop.f32.mrf.mxu1  ;;  %2481 = vadd.xlane.f32.xlu0 %v2421_v53  ;;  %v1371_v13 = vadd.f32 %v4707_v31, %v5722_v43  ;;  %v1585_v53 = vmul.f32 %v5460_v49, %v5460_v49  ;;  %v1506_v31 = vmul.f32 %v723_v24, %v723_v24  ;;  %v729_v24 = vadd.f32 %v5490_v60, %v5306_v7 }
 0x182   : > { %2002 = vadd.xlane.f32.xlu1 %v1955_v27  ;;  %4339 = vst [vmem:[%s5470_s26 + $0x178] sm:$0xff] %v1246_v58  ;;  %v1250_v2 = vadd.f32 %v1249_v16, %v5441_v32  ;;  %v1362_v47 = vpop.f32.mrf.mxu0  ;;  %v721_v16 = vadd.f32 %v5457_v8, %v5317_v15  ;;  %v1586_v8 = vmul.f32 %v5477_v25, %v5477_v25 }
 0x183   : > { %v1251_v9 = vpop.f32.mrf.mxu1  ;;  %v1363_v4 = vadd.f32 %v1362_v47, %v5722_v43  ;;  %4455 = vst [vmem:[%s5470_s26 + $0x210] sm:$0xff] %v1371_v13  ;;  %v725_v13 = vadd.f32 %v5479_v0, %v5317_v15 }
 0x184   : > { %1697 = vst [vmem:[%s5470_s26 + $0x80] sm:$0xff] %v1250_v2  ;;  %v1252_v59 = vadd.f32 %v1251_v9, %v5446_v37  ;;  %v4708_v27 = vpop.f32.mrf.mxu0  ;;  %v1956_v9 = vmul.f32 %v721_v16, %v721_v16 }
 0x185   : > { %v1253_v11 = vpop.f32.mrf.mxu1  ;;  %1553 = vadd.xlane.f32.xlu0 %v1505_v61  ;;  %4453 = vst [vmem:[%s5470_s26 + $0x200] sm:$0xff] %v1363_v4  ;;  %v1374_v58 = vadd.f32 %v4708_v27, %v5722_v43  ;;  %v2036_v4 = vmul.f32 %v5465_v56, %v5465_v56 }
 0x186   : > { %2483 = vadd.xlane.f32.xlu1 %v2422_v3  ;;  %4340 = vst [vmem:[%s5470_s26 + $0x180] sm:$0xff] %v1252_v59  ;;  %v1254_v40 = vadd.f32 %v1253_v11, %v5441_v32  ;;  %v1365_v38 = vpop.f32.mrf.mxu0  ;;  %v1957_v11 = vmul.f32 %v725_v13, %v725_v13 }
 0x187   : > { %v1255_v57 = vpop.f32.mrf.mxu1  ;;  %v1366_v2 = vadd.f32 %v1365_v38, %v5722_v43  ;;  %4456 = vst [vmem:[%s5470_s26 + $0x218] sm:$0xff] %v1374_v58  ;;  %v1507_v58 = vmul.f32 %v729_v24, %v729_v24  ;;  %v1587_v24 = vmul.f32 %v5495_v21, %v5495_v21 }
 0x188   : > { %1698 = vst [vmem:[%s5470_s26 + $0x88] sm:$0xff] %v1254_v40  ;;  %v1256_v61 = vadd.f32 %v1255_v57, %v5446_v37  ;;  %v4711_v60 = vpop.f32.mrf.mxu0 }
 0x189   : > { %1617 = vadd.xlane.f32.xlu0 %v1585_v53  ;;  %4454 = vst [vmem:[%s5470_s26 + $0x208] sm:$0xff] %v1366_v2  ;;  %v1259_v49 = vpop.f32.mrf.mxu1  ;;  %v1387_v40 = vadd.f32 %v4711_v60, %v5722_v43  ;;  %v2037_v2 = vmul.f32 %v5488_v20, %v5488_v20 }
 0x18a   : > { %1555 = vadd.xlane.f32.xlu1 %v1506_v31  ;;  %4341 = vst [vmem:[%s5470_s26 + $0x188] sm:$0xff] %v1256_v61  ;;  %v1260_v47 = vadd.f32 %v1259_v49, %v5441_v32  ;;  %v1378_v16 = vpop.f32.mrf.mxu0  ;;  %v733_v49 = vadd.f32 %v5508_v48, %v5306_v7 }
 0x18b   : > { %v1261_v3 = vpop.f32.mrf.mxu1  ;;  %4459 = vst [vmem:[%s5470_s26 + $0x230] sm:$0xff] %v1387_v40 }
 0x18c   : > { %1699 = vst [vmem:[%s5470_s26 + $0x90] sm:$0xff] %v1260_v47  ;;  %v1262_v27 = vadd.f32 %v1261_v3, %v5446_v37  ;;  %v4712_v20 = vpop.f32.mrf.mxu0 }
 0x18d   : > { %2004 = vadd.xlane.f32.xlu0 %v1956_v9  ;;  %v1263_v0 = vpop.f32.mrf.mxu1  ;;  %v1390_v47 = vadd.f32 %v4712_v20, %v5722_v43 }
 0x18e   : > { %1619 = vadd.xlane.f32.xlu1 %v1586_v8  ;;  %v5758_v59 = vpop.xlane.xlu0 %1521  ;;  %v1264_v53 = vadd.f32 %v1263_v0, %v5441_v32  ;;  %4342 = vst [vmem:[%s5470_s26 + $0x190] sm:$0xff] %v1262_v27  ;;  %v1379_v8 = vadd.f32 %v1378_v16, %v5722_v43  ;;  %v731_v0 = vadd.f32 %v5499_v26, %v5317_v15 }
 0x18f   : > { %v1713_v25 = vmul.f32 -0.5, %v5758_v59  ;;  %v1265_v57 = vpop.f32.mrf.mxu1  ;;  %4460 = vst [vmem:[%s5470_s26 + $0x238] sm:$0xff] %v1390_v47 }
 0x190   : > { %1700 = vst [vmem:[%s5470_s26 + $0x98] sm:$0xff] %v1264_v53  ;;  %v1266_v56 = vadd.f32 %v1265_v57, %v5446_v37  ;;  %4457 = vst [vmem:[%s5470_s26 + $0x220] sm:$0xff] %v1379_v8  ;;  %v1508_v53 = vmul.f32 %v733_v49, %v733_v49  ;;  %v1958_v57 = vmul.f32 %v731_v0, %v731_v0 }
 0x191   : > { %v4292_v38 = vadd.f32 -117.62413, %v1713_v25  ;;  %2068 = vadd.xlane.f32.xlu0 %v2036_v4  ;;  %v1381_v4 = vpop.f32.mrf.mxu0  ;;  %v1588_v49 = vmul.f32 %v5515_v28, %v5515_v28 }
 0x192   : > { %2006 = vadd.xlane.f32.xlu1 %v1957_v11  ;;  %v5771_v61 = vpop.xlane.xlu0 %2429  ;;  %4343 = vst [vmem:[%s5470_s26 + $0x198] sm:$0xff] %v1266_v56  ;;  %v1382_v27 = vadd.f32 %v1381_v4, %v5722_v43  ;;  %v735_v56 = vadd.f32 %v5517_v51, %v5317_v15  ;;  %v2038_v4 = vmul.f32 %v5506_v46, %v5506_v46 }
 0x193   : > { %v5769_v31 = vpop.xlane.xlu1 %2431  ;;  %7725 = vst [vmem:[#allocation23_spill] sm:$0xff] %v5771_v61  ;;  %1778 = vst.msk [vmem:[%s5779_s28] sm:$0xff] %vm1777_vm0, %v4292_v38  ;;  %v2620_v13 = vmul.f32 -0.5, %v5771_v61 }
 0x194   : > { %7724 = vst [vmem:[#allocation22_spill] sm:$0xff] %v5769_v31  ;;  %v2621_v9 = vmul.f32 -0.5, %v5769_v31  ;;  %4458 = vst [vmem:[%s5470_s26 + $0x228] sm:$0xff] %v1382_v27  ;;  %v4715_v27 = vpop.f32.mrf.mxu0 }
 0x195   : > { %v4487_v48 = vadd.f32 -117.62413, %v2620_v13  ;;  %1557 = vadd.xlane.f32.xlu0 %v1507_v58  ;;  %v739_v13 = vadd.f32 %v5526_v1, %v5306_v7 }
 0x196   : > { %v4488_v3 = vadd.f32 -117.62413, %v2621_v9  ;;  %2070 = vadd.xlane.f32.xlu1 %v2037_v2  ;;  %v5795_v25 = vpop.xlane.xlu0 %1972  ;;  %v1269_v9 = vpop.f32.mrf.mxu1 }
 0x197   : > { %v5793_v11 = vpop.xlane.xlu1 %1974  ;;  %4519 = vst.msk [vmem:[%s5779_s28 + $0x210] sm:$0xff] %vm1777_vm0, %v4487_v48  ;;  %v2165_v60 = vmul.f32 -0.5, %v5795_v25  ;;  %v1270_v20 = vadd.f32 %v1269_v9, %v5441_v32  ;;  %v743_v9 = vadd.f32 %v5544_v39, %v5306_v7 }
 0x198   : > { %4520 = vst.msk [vmem:[%s5779_s28 + $0x218] sm:$0xff] %vm1777_vm0, %v4488_v3  ;;  %v2166_v21 = vmul.f32 -0.5, %v5793_v11  ;;  %v1271_v47 = vpop.f32.mrf.mxu1 }
 0x199   : > { %v4356_v40 = vadd.f32 -117.62413, %v2165_v60  ;;  %1621 = vadd.xlane.f32.xlu0 %v1587_v24  ;;  %v1959_v24 = vmul.f32 %v735_v56, %v735_v56  ;;  %1701 = vst [vmem:[%s5470_s26 + $0xa0] sm:$0xff] %v1270_v20  ;;  %v1394_v56 = vpop.f32.mrf.mxu0 }
 0x19a   : > { %v4357_v26 = vadd.f32 -117.62413, %v2166_v21  ;;  %1559 = vadd.xlane.f32.xlu1 %v1508_v53  ;;  %v5808_v38 = vpop.xlane.xlu0 %2425  ;;  %v1273_v0 = vpop.f32.mrf.mxu1  ;;  %v1509_v53 = vmul.f32 %v739_v13, %v739_v13 }
 0x19b   : > { %v5806_v58 = vpop.xlane.xlu1 %2427  ;;  %7727 = vst [vmem:[#allocation25_spill] sm:$0xff] %v5808_v38  ;;  %4388 = vst.msk [vmem:[%s5779_s28 + $0x100] sm:$0xff] %vm1777_vm0, %v4356_v40  ;;  %v2618_v2 = vmul.f32 -0.5, %v5808_v38  ;;  %v1274_v40 = vadd.f32 %v1273_v0, %v5441_v32  ;;  %v4716_v20 = vpop.f32.mrf.mxu0  ;;  %v7755_v38 = vld [vmem:[#allocation17_spill] sm:$0xff] }
 0x19c   : > { %7726 = vst [vmem:[#allocation24_spill] sm:$0xff] %v5806_v58  ;;  %4389 = vst.msk [vmem:[%s5779_s28 + $0x108] sm:$0xff] %vm1777_vm0, %v4357_v26  ;;  %v2619_v16 = vmul.f32 -0.5, %v5806_v58  ;;  %v1272_v26 = vadd.f32 %v1271_v47, %v5446_v37  ;;  %v1589_v47 = vmul.f32 %v5533_v23, %v5533_v23 }
 0x19d   : > { %v4485_v51 = vadd.f32 -117.62413, %v2618_v2  ;;  %2008 = vadd.xlane.f32.xlu0 %v1958_v57  ;;  %v1275_v57 = vpop.f32.mrf.mxu1  ;;  %v1403_v2 = vadd.f32 %v4715_v27, %v5722_v43  ;;  %1702 = vst [vmem:[%s5470_s26 + $0xa8] sm:$0xff] %v1274_v40 }
 0x19e   : > { %v4486_v8 = vadd.f32 -117.62413, %v2619_v16  ;;  %1623 = vadd.xlane.f32.xlu1 %v1588_v49  ;;  %v5825_v48 = vpop.xlane.xlu0 %1523  ;;  %v1276_v49 = vadd.f32 %v1275_v57, %v5446_v37  ;;  %4344 = vst [vmem:[%s5470_s26 + $0x1a0] sm:$0xff] %v1272_v26 }
 0x19f   : > { %v5823_v3 = vpop.xlane.xlu1 %1525  ;;  %4517 = vst.msk [vmem:[%s5779_s28 + $0x200] sm:$0xff] %vm1777_vm0, %v4485_v51  ;;  %v1714_v1 = vmul.f32 -0.5, %v5825_v48  ;;  %v2039_v51 = vmul.f32 %v5524_v33, %v5524_v33  ;;  %4463 = vst [vmem:[%s5470_s26 + $0x250] sm:$0xff] %v1403_v2  ;;  %v1406_v33 = vadd.f32 %v4716_v20, %v5722_v43  ;;  %v745_v2 = vadd.f32 %v5551_v52, %v5317_v15 }
 0x1a0   : > { %4518 = vst.msk [vmem:[%s5779_s28 + $0x208] sm:$0xff] %vm1777_vm0, %v4486_v8  ;;  %v1715_v28 = vmul.f32 -0.5, %v5823_v3  ;;  %4345 = vst [vmem:[%s5470_s26 + $0x1a8] sm:$0xff] %v1276_v49 }
 0x1a1   : > { %v4293_v60 = vadd.f32 -117.62413, %v1714_v1  ;;  %2072 = vadd.xlane.f32.xlu0 %v2038_v4  ;;  %v1397_v1 = vpop.f32.mrf.mxu0  ;;  %v741_v4 = vadd.f32 %v5535_v29, %v5317_v15  ;;  %4464 = vst [vmem:[%s5470_s26 + $0x258] sm:$0xff] %v1406_v33  ;;  %v1961_v33 = vmul.f32 %v745_v2, %v745_v2 }
 0x1a2   : > { %v4294_v21 = vadd.f32 -117.62413, %v1715_v28  ;;  %2010 = vadd.xlane.f32.xlu1 %v1959_v24  ;;  %v5840_v16 = vpop.xlane.xlu0 %2437  ;;  %v1395_v28 = vadd.f32 %v1394_v56, %v5722_v43  ;;  %v1398_v27 = vadd.f32 %v1397_v1, %v5722_v43  ;;  %v2040_v1 = vmul.f32 %v5542_v34, %v5542_v34 }
 0x1a3   : > { %v5838_v46 = vpop.xlane.xlu1 %1527  ;;  %7728 = vst [vmem:[#allocation26_spill] sm:$0xff] %v5840_v16  ;;  %1779 = vst.msk [vmem:[%s5779_s28 + $0x8] sm:$0xff] %vm1777_vm0, %v4293_v60  ;;  %v2624_v8 = vmul.f32 -0.5, %v5840_v16  ;;  %v1960_v40 = vmul.f32 %v741_v4, %v741_v4 }
 0x1a4   : > { %1780 = vst.msk [vmem:[%s5779_s28 + $0x10] sm:$0xff] %vm1777_vm0, %v4294_v21  ;;  %v1716_v13 = vmul.f32 -0.5, %v5838_v46  ;;  %v1510_v21 = vmul.f32 %v743_v9, %v743_v9  ;;  %4461 = vst [vmem:[%s5470_s26 + $0x240] sm:$0xff] %v1395_v28 }
 0x1a5   : > { %v4491_v24 = vadd.f32 -117.62413, %v2624_v8  ;;  %1561 = vadd.xlane.f32.xlu0 %v1509_v53  ;;  %4462 = vst [vmem:[%s5470_s26 + $0x248] sm:$0xff] %v1398_v27  ;;  %v1279_v8 = vpop.f32.mrf.mxu1  ;;  %v4719_v27 = vpop.f32.mrf.mxu0 }
 0x1a6   : > { %v4295_v39 = vadd.f32 -117.62413, %v1716_v13  ;;  %2074 = vadd.xlane.f32.xlu1 %v2039_v51  ;;  %v5866_v23 = vpop.xlane.xlu0 %1976  ;;  %v1590_v13 = vmul.f32 %v5549_v22, %v5549_v22  ;;  %v749_v51 = vadd.f32 %v5562_v14, %v5306_v7 }
 0x1a7   : > { %v5864_v0 = vpop.xlane.xlu1 %2439  ;;  %4523 = vst.msk [vmem:[%s5779_s28 + $0x230] sm:$0xff] %vm1777_vm0, %v4491_v24  ;;  %v2167_v60 = vmul.f32 -0.5, %v5866_v23  ;;  %v1410_v2 = vpop.f32.mrf.mxu0 }
 0x1a8   : > { %7729 = vst [vmem:[#allocation27_spill] sm:$0xff] %v5864_v0  ;;  %1781 = vst.msk [vmem:[%s5779_s28 + $0x18] sm:$0xff] %vm1777_vm0, %v4295_v39  ;;  %v2625_v53 = vmul.f32 -0.5, %v5864_v0  ;;  %v1281_v39 = vpop.f32.mrf.mxu1 }
 0x1a9   : > { %v4358_v26 = vadd.f32 -117.62413, %v2167_v60  ;;  %1625 = vadd.xlane.f32.xlu0 %v1589_v47  ;;  %v1280_v47 = vadd.f32 %v1279_v8, %v5441_v32  ;;  %v753_v8 = vadd.f32 %v5580_v18, %v5306_v7 }
 0x1aa   : > { %v4492_v29 = vadd.f32 -117.62413, %v2625_v53  ;;  %1563 = vadd.xlane.f32.xlu1 %v1510_v21  ;;  %v5880_v56 = vpop.xlane.xlu0 %2433  ;;  %v1283_v4 = vpop.f32.mrf.mxu1  ;;  %v1511_v21 = vmul.f32 %v749_v51, %v749_v51 }
 0x1ab   : > { %v5878_v57 = vpop.xlane.xlu1 %1978  ;;  %7730 = vst [vmem:[#allocation28_spill] sm:$0xff] %v5880_v56  ;;  %4390 = vst.msk [vmem:[%s5779_s28 + $0x110] sm:$0xff] %vm1777_vm0, %v4358_v26  ;;  %v2622_v9 = vmul.f32 -0.5, %v5880_v56  ;;  %v1284_v26 = vadd.f32 %v1283_v4, %v5441_v32 }
 0x1ac   : > { %4524 = vst.msk [vmem:[%s5779_s28 + $0x238] sm:$0xff] %vm1777_vm0, %v4492_v29  ;;  %v2168_v49 = vmul.f32 -0.5, %v5878_v57  ;;  %1703 = vst [vmem:[%s5470_s26 + $0xb0] sm:$0xff] %v1280_v47  ;;  %v1282_v29 = vadd.f32 %v1281_v39, %v5446_v37  ;;  %v4720_v47 = vpop.f32.mrf.mxu0  ;;  %v1591_v39 = vmul.f32 %v5567_v35, %v5567_v35 }
 0x1ad   : > { %v4489_v52 = vadd.f32 -117.62413, %v2622_v9  ;;  %2012 = vadd.xlane.f32.xlu0 %v1960_v40  ;;  %v1285_v40 = vpop.f32.mrf.mxu1  ;;  %v1419_v9 = vadd.f32 %v4719_v27, %v5722_v43  ;;  %1704 = vst [vmem:[%s5470_s26 + $0xb8] sm:$0xff] %v1284_v26 }
 0x1ae   : > { %v4359_v20 = vadd.f32 -117.62413, %v2168_v49  ;;  %1627 = vadd.xlane.f32.xlu1 %v1590_v13  ;;  %v5897_v28 = vpop.xlane.xlu0 %1529  ;;  %v1286_v13 = vadd.f32 %v1285_v40, %v5446_v37  ;;  %4346 = vst [vmem:[%s5470_s26 + $0x1b0] sm:$0xff] %v1282_v29 }
 0x1af   : > { %v5895_v24 = vpop.xlane.xlu1 %2435  ;;  %4521 = vst.msk [vmem:[%s5779_s28 + $0x220] sm:$0xff] %vm1777_vm0, %v4489_v52  ;;  %v1717_v14 = vmul.f32 -0.5, %v5897_v28  ;;  %v2041_v52 = vmul.f32 %v5560_v10, %v5560_v10  ;;  %4467 = vst [vmem:[%s5470_s26 + $0x270] sm:$0xff] %v1419_v9  ;;  %v1422_v10 = vadd.f32 %v4720_v47, %v5722_v43  ;;  %v1289_v47 = vpop.f32.mrf.mxu1 }
 0x1b0   : > { %7731 = vst [vmem:[#allocation29_spill] sm:$0xff] %v5895_v24  ;;  %4391 = vst.msk [vmem:[%s5779_s28 + $0x118] sm:$0xff] %vm1777_vm0, %v4359_v20  ;;  %v2623_v22 = vmul.f32 -0.5, %v5895_v24 }
 0x1b1   : > { %v4296_v60 = vadd.f32 -117.62413, %v1717_v14  ;;  %2076 = vadd.xlane.f32.xlu0 %v2040_v1  ;;  %4347 = vst [vmem:[%s5470_s26 + $0x1b8] sm:$0xff] %v1286_v13  ;;  %v1413_v14 = vpop.f32.mrf.mxu0  ;;  %v7733_v1 = vld [vmem:[#allocation8_spill] sm:$0xff]  ;;  %4468 = vst [vmem:[%s5470_s26 + $0x278] sm:$0xff] %v1422_v10  ;;  %v1291_v10 = vpop.f32.mrf.mxu1 }
 0x1b2   : > { %v4490_v53 = vadd.f32 -117.62413, %v2623_v22  ;;  %2014 = vadd.xlane.f32.xlu1 %v1961_v33  ;;  %v5912_v49 = vpop.xlane.xlu0 %2445  ;;  %v1411_v22 = vadd.f32 %v1410_v2, %v5722_v43  ;;  %v751_v4 = vadd.f32 %v7733_v1, %v5317_v15 }
 0x1b3   : > { %v5910_v34 = vpop.xlane.xlu1 %1531  ;;  %7732 = vst [vmem:[#allocation30_spill] sm:$0xff] %v5912_v49  ;;  %1782 = vst.msk [vmem:[%s5779_s28 + $0x20] sm:$0xff] %vm1777_vm0, %v4296_v60  ;;  %v2628_v20 = vmul.f32 -0.5, %v5912_v49  ;;  %v1512_v60 = vmul.f32 %v753_v8, %v753_v8  ;;  %v755_v8 = vadd.f32 %v5589_v12, %v5317_v15 }
 0x1b4   : > { %4522 = vst.msk [vmem:[%s5779_s28 + $0x228] sm:$0xff] %vm1777_vm0, %v4490_v53  ;;  %v1718_v51 = vmul.f32 -0.5, %v5910_v34  ;;  %v1414_v53 = vadd.f32 %v1413_v14, %v5722_v43  ;;  %4465 = vst [vmem:[%s5470_s26 + $0x260] sm:$0xff] %v1411_v22  ;;  %v1962_v2 = vmul.f32 %v751_v4, %v751_v4  ;;  %v5967_v22 = vadd.f32 %v1289_v47, %v5441_v32 }
 0x1b5   : > { %v4495_v33 = vadd.f32 -117.62413, %v2628_v20  ;;  %1565 = vadd.xlane.f32.xlu0 %v1511_v21  ;;  %v1963_v4 = vmul.f32 %v755_v8, %v755_v8 }
 0x1b6   : > { %v4297_v18 = vadd.f32 -117.62413, %v1718_v51  ;;  %2078 = vadd.xlane.f32.xlu1 %v2041_v52  ;;  %v5938_v35 = vpop.xlane.xlu0 %1980  ;;  %4466 = vst [vmem:[%s5470_s26 + $0x268] sm:$0xff] %v1414_v53  ;;  %v1592_v52 = vmul.f32 %v5587_v44, %v5587_v44  ;;  %1705 = vst [vmem:[%s5470_s26 + $0xc0] sm:$0xff] %v5967_v22 }
 0x1b7   : > { %v5936_v27 = vpop.xlane.xlu1 %2447  ;;  %4527 = vst.msk [vmem:[%s5779_s28 + $0x250] sm:$0xff] %vm1777_vm0, %v4495_v33  ;;  %v2169_v29 = vmul.f32 -0.5, %v5938_v35 }
 0x1b8   : > { %7734 = vst [vmem:[#allocation8_spill] sm:$0xff] %v5936_v27  ;;  %1783 = vst.msk [vmem:[%s5779_s28 + $0x28] sm:$0xff] %vm1777_vm0, %v4297_v18  ;;  %v2629_v21 = vmul.f32 -0.5, %v5936_v27 }
 0x1b9   : > { %v4360_v40 = vadd.f32 -117.62413, %v2169_v29  ;;  %1629 = vadd.xlane.f32.xlu0 %v1591_v39  ;;  %v7736_v39 = vld [vmem:[#allocation10_spill] sm:$0xff]  ;;  %v1293_v29 = vpop.f32.mrf.mxu1 }
 0x1ba   : > { %v4496_v26 = vadd.f32 -117.62413, %v2629_v21  ;;  %1567 = vadd.xlane.f32.xlu1 %v1512_v60  ;;  %v5952_v13 = vpop.xlane.xlu0 %2441  ;;  %v759_v18 = vadd.f32 %v7736_v39, %v5306_v7  ;;  %v7738_v60 = vld [vmem:[#allocation9_spill] sm:$0xff] }
 0x1bb   : > { %v5950_v9 = vpop.xlane.xlu1 %1982  ;;  %7735 = vst [vmem:[#allocation31_spill] sm:$0xff] %v5952_v13  ;;  %4392 = vst.msk [vmem:[%s5779_s28 + $0x120] sm:$0xff] %vm1777_vm0, %v4360_v40  ;;  %v2626_v20 = vmul.f32 -0.5, %v5952_v13  ;;  %v2042_v21 = vmul.f32 %v7738_v60, %v7738_v60 }
 0x1bc   : > { %4528 = vst.msk [vmem:[%s5779_s28 + $0x258] sm:$0xff] %vm1777_vm0, %v4496_v26  ;;  %v2170_v51 = vmul.f32 -0.5, %v5950_v9  ;;  %v4723_v26 = vpop.f32.mrf.mxu0  ;;  %v1513_v40 = vmul.f32 %v759_v18, %v759_v18 }
 0x1bd   : > { %v4493_v12 = vadd.f32 -117.62413, %v2626_v20  ;;  %2016 = vadd.xlane.f32.xlu0 %v1962_v2  ;;  %v5985_v20 = vadd.f32 %v1293_v29, %v5441_v32  ;;  %v5992_v18 = vadd.f32 %v4723_v26, %v5722_v43 }
 0x1be   : > { %v4361_v33 = vadd.f32 -117.62413, %v2170_v51  ;;  %1631 = vadd.xlane.f32.xlu1 %v1592_v52  ;;  %v5971_v1 = vpop.xlane.xlu0 %1533  ;;  %v1292_v51 = vadd.f32 %v1291_v10, %v5446_v37  ;;  %v1295_v52 = vpop.f32.mrf.mxu1 }
 0x1bf   : > { %v5969_v14 = vpop.xlane.xlu1 %2443  ;;  %4525 = vst.msk [vmem:[%s5779_s28 + $0x240] sm:$0xff] %vm1777_vm0, %v4493_v12  ;;  %v1719_v53 = vmul.f32 -0.5, %v5971_v1  ;;  %v1426_v47 = vpop.f32.mrf.mxu0  ;;  %v1296_v12 = vadd.f32 %v1295_v52, %v5446_v37  ;;  %1706 = vst [vmem:[%s5470_s26 + $0xc8] sm:$0xff] %v5985_v20 }
 0x1c0   : > { %7737 = vst [vmem:[#allocation10_spill] sm:$0xff] %v5969_v14  ;;  %4393 = vst.msk [vmem:[%s5779_s28 + $0x128] sm:$0xff] %vm1777_vm0, %v4361_v33  ;;  %v2627_v44 = vmul.f32 -0.5, %v5969_v14  ;;  %v7746_v14 = vld [vmem:[#allocation13_spill] sm:$0xff] }
 0x1c1   : > { %v4298_v8 = vadd.f32 -117.62413, %v1719_v53  ;;  %2080 = vadd.xlane.f32.xlu0 %v2042_v21  ;;  %v2043_v53 = vmul.f32 %v5596_v50, %v5596_v50  ;;  %4348 = vst [vmem:[%s5470_s26 + $0x1c0] sm:$0xff] %v1292_v51  ;;  %v4724_v60 = vpop.f32.mrf.mxu0  ;;  %v7740_v21 = vld [vmem:[#allocation11_spill] sm:$0xff]  ;;  %4471 = vst [vmem:[%s5470_s26 + $0x290] sm:$0xff] %v5992_v18  ;;  %v6014_v50 = vadd.f32 %v1426_v47, %v5722_v43  ;;  %v7741_v51 = vld [vmem:[#allocation12_spill] sm:$0xff] }
 0x1c2   : > { %v4494_v2 = vadd.f32 -117.62413, %v2627_v44  ;;  %2018 = vadd.xlane.f32.xlu1 %v1963_v4  ;;  %v5989_v33 = vpop.xlane.xlu0 %2453  ;;  %v763_v4 = vadd.f32 %v5616_v6, %v5306_v7  ;;  %v1593_v29 = vmul.f32 %v7740_v21, %v7740_v21  ;;  %4349 = vst [vmem:[%s5470_s26 + $0x1c8] sm:$0xff] %v1296_v12  ;;  %v761_v52 = vadd.f32 %v7741_v51, %v5317_v15 }
 0x1c3   : > { %v5987_v39 = vpop.xlane.xlu1 %1535  ;;  %7739 = vst [vmem:[#allocation9_spill] sm:$0xff] %v5989_v33  ;;  %1784 = vst.msk [vmem:[%s5779_s28 + $0x30] sm:$0xff] %vm1777_vm0, %v4298_v8  ;;  %v2632_v44 = vmul.f32 -0.5, %v5989_v33  ;;  %v1429_v8 = vpop.f32.mrf.mxu0  ;;  %v1594_v51 = vmul.f32 %v5623_v42, %v5623_v42 }
 0x1c4   : > { %4526 = vst.msk [vmem:[%s5779_s28 + $0x248] sm:$0xff] %vm1777_vm0, %v4494_v2  ;;  %v1720_v10 = vmul.f32 -0.5, %v5987_v39  ;;  %v6017_v2 = vadd.f32 %v4724_v60, %v5722_v43  ;;  %4469 = vst [vmem:[%s5470_s26 + $0x280] sm:$0xff] %v6014_v50 }
 0x1c5   : > { %v4499_v26 = vadd.f32 -117.62413, %v2632_v44  ;;  %1569 = vadd.xlane.f32.xlu0 %v1513_v40  ;;  %v1514_v44 = vmul.f32 %v763_v4, %v763_v4  ;;  %v1964_v4 = vmul.f32 %v761_v52, %v761_v52  ;;  %v1299_v52 = vpop.f32.mrf.mxu1 }
 0x1c6   : > { %v4299_v6 = vadd.f32 -117.62413, %v1720_v10  ;;  %2082 = vadd.xlane.f32.xlu1 %v2043_v53  ;;  %v6023_v12 = vpop.xlane.xlu0 %1984  ;;  %v1430_v10 = vadd.f32 %v1429_v8, %v5722_v43  ;;  %4472 = vst [vmem:[%s5470_s26 + $0x298] sm:$0xff] %v6017_v2  ;;  %v6054_v42 = vadd.f32 %v1299_v52, %v5441_v32 }
 0x1c7   : > { %v6021_v21 = vpop.xlane.xlu1 %2455  ;;  %4531 = vst.msk [vmem:[%s5779_s28 + $0x270] sm:$0xff] %vm1777_vm0, %v4499_v26  ;;  %v2171_v47 = vmul.f32 -0.5, %v6023_v12  ;;  %v765_v26 = vadd.f32 %v5620_v41, %v5317_v15 }
 0x1c8   : > { %7742 = vst [vmem:[#allocation11_spill] sm:$0xff] %v6021_v21  ;;  %1785 = vst.msk [vmem:[%s5779_s28 + $0x38] sm:$0xff] %vm1777_vm0, %v4299_v6  ;;  %v2633_v40 = vmul.f32 -0.5, %v6021_v21 }
 0x1c9   : > { %4470 = vst [vmem:[%s5470_s26 + $0x288] sm:$0xff] %v1430_v10  ;;  %v4362_v60 = vadd.f32 -117.62413, %v2171_v47  ;;  %1633 = vadd.xlane.f32.xlu0 %v1593_v29  ;;  %v1965_v33 = vmul.f32 %v765_v26, %v765_v26  ;;  %1707 = vst [vmem:[%s5470_s26 + $0xd0] sm:$0xff] %v6054_v42 }
 0x1ca   : > { %v4500_v53 = vadd.f32 -117.62413, %v2633_v40  ;;  %1571 = vadd.xlane.f32.xlu1 %v1514_v44  ;;  %v6039_v6 = vpop.xlane.xlu0 %2449  ;;  %v7744_v44 = vld [vmem:[#allocation14_spill] sm:$0xff] }
 0x1cb   : > { %v6037_v8 = vpop.xlane.xlu1 %1986  ;;  %7743 = vst [vmem:[#allocation12_spill] sm:$0xff] %v6039_v6  ;;  %4394 = vst.msk [vmem:[%s5779_s28 + $0x130] sm:$0xff] %vm1777_vm0, %v4362_v60  ;;  %v2630_v29 = vmul.f32 -0.5, %v6039_v6  ;;  %v769_v40 = vadd.f32 %v7744_v44, %v5306_v7  ;;  %v2044_v6 = vmul.f32 %v7746_v14, %v7746_v14 }
 0x1cc   : > { %4532 = vst.msk [vmem:[%s5779_s28 + $0x278] sm:$0xff] %vm1777_vm0, %v4500_v53  ;;  %v2172_v10 = vmul.f32 -0.5, %v6037_v8  ;;  %v1301_v53 = vpop.f32.mrf.mxu1 }
 0x1cd   : > { %v4497_v41 = vadd.f32 -117.62413, %v2630_v29  ;;  %2020 = vadd.xlane.f32.xlu0 %v1964_v4  ;;  %v4727_v29 = vpop.f32.mrf.mxu0  ;;  %v1515_v52 = vmul.f32 %v769_v40, %v769_v40  ;;  %v6071_v14 = vadd.f32 %v1301_v53, %v5446_v37  ;;  %v7748_v53 = vld [vmem:[#allocation18_spill] sm:$0xff] }
 0x1ce   : > { %v4363_v47 = vadd.f32 -117.62413, %v2172_v10  ;;  %1635 = vadd.xlane.f32.xlu1 %v1594_v51  ;;  %v6058_v60 = vpop.xlane.xlu0 %1537  ;;  %v1303_v51 = vpop.f32.mrf.mxu1 }
 0x1cf   : > { %v6056_v21 = vpop.xlane.xlu1 %2451  ;;  %4529 = vst.msk [vmem:[%s5779_s28 + $0x260] sm:$0xff] %vm1777_vm0, %v4497_v41  ;;  %v1721_v4 = vmul.f32 -0.5, %v6058_v60  ;;  %4350 = vst [vmem:[%s5470_s26 + $0x1d0] sm:$0xff] %v6071_v14 }
 0x1d0   : > { %7745 = vst [vmem:[#allocation14_spill] sm:$0xff] %v6056_v21  ;;  %4395 = vst.msk [vmem:[%s5779_s28 + $0x138] sm:$0xff] %vm1777_vm0, %v4363_v47  ;;  %v2631_v10 = vmul.f32 -0.5, %v6056_v21  ;;  %v6074_v47 = vadd.f32 %v1303_v51, %v5441_v32  ;;  %v1305_v41 = vpop.f32.mrf.mxu1  ;;  %v1442_v21 = vpop.f32.mrf.mxu0 }
 0x1d1   : > { %v4300_v26 = vadd.f32 -117.62413, %v1721_v4  ;;  %2084 = vadd.xlane.f32.xlu0 %v2044_v6  ;;  %v2045_v6 = vmul.f32 %v5630_v19, %v5630_v19  ;;  %v773_v4 = vadd.f32 %v7748_v53, %v5306_v7  ;;  %v6107_v53 = vadd.f32 %v1442_v21, %v5722_v43 }
 0x1d2   : > { %v4498_v44 = vadd.f32 -117.62413, %v2631_v10  ;;  %2022 = vadd.xlane.f32.xlu1 %v1965_v33  ;;  %v6078_v40 = vpop.xlane.xlu0 %2461  ;;  %v6081_v10 = vadd.f32 %v4727_v29, %v5722_v43  ;;  %v6084_v33 = vadd.f32 %v1305_v41, %v5446_v37  ;;  %1708 = vst [vmem:[%s5470_s26 + $0xd8] sm:$0xff] %v6074_v47  ;;  %v4728_v29 = vpop.f32.mrf.mxu0  ;;  %v7749_v41 = vld [vmem:[#allocation16_spill] sm:$0xff] }
 0x1d3   : > { %v6076_v13 = vpop.xlane.xlu1 %1539  ;;  %7747 = vst [vmem:[#allocation13_spill] sm:$0xff] %v6078_v40  ;;  %1786 = vst.msk [vmem:[%s5779_s28 + $0x40] sm:$0xff] %vm1777_vm0, %v4300_v26  ;;  %v2636_v27 = vmul.f32 -0.5, %v6078_v40  ;;  %v1595_v19 = vmul.f32 %v7749_v41, %v7749_v41  ;;  %v6110_v40 = vadd.f32 %v4728_v29, %v5722_v43  ;;  %v7750_v41 = vld [vmem:[#allocation15_spill] sm:$0xff] }
 0x1d4   : > { %4530 = vst.msk [vmem:[%s5779_s28 + $0x268] sm:$0xff] %vm1777_vm0, %v4498_v44  ;;  %v1722_v51 = vmul.f32 -0.5, %v6076_v13  ;;  %4475 = vst [vmem:[%s5470_s26 + $0x2b0] sm:$0xff] %v6081_v10  ;;  %v1445_v49 = vpop.f32.mrf.mxu0  ;;  %v771_v24 = vadd.f32 %v7750_v41, %v5317_v15  ;;  %v1596_v41 = vmul.f32 %v5661_v63, %v5661_v63 }
 0x1d5   : > { %4351 = vst [vmem:[%s5470_s26 + $0x1d8] sm:$0xff] %v6084_v33  ;;  %v4503_v26 = vadd.f32 -117.62413, %v2636_v27  ;;  %1573 = vadd.xlane.f32.xlu0 %v1515_v52  ;;  %v6119_v27 = vadd.f32 %v1445_v49, %v5722_v43  ;;  %4473 = vst [vmem:[%s5470_s26 + $0x2a0] sm:$0xff] %v6107_v53 }
 0x1d6   : > { %v4301_v44 = vadd.f32 -117.62413, %v1722_v51  ;;  %2086 = vadd.xlane.f32.xlu1 %v2045_v6  ;;  %v6116_v0 = vpop.xlane.xlu0 %1988  ;;  %v1516_v6 = vmul.f32 %v773_v4, %v773_v4  ;;  %4476 = vst [vmem:[%s5470_s26 + $0x2b8] sm:$0xff] %v6110_v40  ;;  %v1966_v4 = vmul.f32 %v771_v24, %v771_v24 }
 0x1d7   : > { %v6114_v56 = vpop.xlane.xlu1 %2463  ;;  %4535 = vst.msk [vmem:[%s5779_s28 + $0x290] sm:$0xff] %vm1777_vm0, %v4503_v26  ;;  %v2173_v52 = vmul.f32 -0.5, %v6116_v0  ;;  %4474 = vst [vmem:[%s5470_s26 + $0x2a8] sm:$0xff] %v6119_v27  ;;  %v775_v26 = vadd.f32 %v5658_v45, %v5317_v15 }
 0x1d8   : > { %7751 = vst [vmem:[#allocation18_spill] sm:$0xff] %v6114_v56  ;;  %1787 = vst.msk [vmem:[%s5779_s28 + $0x48] sm:$0xff] %vm1777_vm0, %v4301_v44  ;;  %v2637_v21 = vmul.f32 -0.5, %v6114_v56 }
 0x1d9   : > { %v4364_v49 = vadd.f32 -117.62413, %v2173_v52  ;;  %1637 = vadd.xlane.f32.xlu0 %v1595_v19  ;;  %v1309_v19 = vpop.f32.mrf.mxu1  ;;  %v1967_v58 = vmul.f32 %v775_v26, %v775_v26 }
 0x1da   : > { %v4504_v51 = vadd.f32 -117.62413, %v2637_v21  ;;  %1575 = vadd.xlane.f32.xlu1 %v1516_v6  ;;  %v6135_v44 = vpop.xlane.xlu0 %2457  ;;  %v7753_v21 = vld [vmem:[#allocation19_spill] sm:$0xff]  ;;  %v6150_v63 = vadd.f32 %v1309_v19, %v5441_v32 }
 0x1db   : > { %v6133_v29 = vpop.xlane.xlu1 %1990  ;;  %7752 = vst [vmem:[#allocation16_spill] sm:$0xff] %v6135_v44  ;;  %4396 = vst.msk [vmem:[%s5779_s28 + $0x140] sm:$0xff] %vm1777_vm0, %v4364_v49  ;;  %v2634_v24 = vmul.f32 -0.5, %v6135_v44  ;;  %v779_v52 = vadd.f32 %v7753_v21, %v5306_v7  ;;  %v2046_v44 = vmul.f32 %v7755_v38, %v7755_v38 }
 0x1dc   : > { %4536 = vst.msk [vmem:[%s5779_s28 + $0x298] sm:$0xff] %vm1777_vm0, %v4504_v51  ;;  %v2174_v6 = vmul.f32 -0.5, %v6133_v29  ;;  %v1311_v51 = vpop.f32.mrf.mxu1  ;;  %1709 = vst [vmem:[%s5470_s26 + $0xe0] sm:$0xff] %v6150_v63 }
 0x1dd   : > { %v4501_v45 = vadd.f32 -117.62413, %v2634_v24  ;;  %2024 = vadd.xlane.f32.xlu0 %v1966_v4  ;;  %v4731_v24 = vpop.f32.mrf.mxu0  ;;  %v1517_v19 = vmul.f32 %v779_v52, %v779_v52  ;;  %v6167_v38 = vadd.f32 %v1311_v51, %v5446_v37  ;;  %v783_v51 = vadd.f32 %v5684_v5, %v5306_v7 }
 0x1de   : > { %v4365_v56 = vadd.f32 -117.62413, %v2174_v6  ;;  %1639 = vadd.xlane.f32.xlu1 %v1596_v41  ;;  %v6154_v49 = vpop.xlane.xlu0 %1541  ;;  %v1313_v41 = vpop.f32.mrf.mxu1 }
 0x1df   : > { %v6152_v16 = vpop.xlane.xlu1 %2459  ;;  %4533 = vst.msk [vmem:[%s5779_s28 + $0x280] sm:$0xff] %vm1777_vm0, %v4501_v45  ;;  %v1723_v4 = vmul.f32 -0.5, %v6154_v49  ;;  %7756 = vst [vmem:[#allocation19_spill] sm:$0xff] %v6167_v38 }
 0x1e0   : > { %7754 = vst [vmem:[#allocation15_spill] sm:$0xff] %v6152_v16  ;;  %4397 = vst.msk [vmem:[%s5779_s28 + $0x148] sm:$0xff] %vm1777_vm0, %v4365_v56  ;;  %v2635_v6 = vmul.f32 -0.5, %v6152_v16  ;;  %v6170_v56 = vadd.f32 %v1313_v41, %v5441_v32  ;;  %v1315_v45 = vpop.f32.mrf.mxu1  ;;  %v1458_v16 = vpop.f32.mrf.mxu0 }
 0x1e1   : > { %v4302_v26 = vadd.f32 -117.62413, %v1723_v4  ;;  %2088 = vadd.xlane.f32.xlu0 %v2046_v44  ;;  %v2047_v44 = vmul.f32 %v5666_v17, %v5666_v17  ;;  %4352 = vst [vmem:[%s5470_s26 + $0x1e0] sm:$0xff] %v6167_v38 }
 0x1e2   : > { %v4502_v21 = vadd.f32 -117.62413, %v2635_v6  ;;  %2026 = vadd.xlane.f32.xlu1 %v1967_v58  ;;  %v6174_v52 = vpop.xlane.xlu0 %2469  ;;  %v6177_v6 = vadd.f32 %v4731_v24, %v5722_v43  ;;  %v6180_v58 = vadd.f32 %v1315_v45, %v5446_v37  ;;  %1710 = vst [vmem:[%s5470_s26 + $0xe8] sm:$0xff] %v6170_v56  ;;  %v4732_v24 = vpop.f32.mrf.mxu0  ;;  %v7760_v45 = vld [vmem:[#allocation21_spill] sm:$0xff] }
 0x1e3   : > { %v6172_v31 = vpop.xlane.xlu1 %1543  ;;  %7758 = vst [vmem:[#allocation32_spill] sm:$0xff] %v6174_v52  ;;  %1788 = vst.msk [vmem:[%s5779_s28 + $0x50] sm:$0xff] %vm1777_vm0, %v4302_v26  ;;  %v2640_v41 = vmul.f32 -0.5, %v6174_v52  ;;  %v1597_v17 = vmul.f32 %v7760_v45, %v7760_v45  ;;  %v6203_v26 = vadd.f32 %v1458_v16, %v5722_v43  ;;  %v6206_v52 = vadd.f32 %v4732_v24, %v5722_v43  ;;  %v7762_v45 = vld [vmem:[#allocation20_spill] sm:$0xff] }
 0x1e4   : > { %7757 = vst [vmem:[#allocation17_spill] sm:$0xff] %v6172_v31  ;;  %7759 = vst [vmem:[#allocation33_spill] sm:$0xff] %v6180_v58  ;;  %v1724_v4 = vmul.f32 -0.5, %v6172_v31  ;;  %v1461_v61 = vpop.f32.mrf.mxu0  ;;  %v781_v38 = vadd.f32 %v7762_v45, %v5317_v15  ;;  %v4844_v45 = vld [vmem:[%s5470_s26 + $0x68] sm:$0xff] }
 0x1e5   : > { %4534 = vst.msk [vmem:[%s5779_s28 + $0x288] sm:$0xff] %vm1777_vm0, %v4502_v21  ;;  %4479 = vst [vmem:[%s5470_s26 + $0x2d0] sm:$0xff] %v6177_v6  ;;  %v4507_v21 = vadd.f32 -117.62413, %v2640_v41  ;;  %1577 = vadd.xlane.f32.xlu0 %v1517_v19 }
 0x1e6   : > { %4353 = vst [vmem:[%s5470_s26 + $0x1e8] sm:$0xff] %v6180_v58  ;;  %v4303_v5 = vadd.f32 -117.62413, %v1724_v4  ;;  %2090 = vadd.xlane.f32.xlu1 %v2047_v44  ;;  %7761 = vst [vmem:[#allocation21_spill] sm:$0xff] %v6203_v26  ;;  %v6212_v58 = vpop.xlane.xlu0 %1992  ;;  %v6215_v4 = vadd.f32 %v1461_v61, %v5722_v43  ;;  %v1518_v44 = vmul.f32 %v783_v51, %v783_v51 }
 0x1e7   : > { %v6210_v31 = vpop.xlane.xlu1 %2471  ;;  %4539 = vst.msk [vmem:[%s5779_s28 + $0x2b0] sm:$0xff] %vm1777_vm0, %v4507_v21  ;;  %v2175_v19 = vmul.f32 -0.5, %v6212_v58  ;;  %4477 = vst [vmem:[%s5470_s26 + $0x2c0] sm:$0xff] %v6203_v26  ;;  %v1968_v51 = vmul.f32 %v781_v38, %v781_v38  ;;  %v785_v21 = vadd.f32 %v5689_v36, %v5317_v15  ;;  %v4845_v26 = vld [vmem:[%s5470_s26 + $0x160] sm:$0xff] }
 0x1e8   : > { %7763 = vst [vmem:[#allocation20_spill] sm:$0xff] %v6210_v31  ;;  %7764 = vst [vmem:[#allocation34_spill] sm:$0xff] %v6215_v4  ;;  %v2641_v16 = vmul.f32 -0.5, %v6210_v31  ;;  %v1598_v31 = vmul.f32 %v4844_v45, %v4844_v45 }
 0x1e9   : > { %1789 = vst.msk [vmem:[%s5779_s28 + $0x58] sm:$0xff] %vm1777_vm0, %v4303_v5  ;;  %4480 = vst [vmem:[%s5470_s26 + $0x2d8] sm:$0xff] %v6206_v52  ;;  %v4366_v41 = vadd.f32 -117.62413, %v2175_v19  ;;  %1641 = vadd.xlane.f32.xlu0 %v1597_v17  ;;  %v1319_v17 = vpop.f32.mrf.mxu1 }
 0x1ea   : > { %4478 = vst [vmem:[%s5470_s26 + $0x2c8] sm:$0xff] %v6215_v4  ;;  %v4508_v61 = vadd.f32 -117.62413, %v2641_v16  ;;  %1579 = vadd.xlane.f32.xlu1 %v1518_v44  ;;  %v6231_v5 = vpop.xlane.xlu0 %2465  ;;  %v789_v44 = vadd.f32 %v5698_v55, %v5306_v7  ;;  %v6245_v45 = vadd.f32 %v1319_v17, %v5441_v32 }
 0x1eb   : > { %v6229_v24 = vpop.xlane.xlu1 %1994  ;;  %7766 = vst [vmem:[#allocation36_spill] sm:$0xff] %v6231_v5  ;;  %4398 = vst.msk [vmem:[%s5779_s28 + $0x150] sm:$0xff] %vm1777_vm0, %v4366_v41  ;;  %v2638_v38 = vmul.f32 -0.5, %v6231_v5  ;;  %v2048_v5 = vmul.f32 %v4845_v26, %v4845_v26 }
 0x1ec   : > { %7765 = vst [vmem:[#allocation35_spill] sm:$0xff] %v6229_v24  ;;  %4540 = vst.msk [vmem:[%s5779_s28 + $0x2b8] sm:$0xff] %vm1777_vm0, %v4508_v61  ;;  %v2176_v16 = vmul.f32 -0.5, %v6229_v24  ;;  %v1321_v61 = vpop.f32.mrf.mxu1  ;;  %v1969_v24 = vmul.f32 %v785_v21, %v785_v21 }
 0x1ed   : > { %v4505_v36 = vadd.f32 -117.62413, %v2638_v38  ;;  %2028 = vadd.xlane.f32.xlu0 %v1968_v51  ;;  %1711 = vst [vmem:[%s5470_s26 + $0xf0] sm:$0xff] %v6245_v45  ;;  %v4735_v38 = vpop.f32.mrf.mxu0  ;;  %v6261_v26 = vadd.f32 %v1321_v61, %v5446_v37 }
 0x1ee   : > { %v4367_v19 = vadd.f32 -117.62413, %v2176_v16  ;;  %1643 = vadd.xlane.f32.xlu1 %v1598_v31  ;;  %v6249_v4 = vpop.xlane.xlu0 %1545  ;;  %v1323_v51 = vpop.f32.mrf.mxu1  ;;  %v1519_v16 = vmul.f32 %v789_v44, %v789_v44 }
 0x1ef   : > { %v6247_v41 = vpop.xlane.xlu1 %2467  ;;  %4537 = vst.msk [vmem:[%s5779_s28 + $0x2a0] sm:$0xff] %vm1777_vm0, %v4505_v36  ;;  %v1725_v31 = vmul.f32 -0.5, %v6249_v4  ;;  %4354 = vst [vmem:[%s5470_s26 + $0x1f0] sm:$0xff] %v6261_v26 }
 0x1f0   : > { %7767 = vst [vmem:[#allocation37_spill] sm:$0xff] %v6247_v41  ;;  %4399 = vst.msk [vmem:[%s5779_s28 + $0x158] sm:$0xff] %vm1777_vm0, %v4367_v19  ;;  %v2639_v55 = vmul.f32 -0.5, %v6247_v41  ;;  %v6264_v19 = vadd.f32 %v1323_v51, %v5441_v32  ;;  %v1325_v36 = vpop.f32.mrf.mxu1  ;;  %v4847_v51 = vld [vmem:[%s5470_s26 + $0x70] sm:$0xff] }
 0x1f1   : > { %v4304_v21 = vadd.f32 -117.62413, %v1725_v31  ;;  %2092 = vadd.xlane.f32.xlu0 %v2048_v5  ;;  %v4846_v31 = vld [vmem:[%s5470_s26 + $0x168] sm:$0xff]  ;;  %v793_v5 = vadd.f32 %v5707_v62, %v5306_v7 }
 0x1f2   : > { %v4506_v17 = vadd.f32 -117.62413, %v2639_v55  ;;  %2030 = vadd.xlane.f32.xlu1 %v1969_v24  ;;  %v6268_v44 = vpop.xlane.xlu0 %2477  ;;  %v6271_v55 = vadd.f32 %v1325_v36, %v5446_v37  ;;  %v2049_v24 = vmul.f32 %v4846_v31, %v4846_v31  ;;  %1712 = vst [vmem:[%s5470_s26 + $0xf8] sm:$0xff] %v6264_v19  ;;  %v1474_v37 = vpop.f32.mrf.mxu0  ;;  %v1599_v36 = vmul.f32 %v4847_v51, %v4847_v51 }
 0x1f3   : > { %v6266_v41 = vpop.xlane.xlu1 %1547  ;;  %7769 = vst [vmem:[#allocation39_spill] sm:$0xff] %v6268_v44  ;;  %1790 = vst.msk [vmem:[%s5779_s28 + $0x60] sm:$0xff] %vm1777_vm0, %v4304_v21  ;;  %v2644_v61 = vmul.f32 -0.5, %v6268_v44  ;;  %v6293_v21 = vadd.f32 %v1474_v37, %v5722_v43  ;;  %v791_v44 = vadd.f32 %v5701_v30, %v5317_v15 }
 0x1f4   : > { %7768 = vst [vmem:[#allocation38_spill] sm:$0xff] %v6266_v41  ;;  %7770 = vst [vmem:[#allocation40_spill] sm:$0xff] %v6271_v55  ;;  %v1726_v32 = vmul.f32 -0.5, %v6266_v41  ;;  %v4736_v31 = vpop.f32.mrf.mxu0 }
 0x1f5   : > { %4538 = vst.msk [vmem:[%s5779_s28 + $0x2a8] sm:$0xff] %vm1777_vm0, %v4506_v17  ;;  %4355 = vst [vmem:[%s5470_s26 + $0x1f8] sm:$0xff] %v6271_v55  ;;  %v4511_v62 = vadd.f32 -117.62413, %v2644_v61  ;;  %1581 = vadd.xlane.f32.xlu0 %v1519_v16  ;;  %v6290_v17 = vadd.f32 %v4735_v38, %v5722_v43  ;;  %v1520_v55 = vmul.f32 %v793_v5, %v793_v5 }
 0x1f6   : > { %v4305_v7 = vadd.f32 -117.62413, %v1726_v32  ;;  %2094 = vadd.xlane.f32.xlu1 %v2049_v24  ;;  %v6299_v51 = vpop.xlane.xlu0 %1996  ;;  %4481 = vst [vmem:[%s5470_s26 + $0x2e0] sm:$0xff] %v6293_v21  ;;  %v1477_v30 = vpop.f32.mrf.mxu0  ;;  %v6312_v24 = vadd.f32 %v4736_v31, %v5722_v43  ;;  %v1970_v37 = vmul.f32 %v791_v44, %v791_v44  ;;  %v795_v31 = vadd.f32 %v5713_v54, %v5317_v15 }
 0x1f7   : > { %v6297_v41 = vpop.xlane.xlu1 %2479  ;;  %4543 = vst.msk [vmem:[%s5779_s28 + $0x2d0] sm:$0xff] %vm1777_vm0, %v4511_v62  ;;  %v2177_v38 = vmul.f32 -0.5, %v6299_v51  ;;  %4483 = vst [vmem:[%s5470_s26 + $0x2f0] sm:$0xff] %v6290_v17  ;;  %v6315_v5 = vadd.f32 %v1477_v30, %v5722_v43  ;;  %v4848_v43 = vld [vmem:[%s5470_s26 + $0x78] sm:$0xff] }
 0x1f8   : > { %7771 = vst [vmem:[#allocation41_spill] sm:$0xff] %v6297_v41  ;;  %1791 = vst.msk [vmem:[%s5779_s28 + $0x68] sm:$0xff] %vm1777_vm0, %v4305_v7  ;;  %v2645_v16 = vmul.f32 -0.5, %v6297_v41  ;;  %v1971_v54 = vmul.f32 %v795_v31, %v795_v31  ;;  %v4851_v41 = vld [vmem:[%s5470_s26 + $0x178] sm:$0xff] }
 0x1f9   : > { %7772 = vst [vmem:[#allocation42_spill] sm:$0xff] %v6312_v24  ;;  %v4368_v61 = vadd.f32 -117.62413, %v2177_v38  ;;  %1645 = vadd.xlane.f32.xlu0 %v1599_v36  ;;  %4484 = vst [vmem:[%s5470_s26 + $0x2f8] sm:$0xff] %v6312_v24 }
 0x1fa   : > { %v4512_v32 = vadd.f32 -117.62413, %v2645_v16  ;;  %1583 = vadd.xlane.f32.xlu1 %v1520_v55  ;;  %v6319_v62 = vpop.xlane.xlu0 %2473  ;;  %4482 = vst [vmem:[%s5470_s26 + $0x2e8] sm:$0xff] %v6315_v5  ;;  %v1600_v16 = vmul.f32 %v4848_v43, %v4848_v43  ;;  %v4849_v43 = vld [vmem:[%s5470_s26 + $0x170] sm:$0xff] }
 0x1fb   : > { %v6317_v7 = vpop.xlane.xlu1 %1998  ;;  %7773 = vst [vmem:[#allocation43_spill] sm:$0xff] %v6319_v62  ;;  %4400 = vst.msk [vmem:[%s5779_s28 + $0x160] sm:$0xff] %vm1777_vm0, %v4368_v61  ;;  %v2642_v55 = vmul.f32 -0.5, %v6319_v62 }
 0x1fc   : > { %4544 = vst.msk [vmem:[%s5779_s28 + $0x2d8] sm:$0xff] %vm1777_vm0, %v4512_v32  ;;  %v2178_v44 = vmul.f32 -0.5, %v6317_v7  ;;  %v2050_v32 = vmul.f32 %v4849_v43, %v4849_v43 }
 0x1fd   : > { %v4509_v38 = vadd.f32 -117.62413, %v2642_v55  ;;  %2032 = vadd.xlane.f32.xlu0 %v1970_v37  ;;  %v4850_v37 = vld [vmem:[%s5470_s26 + $0x80] sm:$0xff] }
 0x1fe   : > { %v4369_v36 = vadd.f32 -117.62413, %v2178_v44  ;;  %1647 = vadd.xlane.f32.xlu1 %v1600_v16  ;;  %v6336_v15 = vpop.xlane.xlu0 %1549  ;;  %v1601_v44 = vmul.f32 %v4850_v37, %v4850_v37 }
 0x1ff   : > { %v6334_v30 = vpop.xlane.xlu1 %2475  ;;  %7775 = vst [vmem:[#allocation45_spill] sm:$0xff] %v6336_v15  ;;  %4541 = vst.msk [vmem:[%s5779_s28 + $0x2c0] sm:$0xff] %vm1777_vm0, %v4509_v38  ;;  %v1727_v16 = vmul.f32 -0.5, %v6336_v15  ;;  %v4853_v15 = vld [vmem:[%s5470_s26 + $0x88] sm:$0xff] }
 0x200   : > { %7774 = vst [vmem:[#allocation44_spill] sm:$0xff] %v6334_v30  ;;  %4401 = vst.msk [vmem:[%s5779_s28 + $0x168] sm:$0xff] %vm1777_vm0, %v4369_v36  ;;  %v2643_v61 = vmul.f32 -0.5, %v6334_v30  ;;  %v2051_v36 = vmul.f32 %v4851_v41, %v4851_v41 }
 0x201   : > { %v4306_v62 = vadd.f32 -117.62413, %v1727_v16  ;;  %2096 = vadd.xlane.f32.xlu0 %v2050_v32  ;;  %v4852_v16 = vld [vmem:[%s5470_s26 + $0x210] sm:$0xff] }
 0x202   : > { %v4510_v55 = vadd.f32 -117.62413, %v2643_v61  ;;  %2034 = vadd.xlane.f32.xlu1 %v1971_v54  ;;  %v6348_v43 = vpop.xlane.xlu0 %2485  ;;  %v2491_v54 = vmul.f32 %v4852_v16, %v4852_v16 }
 0x203   : > { %v6346_v31 = vpop.xlane.xlu1 %1551  ;;  %7777 = vst [vmem:[#allocation47_spill] sm:$0xff] %v6348_v43  ;;  %1792 = vst.msk [vmem:[%s5779_s28 + $0x70] sm:$0xff] %vm1777_vm0, %v4306_v62  ;;  %v2648_v61 = vmul.f32 -0.5, %v6348_v43  ;;  %v4854_v43 = vld [vmem:[%s5470_s26 + $0x180] sm:$0xff] }
 0x204   : > { %7776 = vst [vmem:[#allocation46_spill] sm:$0xff] %v6346_v31  ;;  %4542 = vst.msk [vmem:[%s5779_s28 + $0x2c8] sm:$0xff] %vm1777_vm0, %v4510_v55  ;;  %v1728_v38 = vmul.f32 -0.5, %v6346_v31  ;;  %v1602_v55 = vmul.f32 %v4853_v15, %v4853_v15  ;;  %v2052_v15 = vmul.f32 %v4854_v43, %v4854_v43  ;;  %v4855_v31 = vld [vmem:[%s5470_s26 + $0x218] sm:$0xff] }
 0x205   : > { %v4515_v37 = vadd.f32 -117.62413, %v2648_v61  ;;  %1649 = vadd.xlane.f32.xlu0 %v1601_v44 }
 0x206   : > { %v4307_v32 = vadd.f32 -117.62413, %v1728_v38  ;;  %2098 = vadd.xlane.f32.xlu1 %v2051_v36  ;;  %v6360_v41 = vpop.xlane.xlu0 %2000 }
 0x207   : > { %v6358_v30 = vpop.xlane.xlu1 %2487  ;;  %7779 = vst [vmem:[#allocation49_spill] sm:$0xff] %v6360_v41  ;;  %4547 = vst.msk [vmem:[%s5779_s28 + $0x2f0] sm:$0xff] %vm1777_vm0, %v4515_v37  ;;  %v2179_v38 = vmul.f32 -0.5, %v6360_v41 }
 0x208   : > { %7778 = vst [vmem:[#allocation48_spill] sm:$0xff] %v6358_v30  ;;  %1793 = vst.msk [vmem:[%s5779_s28 + $0x78] sm:$0xff] %vm1777_vm0, %v4307_v32  ;;  %v2649_v62 = vmul.f32 -0.5, %v6358_v30  ;;  %v2492_v32 = vmul.f32 %v4855_v31, %v4855_v31  ;;  %v4856_v31 = vld [vmem:[%s5470_s26 + $0x188] sm:$0xff]  ;;  %v4857_v30 = vld [vmem:[%s5470_s26 + $0x200] sm:$0xff] }
 0x209   : > { %v4370_v61 = vadd.f32 -117.62413, %v2179_v38  ;;  %2525 = vadd.xlane.f32.xlu0 %v2491_v54 }
 0x20a   : > { %v4516_v36 = vadd.f32 -117.62413, %v2649_v62  ;;  %1651 = vadd.xlane.f32.xlu1 %v1602_v55  ;;  %v6371_v16 = vpop.xlane.xlu0 %2481 }
 0x20b   : > { %v6369_v44 = vpop.xlane.xlu1 %2002  ;;  %7781 = vst [vmem:[#allocation51_spill] sm:$0xff] %v6371_v16  ;;  %4402 = vst.msk [vmem:[%s5779_s28 + $0x170] sm:$0xff] %vm1777_vm0, %v4370_v61  ;;  %v2646_v54 = vmul.f32 -0.5, %v6371_v16  ;;  %v2489_v61 = vmul.f32 %v4857_v30, %v4857_v30  ;;  %v4859_v30 = vld [vmem:[%s5470_s26 + $0x208] sm:$0xff] }
 0x20c   : > { %7780 = vst [vmem:[#allocation50_spill] sm:$0xff] %v6369_v44  ;;  %4548 = vst.msk [vmem:[%s5779_s28 + $0x2f8] sm:$0xff] %vm1777_vm0, %v4516_v36  ;;  %v2180_v37 = vmul.f32 -0.5, %v6369_v44  ;;  %v2053_v36 = vmul.f32 %v4856_v31, %v4856_v31  ;;  %v2490_v24 = vmul.f32 %v4859_v30, %v4859_v30 }
 0x20d   : > { %v4513_v62 = vadd.f32 -117.62413, %v2646_v54  ;;  %2100 = vadd.xlane.f32.xlu0 %v2052_v15  ;;  %v4858_v15 = vld [vmem:[%s5470_s26 + $0x90] sm:$0xff] }
 0x20e   : > { %v4371_v55 = vadd.f32 -117.62413, %v2180_v37  ;;  %2527 = vadd.xlane.f32.xlu1 %v2492_v32  ;;  %v6383_v38 = vpop.xlane.xlu0 %1553  ;;  %v1603_v54 = vmul.f32 %v4858_v15, %v4858_v15  ;;  %v6403_v15 = vstv %s1874_s27 }
 0x20f   : > { %v6381_v43 = vpop.xlane.xlu1 %2483  ;;  %4545 = vst.msk [vmem:[%s5779_s28 + $0x2e0] sm:$0xff] %vm1777_vm0, %v4513_v62  ;;  %v1729_v32 = vmul.f32 -0.5, %v6383_v38 }
 0x210   : > { %7782 = vst [vmem:[#allocation52_spill] sm:$0xff] %v6381_v43  ;;  %4403 = vst.msk [vmem:[%s5779_s28 + $0x178] sm:$0xff] %vm1777_vm0, %v4371_v55  ;;  %v2647_v37 = vmul.f32 -0.5, %v6381_v43 }
 0x211   : > { %v4308_v44 = vadd.f32 -117.62413, %v1729_v32  ;;  %2521 = vadd.xlane.f32.xlu0 %v2489_v61 }
 0x212   : > { %v4514_v16 = vadd.f32 -117.62413, %v2647_v37  ;;  %2102 = vadd.xlane.f32.xlu1 %v2053_v36  ;;  %v1618_v41 = vpop.xlane.xlu0 %1617  ;;  %v4860_v36 = vld [vmem:[%s5470_s26 + $0x230] sm:$0xff] }
 0x213   : > { %v6394_v31 = vpop.xlane.xlu1 %1555  ;;  %1794 = vst.msk [vmem:[%s5779_s28 + $0x80] sm:$0xff] %vm1777_vm0, %v4308_v44  ;;  %v1810_v62 = vsub.f32 %v1618_v41, %v5758_v59  ;;  %v2495_v61 = vmul.f32 %v4860_v36, %v4860_v36  ;;  %v4861_v44 = vld [vmem:[%s5470_s26 + $0x98] sm:$0xff] }
 0x214   : > { %4546 = vst.msk [vmem:[%s5779_s28 + $0x2e8] sm:$0xff] %vm1777_vm0, %v4514_v16  ;;  %v1730_v55 = vmul.f32 -0.5, %v6394_v31  ;;  %v1604_v43 = vmul.f32 %v4861_v44, %v4861_v44 }
 0x215   : > { %v1842_v32 = vmul.f32 0.5, %v1810_v62  ;;  %1653 = vadd.xlane.f32.xlu0 %v1603_v54 }
 0x216   : > { %v4309_v37 = vadd.f32 -117.62413, %v1730_v55  ;;  %2523 = vadd.xlane.f32.xlu1 %v2490_v24  ;;  %v6408_v30 = vpop.xlane.xlu0 %2004  ;;  %v4862_v55 = vld [vmem:[%s5470_s26 + $0x190] sm:$0xff] }
 0x217   : > { %v1620_v16 = vpop.xlane.xlu1 %1619  ;;  %7783 = vst [vmem:[#allocation53_spill] sm:$0xff] %v6408_v30  ;;  %v1876_v59 = vadd.f32 %v6403_v15, %v1842_v32  ;;  %v2181_v36 = vmul.f32 -0.5, %v6408_v30  ;;  %v2054_v62 = vmul.f32 %v4862_v55, %v4862_v55  ;;  %v4864_v55 = vld [vmem:[%s5470_s26 + $0x198] sm:$0xff] }
 0x218   : > { %1795 = vst.msk [vmem:[%s5779_s28 + $0x88] sm:$0xff] %vm1777_vm0, %v4309_v37  ;;  %v1811_v41 = vsub.f32 %v1620_v16, %v5825_v48  ;;  %v4863_v48 = vld [vmem:[%s5470_s26 + $0x238] sm:$0xff] }
 0x219   : > { %1908 = vst.msk [vmem:[%s6417_s30] sm:$0xff] %vm1777_vm0, %v1876_v59  ;;  %v4372_v54 = vadd.f32 -117.62413, %v2181_v36  ;;  %2533 = vadd.xlane.f32.xlu0 %v2495_v61  ;;  %v2496_v16 = vmul.f32 %v4863_v48, %v4863_v48  ;;  %v2055_v48 = vmul.f32 %v4864_v55, %v4864_v55 }
 0x21a   : > { %v1843_v24 = vmul.f32 0.5, %v1811_v41  ;;  %1655 = vadd.xlane.f32.xlu1 %v1604_v43  ;;  %v2069_v32 = vpop.xlane.xlu0 %2068  ;;  %v6431_v43 = vstv %s6405_s29 }
 0x21b   : > { %v6422_v37 = vpop.xlane.xlu1 %2006  ;;  %4404 = vst.msk [vmem:[%s5779_s28 + $0x180] sm:$0xff] %vm1777_vm0, %v4372_v54  ;;  %v2262_v41 = vsub.f32 %v2069_v32, %v5795_v25  ;;  %v4865_v54 = vld [vmem:[%s5470_s26 + $0x220] sm:$0xff] }
 0x21c   : > { %7784 = vst [vmem:[#allocation54_spill] sm:$0xff] %v6422_v37  ;;  %v1877_v44 = vadd.f32 %v6403_v15, %v1843_v24  ;;  %v2182_v59 = vmul.f32 -0.5, %v6422_v37  ;;  %v2493_v37 = vmul.f32 %v4865_v54, %v4865_v54  ;;  %v4867_v54 = vld [vmem:[%s5470_s26 + $0x228] sm:$0xff] }
 0x21d   : > { %v2294_v36 = vmul.f32 0.5, %v2262_v41  ;;  %2104 = vadd.xlane.f32.xlu0 %v2054_v62 }
 0x21e   : > { %1909 = vst.msk [vmem:[%s6417_s30 + $0x8] sm:$0xff] %vm1777_vm0, %v1877_v44  ;;  %v4373_v61 = vadd.f32 -117.62413, %v2182_v59  ;;  %2535 = vadd.xlane.f32.xlu1 %v2496_v16  ;;  %v6436_v30 = vpop.xlane.xlu0 %1557  ;;  %v4866_v16 = vld [vmem:[%s5470_s26 + $0xa0] sm:$0xff] }
 0x21f   : > { %v2071_v24 = vpop.xlane.xlu1 %2070  ;;  %v2328_v25 = vadd.f32 %v6431_v43, %v2294_v36  ;;  %v1731_v44 = vmul.f32 -0.5, %v6436_v30  ;;  %v1605_v62 = vmul.f32 %v4866_v16, %v4866_v16  ;;  %v2494_v36 = vmul.f32 %v4867_v54, %v4867_v54 }
 0x220   : > { %4405 = vst.msk [vmem:[%s5779_s28 + $0x188] sm:$0xff] %vm1777_vm0, %v4373_v61  ;;  %v2263_v32 = vsub.f32 %v2071_v24, %v5793_v11 }
 0x221   : > { %4421 = vst.msk [vmem:[%s6417_s30 + $0x100] sm:$0xff] %vm1777_vm0, %v2328_v25  ;;  %v4310_v41 = vadd.f32 -117.62413, %v1731_v44  ;;  %2529 = vadd.xlane.f32.xlu0 %v2493_v37  ;;  %v4868_v25 = vld [vmem:[%s5470_s26 + $0x250] sm:$0xff] }
 0x222   : > { %v2295_v59 = vmul.f32 0.5, %v2263_v32  ;;  %2106 = vadd.xlane.f32.xlu1 %v2055_v48  ;;  %v1622_v61 = vpop.xlane.xlu0 %1621  ;;  %v2499_v32 = vmul.f32 %v4868_v25, %v4868_v25 }
 0x223   : > { %v6447_v55 = vpop.xlane.xlu1 %1559  ;;  %1796 = vst.msk [vmem:[%s5779_s28 + $0x90] sm:$0xff] %vm1777_vm0, %v4310_v41  ;;  %v1812_v16 = vsub.f32 %v1622_v61, %v5823_v3 }
 0x224   : > { %v2329_v11 = vadd.f32 %v6431_v43, %v2295_v59  ;;  %v1732_v24 = vmul.f32 -0.5, %v6447_v55  ;;  %v4869_v59 = vld [vmem:[%s5470_s26 + $0xa8] sm:$0xff] }
 0x225   : > { %v1844_v48 = vmul.f32 0.5, %v1812_v16  ;;  %1657 = vadd.xlane.f32.xlu0 %v1605_v62  ;;  %v1606_v41 = vmul.f32 %v4869_v59, %v4869_v59  ;;  %v4871_v59 = vld [vmem:[%s5470_s26 + $0x258] sm:$0xff] }
 0x226   : > { %4422 = vst.msk [vmem:[%s6417_s30 + $0x108] sm:$0xff] %vm1777_vm0, %v2329_v11  ;;  %v4311_v37 = vadd.f32 -117.62413, %v1732_v24  ;;  %2531 = vadd.xlane.f32.xlu1 %v2494_v36  ;;  %v6458_v54 = vpop.xlane.xlu0 %2008  ;;  %v4870_v24 = vld [vmem:[%s5470_s26 + $0x1a0] sm:$0xff] }
 0x227   : > { %v1624_v44 = vpop.xlane.xlu1 %1623  ;;  %v1878_v3 = vadd.f32 %v6403_v15, %v1844_v48  ;;  %v2183_v11 = vmul.f32 -0.5, %v6458_v54  ;;  %v2056_v16 = vmul.f32 %v4870_v24, %v4870_v24  ;;  %v2500_v48 = vmul.f32 %v4871_v59, %v4871_v59 }
 0x228   : > { %1797 = vst.msk [vmem:[%s5779_s28 + $0x98] sm:$0xff] %vm1777_vm0, %v4311_v37  ;;  %v1813_v61 = vsub.f32 %v1624_v44, %v5838_v46 }
 0x229   : > { %1910 = vst.msk [vmem:[%s6417_s30 + $0x10] sm:$0xff] %vm1777_vm0, %v1878_v3  ;;  %v4374_v62 = vadd.f32 -117.62413, %v2183_v11  ;;  %2541 = vadd.xlane.f32.xlu0 %v2499_v32 }
 0x22a   : > { %v1845_v36 = vmul.f32 0.5, %v1813_v61  ;;  %1659 = vadd.xlane.f32.xlu1 %v1606_v41  ;;  %v2073_v37 = vpop.xlane.xlu0 %2072  ;;  %v4872_v61 = vld [vmem:[%s5470_s26 + $0x1a8] sm:$0xff] }
 0x22b   : > { %v6469_v25 = vpop.xlane.xlu1 %2010  ;;  %4406 = vst.msk [vmem:[%s5779_s28 + $0x190] sm:$0xff] %vm1777_vm0, %v4374_v62  ;;  %v2264_v3 = vsub.f32 %v2073_v37, %v5866_v23  ;;  %v2057_v11 = vmul.f32 %v4872_v61, %v4872_v61 }
 0x22c   : > { %v1879_v46 = vadd.f32 %v6403_v15, %v1845_v36  ;;  %v2184_v44 = vmul.f32 -0.5, %v6469_v25  ;;  %v4873_v36 = vld [vmem:[%s5470_s26 + $0x240] sm:$0xff] }
 0x22d   : > { %v2296_v41 = vmul.f32 0.5, %v2264_v3  ;;  %2108 = vadd.xlane.f32.xlu0 %v2056_v16  ;;  %v2497_v62 = vmul.f32 %v4873_v36, %v4873_v36  ;;  %v4875_v36 = vld [vmem:[%s5470_s26 + $0x248] sm:$0xff] }
 0x22e   : > { %1911 = vst.msk [vmem:[%s6417_s30 + $0x18] sm:$0xff] %vm1777_vm0, %v1879_v46  ;;  %v4375_v32 = vadd.f32 -117.62413, %v2184_v44  ;;  %2543 = vadd.xlane.f32.xlu1 %v2500_v48  ;;  %v6480_v59 = vpop.xlane.xlu0 %1561  ;;  %v4874_v48 = vld [vmem:[%s5470_s26 + $0xb0] sm:$0xff] }
 0x22f   : > { %v2075_v24 = vpop.xlane.xlu1 %2074  ;;  %v2330_v23 = vadd.f32 %v6431_v43, %v2296_v41  ;;  %v1733_v46 = vmul.f32 -0.5, %v6480_v59  ;;  %v1607_v16 = vmul.f32 %v4874_v48, %v4874_v48  ;;  %v2498_v41 = vmul.f32 %v4875_v36, %v4875_v36 }
 0x230   : > { %4407 = vst.msk [vmem:[%s5779_s28 + $0x198] sm:$0xff] %vm1777_vm0, %v4375_v32  ;;  %v2265_v37 = vsub.f32 %v2075_v24, %v5878_v57 }
 0x231   : > { %4423 = vst.msk [vmem:[%s6417_s30 + $0x110] sm:$0xff] %vm1777_vm0, %v2330_v23  ;;  %v4312_v3 = vadd.f32 -117.62413, %v1733_v46  ;;  %2537 = vadd.xlane.f32.xlu0 %v2497_v62  ;;  %v4876_v23 = vld [vmem:[%s5470_s26 + $0x270] sm:$0xff] }
 0x232   : > { %v2297_v44 = vmul.f32 0.5, %v2265_v37  ;;  %2110 = vadd.xlane.f32.xlu1 %v2057_v11  ;;  %v1626_v32 = vpop.xlane.xlu0 %1625  ;;  %v2503_v37 = vmul.f32 %v4876_v23, %v4876_v23 }
 0x233   : > { %v6491_v61 = vpop.xlane.xlu1 %1563  ;;  %1798 = vst.msk [vmem:[%s5779_s28 + $0xa0] sm:$0xff] %vm1777_vm0, %v4312_v3  ;;  %v1814_v48 = vsub.f32 %v1626_v32, %v5897_v28 }
 0x234   : > { %v2331_v57 = vadd.f32 %v6431_v43, %v2297_v44  ;;  %v1734_v24 = vmul.f32 -0.5, %v6491_v61  ;;  %v4877_v44 = vld [vmem:[%s5470_s26 + $0xb8] sm:$0xff] }
 0x235   : > { %v1846_v62 = vmul.f32 0.5, %v1814_v48  ;;  %1661 = vadd.xlane.f32.xlu0 %v1607_v16  ;;  %v1608_v3 = vmul.f32 %v4877_v44, %v4877_v44  ;;  %v4879_v44 = vld [vmem:[%s5470_s26 + $0x278] sm:$0xff] }
 0x236   : > { %4424 = vst.msk [vmem:[%s6417_s30 + $0x118] sm:$0xff] %vm1777_vm0, %v2331_v57  ;;  %v4313_v11 = vadd.f32 -117.62413, %v1734_v24  ;;  %2539 = vadd.xlane.f32.xlu1 %v2498_v41  ;;  %v6502_v36 = vpop.xlane.xlu0 %2012  ;;  %v4878_v24 = vld [vmem:[%s5470_s26 + $0x1b0] sm:$0xff] }
 0x237   : > { %v1628_v46 = vpop.xlane.xlu1 %1627  ;;  %7785 = vst [vmem:[#allocation55_spill] sm:$0xff] %v6502_v36  ;;  %v1880_v28 = vadd.f32 %v6403_v15, %v1846_v62  ;;  %v2185_v57 = vmul.f32 -0.5, %v6502_v36  ;;  %v2058_v48 = vmul.f32 %v4878_v24, %v4878_v24  ;;  %v2504_v62 = vmul.f32 %v4879_v44, %v4879_v44 }
 0x238   : > { %1799 = vst.msk [vmem:[%s5779_s28 + $0xa8] sm:$0xff] %vm1777_vm0, %v4313_v11  ;;  %v1815_v32 = vsub.f32 %v1628_v46, %v5910_v34 }
 0x239   : > { %1912 = vst.msk [vmem:[%s6417_s30 + $0x20] sm:$0xff] %vm1777_vm0, %v1880_v28  ;;  %v4376_v16 = vadd.f32 -117.62413, %v2185_v57  ;;  %2549 = vadd.xlane.f32.xlu0 %v2503_v37 }
 0x23a   : > { %v1847_v41 = vmul.f32 0.5, %v1815_v32  ;;  %1663 = vadd.xlane.f32.xlu1 %v1608_v3  ;;  %v2077_v11 = vpop.xlane.xlu0 %2076  ;;  %v4880_v32 = vld [vmem:[%s5470_s26 + $0x1b8] sm:$0xff] }
 0x23b   : > { %v6513_v23 = vpop.xlane.xlu1 %2014  ;;  %4408 = vst.msk [vmem:[%s5779_s28 + $0x1a0] sm:$0xff] %vm1777_vm0, %v4376_v16  ;;  %v2266_v28 = vsub.f32 %v2077_v11, %v5938_v35  ;;  %v2059_v57 = vmul.f32 %v4880_v32, %v4880_v32 }
 0x23c   : > { %v1881_v34 = vadd.f32 %v6403_v15, %v1847_v41  ;;  %v2186_v46 = vmul.f32 -0.5, %v6513_v23  ;;  %v4881_v41 = vld [vmem:[%s5470_s26 + $0x260] sm:$0xff] }
 0x23d   : > { %v2298_v3 = vmul.f32 0.5, %v2266_v28  ;;  %2112 = vadd.xlane.f32.xlu0 %v2058_v48  ;;  %v2501_v36 = vmul.f32 %v4881_v41, %v4881_v41  ;;  %v1609_v48 = vmul.f32 %v5967_v22, %v5967_v22 }
 0x23e   : > { %1913 = vst.msk [vmem:[%s6417_s30 + $0x28] sm:$0xff] %vm1777_vm0, %v1881_v34  ;;  %v4377_v37 = vadd.f32 -117.62413, %v2186_v46  ;;  %2551 = vadd.xlane.f32.xlu1 %v2504_v62  ;;  %v6524_v44 = vpop.xlane.xlu0 %1565 }
 0x23f   : > { %v2079_v24 = vpop.xlane.xlu1 %2078  ;;  %v2332_v35 = vadd.f32 %v6431_v43, %v2298_v3  ;;  %v1735_v11 = vmul.f32 -0.5, %v6524_v44 }
 0x240   : > { %4409 = vst.msk [vmem:[%s5779_s28 + $0x1a8] sm:$0xff] %vm1777_vm0, %v4377_v37  ;;  %v2267_v16 = vsub.f32 %v2079_v24, %v5950_v9  ;;  %v4882_v37 = vld [vmem:[%s5470_s26 + $0x268] sm:$0xff]  ;;  %v2507_v24 = vmul.f32 %v5992_v18, %v5992_v18 }
 0x241   : > { %4425 = vst.msk [vmem:[%s6417_s30 + $0x120] sm:$0xff] %vm1777_vm0, %v2332_v35  ;;  %v4314_v34 = vadd.f32 -117.62413, %v1735_v11  ;;  %2545 = vadd.xlane.f32.xlu0 %v2501_v36  ;;  %v2502_v3 = vmul.f32 %v4882_v37, %v4882_v37 }
 0x242   : > { %v2299_v62 = vmul.f32 0.5, %v2267_v16  ;;  %2114 = vadd.xlane.f32.xlu1 %v2059_v57  ;;  %v1630_v28 = vpop.xlane.xlu0 %1629  ;;  %v1610_v16 = vmul.f32 %v5985_v20, %v5985_v20 }
 0x243   : > { %v6536_v46 = vpop.xlane.xlu1 %1567  ;;  %1800 = vst.msk [vmem:[%s5779_s28 + $0xb0] sm:$0xff] %vm1777_vm0, %v4314_v34  ;;  %v1816_v22 = vsub.f32 %v1630_v28, %v5971_v1  ;;  %v4883_v34 = vld [vmem:[%s5470_s26 + $0x1c0] sm:$0xff] }
 0x244   : > { %v2333_v9 = vadd.f32 %v6431_v43, %v2299_v62  ;;  %v1736_v32 = vmul.f32 -0.5, %v6536_v46  ;;  %v2060_v28 = vmul.f32 %v4883_v34, %v4883_v34 }
 0x245   : > { %v1848_v57 = vmul.f32 0.5, %v1816_v22  ;;  %1665 = vadd.xlane.f32.xlu0 %v1609_v48 }
 0x246   : > { %4426 = vst.msk [vmem:[%s6417_s30 + $0x128] sm:$0xff] %vm1777_vm0, %v2333_v9  ;;  %v4315_v36 = vadd.f32 -117.62413, %v1736_v32  ;;  %2547 = vadd.xlane.f32.xlu1 %v2502_v3  ;;  %v6548_v35 = vpop.xlane.xlu0 %2016  ;;  %v2508_v3 = vmul.f32 %v6017_v2, %v6017_v2 }
 0x247   : > { %v1632_v41 = vpop.xlane.xlu1 %1631  ;;  %v1882_v1 = vadd.f32 %v6403_v15, %v1848_v57  ;;  %v2187_v11 = vmul.f32 -0.5, %v6548_v35 }
 0x248   : > { %1801 = vst.msk [vmem:[%s5779_s28 + $0xb8] sm:$0xff] %vm1777_vm0, %v4315_v36  ;;  %v1817_v18 = vsub.f32 %v1632_v41, %v5987_v39  ;;  %v4884_v36 = vld [vmem:[%s5470_s26 + $0x1c8] sm:$0xff] }
 0x249   : > { %1914 = vst.msk [vmem:[%s6417_s30 + $0x30] sm:$0xff] %vm1777_vm0, %v1882_v1  ;;  %v4378_v48 = vadd.f32 -117.62413, %v2187_v11  ;;  %2557 = vadd.xlane.f32.xlu0 %v2507_v24  ;;  %v2061_v57 = vmul.f32 %v4884_v36, %v4884_v36  ;;  %v1611_v11 = vmul.f32 %v6054_v42, %v6054_v42  ;;  %v1612_v36 = vmul.f32 %v6074_v47, %v6074_v47 }
 0x24a   : > { %v1849_v62 = vmul.f32 0.5, %v1817_v18  ;;  %1667 = vadd.xlane.f32.xlu1 %v1610_v16  ;;  %v2081_v37 = vpop.xlane.xlu0 %2080  ;;  %v2505_v16 = vmul.f32 %v6014_v50, %v6014_v50 }
 0x24b   : > { %v6560_v20 = vpop.xlane.xlu1 %2018  ;;  %4410 = vst.msk [vmem:[%s5779_s28 + $0x1b0] sm:$0xff] %vm1777_vm0, %v4378_v48  ;;  %v2268_v32 = vsub.f32 %v2081_v37, %v6023_v12 }
 0x24c   : > { %v1883_v39 = vadd.f32 %v6403_v15, %v1849_v62  ;;  %v2188_v9 = vmul.f32 -0.5, %v6560_v20 }
 0x24d   : > { %v2300_v24 = vmul.f32 0.5, %v2268_v32  ;;  %2116 = vadd.xlane.f32.xlu0 %v2060_v28  ;;  %v4885_v28 = vld [vmem:[%s5470_s26 + $0x288] sm:$0xff] }
 0x24e   : > { %1915 = vst.msk [vmem:[%s6417_s30 + $0x38] sm:$0xff] %vm1777_vm0, %v1883_v39  ;;  %v4379_v22 = vadd.f32 -117.62413, %v2188_v9  ;;  %2559 = vadd.xlane.f32.xlu1 %v2508_v3  ;;  %v6572_v2 = vpop.xlane.xlu0 %1569  ;;  %v2506_v37 = vmul.f32 %v4885_v28, %v4885_v28  ;;  %v2511_v39 = vmul.f32 %v6081_v10, %v6081_v10 }
 0x24f   : > { %v2083_v41 = vpop.xlane.xlu1 %2082  ;;  %v2334_v12 = vadd.f32 %v6431_v43, %v2300_v24  ;;  %v1737_v18 = vmul.f32 -0.5, %v6572_v2 }
 0x250   : > { %4411 = vst.msk [vmem:[%s5779_s28 + $0x1b8] sm:$0xff] %vm1777_vm0, %v4379_v22  ;;  %v2269_v1 = vsub.f32 %v2083_v41, %v6037_v8 }
 0x251   : > { %4427 = vst.msk [vmem:[%s6417_s30 + $0x130] sm:$0xff] %vm1777_vm0, %v2334_v12  ;;  %v4316_v48 = vadd.f32 -117.62413, %v1737_v18  ;;  %2553 = vadd.xlane.f32.xlu0 %v2505_v16  ;;  %v2062_v12 = vmul.f32 %v6071_v14, %v6071_v14  ;;  %v2512_v18 = vmul.f32 %v6110_v40, %v6110_v40 }
 0x252   : > { %v2301_v62 = vmul.f32 0.5, %v2269_v1  ;;  %2118 = vadd.xlane.f32.xlu1 %v2061_v57  ;;  %v1634_v34 = vpop.xlane.xlu0 %1633 }
 0x253   : > { %v6585_v50 = vpop.xlane.xlu1 %1571  ;;  %1802 = vst.msk [vmem:[%s5779_s28 + $0xc0] sm:$0xff] %vm1777_vm0, %v4316_v48  ;;  %v1818_v42 = vsub.f32 %v1634_v34, %v6058_v60  ;;  %v2063_v34 = vmul.f32 %v6084_v33, %v6084_v33 }
 0x254   : > { %v2335_v8 = vadd.f32 %v6431_v43, %v2301_v62  ;;  %v1738_v3 = vmul.f32 -0.5, %v6585_v50 }
 0x255   : > { %v1850_v32 = vmul.f32 0.5, %v1818_v42  ;;  %1669 = vadd.xlane.f32.xlu0 %v1611_v11  ;;  %v1613_v42 = vmul.f32 %v6150_v63, %v6150_v63 }
 0x256   : > { %4428 = vst.msk [vmem:[%s6417_s30 + $0x138] sm:$0xff] %vm1777_vm0, %v2335_v8  ;;  %v4317_v9 = vadd.f32 -117.62413, %v1738_v3  ;;  %2555 = vadd.xlane.f32.xlu1 %v2506_v37  ;;  %v6597_v24 = vpop.xlane.xlu0 %2020  ;;  %v2509_v37 = vmul.f32 %v6107_v53, %v6107_v53 }
 0x257   : > { %v1636_v22 = vpop.xlane.xlu1 %1635  ;;  %v1884_v60 = vadd.f32 %v6403_v15, %v1850_v32  ;;  %v2189_v57 = vmul.f32 -0.5, %v6597_v24  ;;  %v2510_v32 = vmul.f32 %v6119_v27, %v6119_v27 }
 0x258   : > { %1803 = vst.msk [vmem:[%s5779_s28 + $0xc8] sm:$0xff] %vm1777_vm0, %v4317_v9  ;;  %v1819_v10 = vsub.f32 %v1636_v22, %v6076_v13 }
 0x259   : > { %1916 = vst.msk [vmem:[%s6417_s30 + $0x40] sm:$0xff] %vm1777_vm0, %v1884_v60  ;;  %v4380_v16 = vadd.f32 -117.62413, %v2189_v57  ;;  %2565 = vadd.xlane.f32.xlu0 %v2511_v39 }
 0x25a   : > { %v1851_v41 = vmul.f32 0.5, %v1819_v10  ;;  %1671 = vadd.xlane.f32.xlu1 %v1612_v36  ;;  %v2085_v47 = vpop.xlane.xlu0 %2084  ;;  %v2515_v36 = vmul.f32 %v6177_v6, %v6177_v6 }
 0x25b   : > { %v6610_v1 = vpop.xlane.xlu1 %2022  ;;  %4412 = vst.msk [vmem:[%s5779_s28 + $0x1c0] sm:$0xff] %vm1777_vm0, %v4380_v16  ;;  %v2270_v62 = vsub.f32 %v2085_v47, %v6116_v0  ;;  %v7786_v16 = vld [vmem:[#allocation17_spill] sm:$0xff] }
 0x25c   : > { %v1885_v13 = vadd.f32 %v6403_v15, %v1851_v41  ;;  %v2190_v11 = vmul.f32 -0.5, %v6610_v1  ;;  %v1614_v41 = vmul.f32 %v6170_v56, %v6170_v56 }
 0x25d   : > { %v2302_v14 = vmul.f32 0.5, %v2270_v62  ;;  %2120 = vadd.xlane.f32.xlu0 %v2062_v12 }
 0x25e   : > { %1917 = vst.msk [vmem:[%s6417_s30 + $0x48] sm:$0xff] %vm1777_vm0, %v1885_v13  ;;  %v4381_v48 = vadd.f32 -117.62413, %v2190_v11  ;;  %2567 = vadd.xlane.f32.xlu1 %v2512_v18  ;;  %v6623_v40 = vpop.xlane.xlu0 %1573  ;;  %v7787_v13 = vld [vmem:[#allocation19_spill] sm:$0xff] }
 0x25f   : > { %v2087_v28 = vpop.xlane.xlu1 %2086  ;;  %v2336_v0 = vadd.f32 %v6431_v43, %v2302_v14  ;;  %v1739_v3 = vmul.f32 -0.5, %v6623_v40  ;;  %v2064_v11 = vmul.f32 %v7787_v13, %v7787_v13 }
 0x260   : > { %4413 = vst.msk [vmem:[%s5779_s28 + $0x1c8] sm:$0xff] %vm1777_vm0, %v4381_v48  ;;  %v2271_v8 = vsub.f32 %v2087_v28, %v6133_v29  ;;  %v2516_v48 = vmul.f32 %v6206_v52, %v6206_v52 }
 0x261   : > { %4429 = vst.msk [vmem:[%s6417_s30 + $0x140] sm:$0xff] %vm1777_vm0, %v2336_v0  ;;  %v4318_v39 = vadd.f32 -117.62413, %v1739_v3  ;;  %2561 = vadd.xlane.f32.xlu0 %v2509_v37 }
 0x262   : > { %v2303_v33 = vmul.f32 0.5, %v2271_v8  ;;  %2122 = vadd.xlane.f32.xlu1 %v2063_v34  ;;  %v1638_v53 = vpop.xlane.xlu0 %1637  ;;  %v7788_v8 = vld [vmem:[#allocation33_spill] sm:$0xff] }
 0x263   : > { %v6636_v9 = vpop.xlane.xlu1 %1575  ;;  %1804 = vst.msk [vmem:[%s5779_s28 + $0xd0] sm:$0xff] %vm1777_vm0, %v4318_v39  ;;  %v1820_v22 = vsub.f32 %v1638_v53, %v6154_v49  ;;  %v2065_v3 = vmul.f32 %v7788_v8, %v7788_v8  ;;  %v7790_v53 = vld [vmem:[#allocation35_spill] sm:$0xff]  ;;  %v2517_v8 = vmul.f32 %v6293_v21, %v6293_v21 }
 0x264   : > { %v2337_v29 = vadd.f32 %v6431_v43, %v2303_v33  ;;  %v1740_v63 = vmul.f32 -0.5, %v6636_v9  ;;  %v7789_v33 = vld [vmem:[#allocation21_spill] sm:$0xff] }
 0x265   : > { %v1852_v10 = vmul.f32 0.5, %v1820_v22  ;;  %1673 = vadd.xlane.f32.xlu0 %v1613_v42  ;;  %v2513_v39 = vmul.f32 %v7789_v33, %v7789_v33 }
 0x266   : > { %4430 = vst.msk [vmem:[%s6417_s30 + $0x148] sm:$0xff] %vm1777_vm0, %v2337_v29  ;;  %v4319_v60 = vadd.f32 -117.62413, %v1740_v63  ;;  %2563 = vadd.xlane.f32.xlu1 %v2510_v32  ;;  %v6649_v27 = vpop.xlane.xlu0 %2024  ;;  %v1615_v63 = vmul.f32 %v6245_v45, %v6245_v45 }
 0x267   : > { %v1640_v57 = vpop.xlane.xlu1 %1639  ;;  %v1886_v49 = vadd.f32 %v6403_v15, %v1852_v10  ;;  %v2191_v12 = vmul.f32 -0.5, %v6649_v27 }
 0x268   : > { %1805 = vst.msk [vmem:[%s5779_s28 + $0xd8] sm:$0xff] %vm1777_vm0, %v4319_v60  ;;  %v1821_v6 = vsub.f32 %v1640_v57, %v7786_v16  ;;  %v7791_v57 = vld [vmem:[#allocation34_spill] sm:$0xff] }
 0x269   : > { %1918 = vst.msk [vmem:[%s6417_s30 + $0x50] sm:$0xff] %vm1777_vm0, %v1886_v49  ;;  %v4382_v18 = vadd.f32 -117.62413, %v2191_v12  ;;  %2573 = vadd.xlane.f32.xlu0 %v2515_v36 }
 0x26a   : > { %v1853_v47 = vmul.f32 0.5, %v1821_v6  ;;  %1675 = vadd.xlane.f32.xlu1 %v1614_v41  ;;  %v2089_v56 = vpop.xlane.xlu0 %2088  ;;  %v2514_v41 = vmul.f32 %v7791_v57, %v7791_v57 }
 0x26b   : > { %v6662_v62 = vpop.xlane.xlu1 %2026  ;;  %4414 = vst.msk [vmem:[%s5779_s28 + $0x1d0] sm:$0xff] %vm1777_vm0, %v4382_v18  ;;  %v2272_v28 = vsub.f32 %v2089_v56, %v6212_v58  ;;  %v7792_v56 = vld [vmem:[#allocation38_spill] sm:$0xff] }
 0x26c   : > { %v1887_v14 = vadd.f32 %v6403_v15, %v1853_v47  ;;  %v2192_v34 = vmul.f32 -0.5, %v6662_v62  ;;  %v2066_v47 = vmul.f32 %v6261_v26, %v6261_v26 }
 0x26d   : > { %v2304_v0 = vmul.f32 0.5, %v2272_v28  ;;  %2124 = vadd.xlane.f32.xlu0 %v2064_v11  ;;  %v1616_v11 = vmul.f32 %v6264_v19, %v6264_v19  ;;  %v7793_v28 = vld [vmem:[#allocation40_spill] sm:$0xff] }
 0x26e   : > { %1919 = vst.msk [vmem:[%s6417_s30 + $0x58] sm:$0xff] %vm1777_vm0, %v1887_v14  ;;  %v4383_v37 = vadd.f32 -117.62413, %v2192_v34  ;;  %2575 = vadd.xlane.f32.xlu1 %v2516_v48  ;;  %v6675_v52 = vpop.xlane.xlu0 %1577 }
 0x26f   : > { %v2091_v42 = vpop.xlane.xlu1 %2090  ;;  %v2338_v58 = vadd.f32 %v6431_v43, %v2304_v0  ;;  %v1741_v29 = vmul.f32 -0.5, %v6675_v52 }
 0x270   : > { %4415 = vst.msk [vmem:[%s5779_s28 + $0x1d8] sm:$0xff] %vm1777_vm0, %v4383_v37  ;;  %v2273_v32 = vsub.f32 %v2091_v42, %v7790_v53  ;;  %v2067_v37 = vmul.f32 %v7793_v28, %v7793_v28  ;;  %v2519_v53 = vmul.f32 %v6290_v17, %v6290_v17 }
 0x271   : > { %4431 = vst.msk [vmem:[%s6417_s30 + $0x150] sm:$0xff] %vm1777_vm0, %v2338_v58  ;;  %v4320_v36 = vadd.f32 -117.62413, %v1741_v29  ;;  %2569 = vadd.xlane.f32.xlu0 %v2513_v39  ;;  %v2518_v29 = vmul.f32 %v6315_v5, %v6315_v5  ;;  %v7794_v5 = vld [vmem:[#allocation42_spill] sm:$0xff] }
 0x272   : > { %v2305_v22 = vmul.f32 0.5, %v2273_v32  ;;  %2126 = vadd.xlane.f32.xlu1 %v2065_v3  ;;  %v1642_v10 = vpop.xlane.xlu0 %1641 }
 0x273   : > { %v6688_v60 = vpop.xlane.xlu1 %1579  ;;  %1806 = vst.msk [vmem:[%s5779_s28 + $0xe0] sm:$0xff] %vm1777_vm0, %v4320_v36  ;;  %v1822_v16 = vsub.f32 %v1642_v10, %v6249_v4 }
 0x274   : > { %v2339_v49 = vadd.f32 %v6431_v43, %v2305_v22  ;;  %v1742_v45 = vmul.f32 -0.5, %v6688_v60 }
 0x275   : > { %v1854_v12 = vmul.f32 0.5, %v1822_v16  ;;  %1677 = vadd.xlane.f32.xlu0 %v1615_v63 }
 0x276   : > { %4432 = vst.msk [vmem:[%s6417_s30 + $0x158] sm:$0xff] %vm1777_vm0, %v2339_v49  ;;  %v4321_v6 = vadd.f32 -117.62413, %v1742_v45  ;;  %2571 = vadd.xlane.f32.xlu1 %v2514_v41  ;;  %v6701_v13 = vpop.xlane.xlu0 %2028  ;;  %v2520_v41 = vmul.f32 %v7794_v5, %v7794_v5  ;;  %v7795_v45 = vld [vmem:[#allocation45_spill] sm:$0xff] }
 0x277   : > { %v1644_v18 = vpop.xlane.xlu1 %1643  ;;  %v1888_v4 = vadd.f32 %v6403_v15, %v1854_v12  ;;  %v2193_v14 = vmul.f32 -0.5, %v6701_v13 }
 0x278   : > { %1807 = vst.msk [vmem:[%s5779_s28 + $0xe8] sm:$0xff] %vm1777_vm0, %v4321_v6  ;;  %v1823_v48 = vsub.f32 %v1644_v18, %v7792_v56 }
 0x279   : > { %1920 = vst.msk [vmem:[%s6417_s30 + $0x60] sm:$0xff] %vm1777_vm0, %v1888_v4  ;;  %v4384_v26 = vadd.f32 -117.62413, %v2193_v14  ;;  %2128 = vadd.xlane.f32.xlu0 %v2066_v47  ;;  %v7796_v4 = vld [vmem:[#allocation46_spill] sm:$0xff] }
 0x27a   : > { %v1855_v34 = vmul.f32 0.5, %v1823_v48  ;;  %1679 = vadd.xlane.f32.xlu1 %v1616_v11  ;;  %v2093_v19 = vpop.xlane.xlu0 %2092 }
 0x27b   : > { %v6714_v0 = vpop.xlane.xlu1 %2030  ;;  %4416 = vst.msk [vmem:[%s5779_s28 + $0x1e0] sm:$0xff] %vm1777_vm0, %v4384_v26  ;;  %v2274_v33 = vsub.f32 %v2093_v19, %v6299_v51 }
 0x27c   : > { %v1889_v3 = vadd.f32 %v6403_v15, %v1855_v34  ;;  %v2194_v42 = vmul.f32 -0.5, %v6714_v0 }
 0x27d   : > { %v2306_v58 = vmul.f32 0.5, %v2274_v33  ;;  %2577 = vadd.xlane.f32.xlu0 %v2517_v8  ;;  %v7797_v8 = vld [vmem:[#allocation49_spill] sm:$0xff] }
 0x27e   : > { %1921 = vst.msk [vmem:[%s6417_s30 + $0x68] sm:$0xff] %vm1777_vm0, %v1889_v3  ;;  %v4385_v39 = vadd.f32 -117.62413, %v2194_v42  ;;  %2130 = vadd.xlane.f32.xlu1 %v2067_v37  ;;  %v6727_v21 = vpop.xlane.xlu0 %1581 }
 0x27f   : > { %v2095_v32 = vpop.xlane.xlu1 %2094  ;;  %v2340_v51 = vadd.f32 %v6431_v43, %v2306_v58  ;;  %v1743_v22 = vmul.f32 -0.5, %v6727_v21 }
 0x280   : > { %4417 = vst.msk [vmem:[%s5779_s28 + $0x1e8] sm:$0xff] %vm1777_vm0, %v4385_v39  ;;  %v2275_v63 = vsub.f32 %v2095_v32, %v6317_v7  ;;  %v7798_v32 = vld [vmem:[#allocation50_spill] sm:$0xff] }
 0x281   : > { %4433 = vst.msk [vmem:[%s6417_s30 + $0x160] sm:$0xff] %vm1777_vm0, %v2340_v51  ;;  %v4322_v17 = vadd.f32 -117.62413, %v1743_v22  ;;  %2581 = vadd.xlane.f32.xlu0 %v2519_v53 }
 0x282   : > { %v2307_v36 = vmul.f32 0.5, %v2275_v63  ;;  %2579 = vadd.xlane.f32.xlu1 %v2518_v29  ;;  %v1646_v57 = vpop.xlane.xlu0 %1645 }
 0x283   : > { %v6738_v10 = vpop.xlane.xlu1 %1583  ;;  %1808 = vst.msk [vmem:[%s5779_s28 + $0xf0] sm:$0xff] %vm1777_vm0, %v4322_v17  ;;  %v1824_v16 = vsub.f32 %v1646_v57, %v7795_v45  ;;  %v6778_v45 = vstv %s4549_s9 }
 0x284   : > { %v2341_v49 = vadd.f32 %v6431_v43, %v2307_v36  ;;  %v1744_v7 = vmul.f32 -0.5, %v6738_v10 }
 0x285   : > { %v1856_v12 = vmul.f32 0.5, %v1824_v16 }
 0x286   : > { %4434 = vst.msk [vmem:[%s6417_s30 + $0x168] sm:$0xff] %vm1777_vm0, %v2341_v49  ;;  %v4323_v6 = vadd.f32 -117.62413, %v1744_v7  ;;  %2583 = vadd.xlane.f32.xlu1 %v2520_v41  ;;  %v6749_v18 = vpop.xlane.xlu0 %2032  ;;  %v7799_v49 = vld [vmem:[#allocation23_spill] sm:$0xff] }
 0x287   : > { %v1648_v47 = vpop.xlane.xlu1 %1647  ;;  %v1890_v11 = vadd.f32 %v6403_v15, %v1856_v12  ;;  %v2195_v48 = vmul.f32 -0.5, %v6749_v18 }
 0x288   : > { %1809 = vst.msk [vmem:[%s5779_s28 + $0xf8] sm:$0xff] %vm1777_vm0, %v4323_v6  ;;  %v1825_v56 = vsub.f32 %v1648_v47, %v7796_v4  ;;  %v7800_v4 = vld [vmem:[#allocation22_spill] sm:$0xff] }
 0x289   : > { %1922 = vst.msk [vmem:[%s6417_s30 + $0x70] sm:$0xff] %vm1777_vm0, %v1890_v11  ;;  %v4386_v34 = vadd.f32 -117.62413, %v2195_v48 }
 0x28a   : > { %v1857_v14 = vmul.f32 0.5, %v1825_v56  ;;  %v2097_v28 = vpop.xlane.xlu0 %2096  ;;  %v7801_v56 = vld [vmem:[#allocation53_spill] sm:$0xff] }
 0x28b   : > { %v6758_v26 = vpop.xlane.xlu1 %2034  ;;  %4418 = vst.msk [vmem:[%s5779_s28 + $0x1f0] sm:$0xff] %vm1777_vm0, %v4386_v34  ;;  %v2276_v3 = vsub.f32 %v2097_v28, %v7797_v8 }
 0x28c   : > { %v1891_v37 = vadd.f32 %v6403_v15, %v1857_v14  ;;  %v2196_v19 = vmul.f32 -0.5, %v6758_v26 }
 0x28d   : > { %v2308_v33 = vmul.f32 0.5, %v2276_v3  ;;  %v7802_v3 = vld [vmem:[#allocation54_spill] sm:$0xff] }
 0x28e   : > { %1923 = vst.msk [vmem:[%s6417_s30 + $0x78] sm:$0xff] %vm1777_vm0, %v1891_v37  ;;  %v4387_v42 = vadd.f32 -117.62413, %v2196_v19  ;;  %v1650_v58 = vpop.xlane.xlu0 %1649 }
 0x28f   : > { %v2099_v39 = vpop.xlane.xlu1 %2098  ;;  %v2342_v53 = vadd.f32 %v6431_v43, %v2308_v33  ;;  %v1826_v51 = vsub.f32 %v1650_v58, %v6383_v38  ;;  %v7803_v33 = vld [vmem:[#allocation25_spill] sm:$0xff] }
 0x290   : > { %4419 = vst.msk [vmem:[%s5779_s28 + $0x1f8] sm:$0xff] %vm1777_vm0, %v4387_v42  ;;  %v2277_v29 = vsub.f32 %v2099_v39, %v7798_v32 }
 0x291   : > { %4435 = vst.msk [vmem:[%s6417_s30 + $0x170] sm:$0xff] %vm1777_vm0, %v2342_v53  ;;  %v1858_v22 = vmul.f32 0.5, %v1826_v51 }
 0x292   : > { %v2309_v63 = vmul.f32 0.5, %v2277_v29  ;;  %v2526_v17 = vpop.xlane.xlu0 %2525 }
 0x293   : > { %v1652_v36 = vpop.xlane.xlu1 %1651  ;;  %v1892_v5 = vadd.f32 %v6403_v15, %v1858_v22  ;;  %v2717_v7 = vsub.f32 %v2526_v17, %v7799_v49  ;;  %v7804_v22 = vld [vmem:[#allocation24_spill] sm:$0xff] }
 0x294   : > { %v2343_v57 = vadd.f32 %v6431_v43, %v2309_v63  ;;  %v1827_v41 = vsub.f32 %v1652_v36, %v6394_v31 }
 0x295   : > { %1924 = vst.msk [vmem:[%s6417_s30 + $0x80] sm:$0xff] %vm1777_vm0, %v1892_v5  ;;  %v2749_v16 = vmul.f32 0.5, %v2717_v7 }
 0x296   : > { %4436 = vst.msk [vmem:[%s6417_s30 + $0x178] sm:$0xff] %vm1777_vm0, %v2343_v57  ;;  %v1859_v38 = vmul.f32 0.5, %v1827_v41  ;;  %v2101_v12 = vpop.xlane.xlu0 %2100 }
 0x297   : > { %v2528_v6 = vpop.xlane.xlu1 %2527  ;;  %v2783_v11 = vadd.f32 %v6778_v45, %v2749_v16  ;;  %v2278_v48 = vsub.f32 %v2101_v12, %v7801_v56 }
 0x298   : > { %v1893_v47 = vadd.f32 %v6403_v15, %v1859_v38  ;;  %v2718_v31 = vsub.f32 %v2528_v6, %v7800_v4  ;;  %v7805_v6 = vld [vmem:[#allocation26_spill] sm:$0xff] }
 0x299   : > { %4552 = vst.msk [vmem:[%s6417_s30 + $0x210] sm:$0xff] %vm1777_vm0, %v2783_v11  ;;  %v2310_v34 = vmul.f32 0.5, %v2278_v48  ;;  %v7806_v48 = vld [vmem:[#allocation27_spill] sm:$0xff] }
 0x29a   : > { %1925 = vst.msk [vmem:[%s6417_s30 + $0x88] sm:$0xff] %vm1777_vm0, %v1893_v47  ;;  %v2750_v14 = vmul.f32 0.5, %v2718_v31  ;;  %v2522_v37 = vpop.xlane.xlu0 %2521 }
 0x29b   : > { %v2103_v28 = vpop.xlane.xlu1 %2102  ;;  %v2344_v8 = vadd.f32 %v6431_v43, %v2310_v34  ;;  %v2715_v39 = vsub.f32 %v2522_v37, %v7803_v33  ;;  %v7807_v33 = vld [vmem:[#allocation28_spill] sm:$0xff] }
 0x29c   : > { %v2784_v19 = vadd.f32 %v6778_v45, %v2750_v14  ;;  %v2279_v42 = vsub.f32 %v2103_v28, %v7802_v3 }
 0x29d   : > { %4437 = vst.msk [vmem:[%s6417_s30 + $0x180] sm:$0xff] %vm1777_vm0, %v2344_v8  ;;  %v2747_v53 = vmul.f32 0.5, %v2715_v39 }
 0x29e   : > { %4553 = vst.msk [vmem:[%s6417_s30 + $0x218] sm:$0xff] %vm1777_vm0, %v2784_v19  ;;  %v2311_v58 = vmul.f32 0.5, %v2279_v42  ;;  %v1654_v29 = vpop.xlane.xlu0 %1653 }
 0x29f   : > { %v2524_v32 = vpop.xlane.xlu1 %2523  ;;  %v2781_v63 = vadd.f32 %v6778_v45, %v2747_v53  ;;  %v1828_v17 = vsub.f32 %v1654_v29, %v6436_v30 }
 0x2a0   : > { %v2345_v51 = vadd.f32 %v6431_v43, %v2311_v58  ;;  %v2716_v36 = vsub.f32 %v2524_v32, %v7804_v22 }
 0x2a1   : > { %4550 = vst.msk [vmem:[%s6417_s30 + $0x200] sm:$0xff] %vm1777_vm0, %v2781_v63  ;;  %v1860_v5 = vmul.f32 0.5, %v1828_v17  ;;  %v7808_v63 = vld [vmem:[#allocation29_spill] sm:$0xff] }
 0x2a2   : > { %4438 = vst.msk [vmem:[%s6417_s30 + $0x188] sm:$0xff] %vm1777_vm0, %v2345_v51  ;;  %v2748_v57 = vmul.f32 0.5, %v2716_v36  ;;  %v2534_v49 = vpop.xlane.xlu0 %2533 }
 0x2a3   : > { %v1656_v41 = vpop.xlane.xlu1 %1655  ;;  %v1894_v38 = vadd.f32 %v6403_v15, %v1860_v5  ;;  %v2721_v12 = vsub.f32 %v2534_v49, %v7805_v6 }
 0x2a4   : > { %v2782_v7 = vadd.f32 %v6778_v45, %v2748_v57  ;;  %v1829_v16 = vsub.f32 %v1656_v41, %v6447_v55 }
 0x2a5   : > { %1926 = vst.msk [vmem:[%s6417_s30 + $0x90] sm:$0xff] %vm1777_vm0, %v1894_v38  ;;  %v2753_v47 = vmul.f32 0.5, %v2721_v12  ;;  %v7809_v38 = vld [vmem:[#allocation30_spill] sm:$0xff] }
 0x2a6   : > { %4551 = vst.msk [vmem:[%s6417_s30 + $0x208] sm:$0xff] %vm1777_vm0, %v2782_v7  ;;  %v1861_v30 = vmul.f32 0.5, %v1829_v16  ;;  %v2105_v4 = vpop.xlane.xlu0 %2104 }
 0x2a7   : > { %v2536_v11 = vpop.xlane.xlu1 %2535  ;;  %v2787_v56 = vadd.f32 %v6778_v45, %v2753_v47  ;;  %v2280_v55 = vsub.f32 %v2105_v4, %v6458_v54  ;;  %v7810_v4 = vld [vmem:[#allocation8_spill] sm:$0xff] }
 0x2a8   : > { %v1895_v31 = vadd.f32 %v6403_v15, %v1861_v30  ;;  %v2722_v14 = vsub.f32 %v2536_v11, %v7806_v48 }
 0x2a9   : > { %4556 = vst.msk [vmem:[%s6417_s30 + $0x230] sm:$0xff] %vm1777_vm0, %v2787_v56  ;;  %v2312_v28 = vmul.f32 0.5, %v2280_v55  ;;  %v7811_v56 = vld [vmem:[#allocation55_spill] sm:$0xff] }
 0x2aa   : > { %1927 = vst.msk [vmem:[%s6417_s30 + $0x98] sm:$0xff] %vm1777_vm0, %v1895_v31  ;;  %v2754_v34 = vmul.f32 0.5, %v2722_v14  ;;  %v2530_v19 = vpop.xlane.xlu0 %2529 }
 0x2ab   : > { %v2107_v37 = vpop.xlane.xlu1 %2106  ;;  %v2346_v3 = vadd.f32 %v6431_v43, %v2312_v28  ;;  %v2719_v39 = vsub.f32 %v2530_v19, %v7807_v33 }
 0x2ac   : > { %v2788_v8 = vadd.f32 %v6778_v45, %v2754_v34  ;;  %v2281_v42 = vsub.f32 %v2107_v37, %v6469_v25 }
 0x2ad   : > { %4439 = vst.msk [vmem:[%s6417_s30 + $0x190] sm:$0xff] %vm1777_vm0, %v2346_v3  ;;  %v2751_v58 = vmul.f32 0.5, %v2719_v39 }
 0x2ae   : > { %4557 = vst.msk [vmem:[%s6417_s30 + $0x238] sm:$0xff] %vm1777_vm0, %v2788_v8  ;;  %v2313_v54 = vmul.f32 0.5, %v2281_v42  ;;  %v1658_v32 = vpop.xlane.xlu0 %1657  ;;  %v7812_v8 = vld [vmem:[#allocation31_spill] sm:$0xff] }
 0x2af   : > { %v2532_v53 = vpop.xlane.xlu1 %2531  ;;  %v2785_v51 = vadd.f32 %v6778_v45, %v2751_v58  ;;  %v1830_v25 = vsub.f32 %v1658_v32, %v6480_v59  ;;  %v7813_v32 = vld [vmem:[#allocation10_spill] sm:$0xff] }
 0x2b0   : > { %v2347_v29 = vadd.f32 %v6431_v43, %v2313_v54  ;;  %v2720_v22 = vsub.f32 %v2532_v53, %v7808_v63 }
 0x2b1   : > { %4554 = vst.msk [vmem:[%s6417_s30 + $0x220] sm:$0xff] %vm1777_vm0, %v2785_v51  ;;  %v1862_v17 = vmul.f32 0.5, %v1830_v25 }
 0x2b2   : > { %4440 = vst.msk [vmem:[%s6417_s30 + $0x198] sm:$0xff] %vm1777_vm0, %v2347_v29  ;;  %v2752_v36 = vmul.f32 0.5, %v2720_v22  ;;  %v2542_v5 = vpop.xlane.xlu0 %2541 }
 0x2b3   : > { %v1660_v57 = vpop.xlane.xlu1 %1659  ;;  %v1896_v49 = vadd.f32 %v6403_v15, %v1862_v17  ;;  %v2725_v16 = vsub.f32 %v2542_v5, %v7809_v38  ;;  %v7814_v5 = vld [vmem:[#allocation9_spill] sm:$0xff] }
 0x2b4   : > { %v2786_v41 = vadd.f32 %v6778_v45, %v2752_v36  ;;  %v1831_v7 = vsub.f32 %v1660_v57, %v6491_v61 }
 0x2b5   : > { %1928 = vst.msk [vmem:[%s6417_s30 + $0xa0] sm:$0xff] %vm1777_vm0, %v1896_v49  ;;  %v2757_v6 = vmul.f32 0.5, %v2725_v16 }
 0x2b6   : > { %4555 = vst.msk [vmem:[%s6417_s30 + $0x228] sm:$0xff] %vm1777_vm0, %v2786_v41  ;;  %v1863_v59 = vmul.f32 0.5, %v1831_v7  ;;  %v2109_v30 = vpop.xlane.xlu0 %2108 }
 0x2b7   : > { %v2544_v12 = vpop.xlane.xlu1 %2543  ;;  %v2791_v11 = vadd.f32 %v6778_v45, %v2757_v6  ;;  %v2282_v61 = vsub.f32 %v2109_v30, %v7811_v56  ;;  %v7815_v6 = vld [vmem:[#allocation11_spill] sm:$0xff] }
 0x2b8   : > { %v1897_v47 = vadd.f32 %v6403_v15, %v1863_v59  ;;  %v2726_v31 = vsub.f32 %v2544_v12, %v7810_v4 }
 0x2b9   : > { %4560 = vst.msk [vmem:[%s6417_s30 + $0x250] sm:$0xff] %vm1777_vm0, %v2791_v11  ;;  %v2314_v14 = vmul.f32 0.5, %v2282_v61 }
 0x2ba   : > { %1929 = vst.msk [vmem:[%s6417_s30 + $0xa8] sm:$0xff] %vm1777_vm0, %v1897_v47  ;;  %v2758_v48 = vmul.f32 0.5, %v2726_v31  ;;  %v2538_v34 = vpop.xlane.xlu0 %2537 }
 0x2bb   : > { %v2111_v55 = vpop.xlane.xlu1 %2110  ;;  %v2348_v37 = vadd.f32 %v6431_v43, %v2314_v14  ;;  %v2723_v3 = vsub.f32 %v2538_v34, %v7812_v8  ;;  %v7817_v8 = vld [vmem:[#allocation14_spill] sm:$0xff] }
 0x2bc   : > { %v2792_v28 = vadd.f32 %v6778_v45, %v2758_v48  ;;  %v2283_v19 = vsub.f32 %v2111_v55, %v6513_v23  ;;  %v7816_v48 = vld [vmem:[#allocation12_spill] sm:$0xff] }
 0x2bd   : > { %4441 = vst.msk [vmem:[%s6417_s30 + $0x1a0] sm:$0xff] %vm1777_vm0, %v2348_v37  ;;  %v2755_v33 = vmul.f32 0.5, %v2723_v3 }
 0x2be   : > { %4561 = vst.msk [vmem:[%s6417_s30 + $0x258] sm:$0xff] %vm1777_vm0, %v2792_v28  ;;  %v2315_v42 = vmul.f32 0.5, %v2283_v19  ;;  %v1662_v54 = vpop.xlane.xlu0 %1661 }
 0x2bf   : > { %v2540_v39 = vpop.xlane.xlu1 %2539  ;;  %v2789_v53 = vadd.f32 %v6778_v45, %v2755_v33  ;;  %v1832_v23 = vsub.f32 %v1662_v54, %v6524_v44 }
 0x2c0   : > { %v2349_v58 = vadd.f32 %v6431_v43, %v2315_v42  ;;  %v2724_v29 = vsub.f32 %v2540_v39, %v7813_v32 }
 0x2c1   : > { %4558 = vst.msk [vmem:[%s6417_s30 + $0x240] sm:$0xff] %vm1777_vm0, %v2789_v53  ;;  %v1864_v63 = vmul.f32 0.5, %v1832_v23 }
 0x2c2   : > { %4442 = vst.msk [vmem:[%s6417_s30 + $0x1a8] sm:$0xff] %vm1777_vm0, %v2349_v58  ;;  %v2756_v51 = vmul.f32 0.5, %v2724_v29  ;;  %v2550_v25 = vpop.xlane.xlu0 %2549  ;;  %v7818_v29 = vld [vmem:[#allocation13_spill] sm:$0xff] }
 0x2c3   : > { %v1664_v22 = vpop.xlane.xlu1 %1663  ;;  %v1898_v17 = vadd.f32 %v6403_v15, %v1864_v63  ;;  %v2729_v41 = vsub.f32 %v2550_v25, %v7814_v5 }
 0x2c4   : > { %v2790_v36 = vadd.f32 %v6778_v45, %v2756_v51  ;;  %v1833_v57 = vsub.f32 %v1664_v22, %v6536_v46 }
 0x2c5   : > { %1930 = vst.msk [vmem:[%s6417_s30 + $0xb0] sm:$0xff] %vm1777_vm0, %v1898_v17  ;;  %v2761_v49 = vmul.f32 0.5, %v2729_v41  ;;  %v7819_v17 = vld [vmem:[#allocation18_spill] sm:$0xff] }
 0x2c6   : > { %4559 = vst.msk [vmem:[%s6417_s30 + $0x248] sm:$0xff] %vm1777_vm0, %v2790_v36  ;;  %v1865_v44 = vmul.f32 0.5, %v1833_v57  ;;  %v2113_v38 = vpop.xlane.xlu0 %2112 }
 0x2c7   : > { %v2552_v7 = vpop.xlane.xlu1 %2551  ;;  %v2795_v59 = vadd.f32 %v6778_v45, %v2761_v49  ;;  %v2284_v46 = vsub.f32 %v2113_v38, %v6548_v35 }
 0x2c8   : > { %v1899_v16 = vadd.f32 %v6403_v15, %v1865_v44  ;;  %v2730_v12 = vsub.f32 %v2552_v7, %v7815_v6 }
 0x2c9   : > { %4564 = vst.msk [vmem:[%s6417_s30 + $0x270] sm:$0xff] %vm1777_vm0, %v2795_v59  ;;  %v2316_v47 = vmul.f32 0.5, %v2284_v46  ;;  %v7820_v59 = vld [vmem:[#allocation16_spill] sm:$0xff] }
 0x2ca   : > { %1931 = vst.msk [vmem:[%s6417_s30 + $0xb8] sm:$0xff] %vm1777_vm0, %v1899_v16  ;;  %v2762_v30 = vmul.f32 0.5, %v2730_v12  ;;  %v2546_v4 = vpop.xlane.xlu0 %2545 }
 0x2cb   : > { %v2115_v11 = vpop.xlane.xlu1 %2114  ;;  %v2350_v56 = vadd.f32 %v6431_v43, %v2316_v47  ;;  %v2727_v14 = vsub.f32 %v2546_v4, %v7816_v48  ;;  %v7821_v4 = vld [vmem:[#allocation15_spill] sm:$0xff] }
 0x2cc   : > { %v2796_v31 = vadd.f32 %v6778_v45, %v2762_v30  ;;  %v2285_v61 = vsub.f32 %v2115_v11, %v6560_v20 }
 0x2cd   : > { %4443 = vst.msk [vmem:[%s6417_s30 + $0x1b0] sm:$0xff] %vm1777_vm0, %v2350_v56  ;;  %v2759_v55 = vmul.f32 0.5, %v2727_v14 }
 0x2ce   : > { %4565 = vst.msk [vmem:[%s6417_s30 + $0x278] sm:$0xff] %vm1777_vm0, %v2796_v31  ;;  %v2317_v35 = vmul.f32 0.5, %v2285_v61  ;;  %v1666_v28 = vpop.xlane.xlu0 %1665 }
 0x2cf   : > { %v2548_v34 = vpop.xlane.xlu1 %2547  ;;  %v2793_v19 = vadd.f32 %v6778_v45, %v2759_v55  ;;  %v1834_v20 = vsub.f32 %v1666_v28, %v6572_v2  ;;  %v7822_v28 = vld [vmem:[#allocation32_spill] sm:$0xff] }
 0x2d0   : > { %v2351_v37 = vadd.f32 %v6431_v43, %v2317_v35  ;;  %v2728_v3 = vsub.f32 %v2548_v34, %v7817_v8 }
 0x2d1   : > { %4562 = vst.msk [vmem:[%s6417_s30 + $0x260] sm:$0xff] %vm1777_vm0, %v2793_v19  ;;  %v1866_v33 = vmul.f32 0.5, %v1834_v20 }
 0x2d2   : > { %4444 = vst.msk [vmem:[%s6417_s30 + $0x1b8] sm:$0xff] %vm1777_vm0, %v2351_v37  ;;  %v2760_v42 = vmul.f32 0.5, %v2728_v3  ;;  %v2558_v54 = vpop.xlane.xlu0 %2557 }
 0x2d3   : > { %v1668_v39 = vpop.xlane.xlu1 %1667  ;;  %v1900_v53 = vadd.f32 %v6403_v15, %v1866_v33  ;;  %v2733_v23 = vsub.f32 %v2558_v54, %v7818_v29  ;;  %v7823_v33 = vld [vmem:[#allocation20_spill] sm:$0xff] }
 0x2d4   : > { %v2794_v58 = vadd.f32 %v6778_v45, %v2760_v42  ;;  %v1835_v32 = vsub.f32 %v1668_v39, %v6585_v50 }
 0x2d5   : > { %1932 = vst.msk [vmem:[%s6417_s30 + $0xc0] sm:$0xff] %vm1777_vm0, %v1900_v53  ;;  %v2765_v51 = vmul.f32 0.5, %v2733_v23 }
 0x2d6   : > { %4563 = vst.msk [vmem:[%s6417_s30 + $0x268] sm:$0xff] %vm1777_vm0, %v2794_v58  ;;  %v1867_v2 = vmul.f32 0.5, %v1835_v32  ;;  %v2117_v22 = vpop.xlane.xlu0 %2116 }
 0x2d7   : > { %v2560_v63 = vpop.xlane.xlu1 %2559  ;;  %v2799_v36 = vadd.f32 %v6778_v45, %v2765_v51  ;;  %v2286_v50 = vsub.f32 %v2117_v22, %v6597_v24  ;;  %v7824_v51 = vld [vmem:[#allocation36_spill] sm:$0xff] }
 0x2d8   : > { %v1901_v25 = vadd.f32 %v6403_v15, %v1867_v2  ;;  %v2734_v57 = vsub.f32 %v2560_v63, %v7819_v17 }
 0x2d9   : > { %4568 = vst.msk [vmem:[%s6417_s30 + $0x290] sm:$0xff] %vm1777_vm0, %v2799_v36  ;;  %v2318_v41 = vmul.f32 0.5, %v2286_v50  ;;  %v7825_v50 = vld [vmem:[#allocation37_spill] sm:$0xff] }
 0x2da   : > { %1933 = vst.msk [vmem:[%s6417_s30 + $0xc8] sm:$0xff] %vm1777_vm0, %v1901_v25  ;;  %v2766_v5 = vmul.f32 0.5, %v2734_v57  ;;  %v2554_v49 = vpop.xlane.xlu0 %2553 }
 0x2db   : > { %v2119_v44 = vpop.xlane.xlu1 %2118  ;;  %v2352_v38 = vadd.f32 %v6431_v43, %v2318_v41  ;;  %v2731_v6 = vsub.f32 %v2554_v49, %v7820_v59 }
 0x2dc   : > { %v2800_v7 = vadd.f32 %v6778_v45, %v2766_v5  ;;  %v2287_v16 = vsub.f32 %v2119_v44, %v6610_v1 }
 0x2dd   : > { %4445 = vst.msk [vmem:[%s6417_s30 + $0x1c0] sm:$0xff] %vm1777_vm0, %v2352_v38  ;;  %v2763_v12 = vmul.f32 0.5, %v2731_v6  ;;  %v7826_v6 = vld [vmem:[#allocation39_spill] sm:$0xff] }
 0x2de   : > { %4569 = vst.msk [vmem:[%s6417_s30 + $0x298] sm:$0xff] %vm1777_vm0, %v2800_v7  ;;  %v2319_v24 = vmul.f32 0.5, %v2287_v16  ;;  %v1670_v30 = vpop.xlane.xlu0 %1669 }
 0x2df   : > { %v2556_v46 = vpop.xlane.xlu1 %2555  ;;  %v2797_v11 = vadd.f32 %v6778_v45, %v2763_v12  ;;  %v1836_v1 = vsub.f32 %v1670_v30, %v6623_v40 }
 0x2e0   : > { %v2353_v47 = vadd.f32 %v6431_v43, %v2319_v24  ;;  %v2732_v31 = vsub.f32 %v2556_v46, %v7821_v4  ;;  %v7827_v4 = vld [vmem:[#allocation41_spill] sm:$0xff] }
 0x2e1   : > { %4566 = vst.msk [vmem:[%s6417_s30 + $0x280] sm:$0xff] %vm1777_vm0, %v2797_v11  ;;  %v1868_v61 = vmul.f32 0.5, %v1836_v1 }
 0x2e2   : > { %4446 = vst.msk [vmem:[%s6417_s30 + $0x1c8] sm:$0xff] %vm1777_vm0, %v2353_v47  ;;  %v2764_v56 = vmul.f32 0.5, %v2732_v31  ;;  %v2566_v14 = vpop.xlane.xlu0 %2565 }
 0x2e3   : > { %v1672_v48 = vpop.xlane.xlu1 %1671  ;;  %v1902_v55 = vadd.f32 %v6403_v15, %v1868_v61  ;;  %v2737_v37 = vsub.f32 %v2566_v14, %v7822_v28 }
 0x2e4   : > { %v2798_v35 = vadd.f32 %v6778_v45, %v2764_v56  ;;  %v1837_v34 = vsub.f32 %v1672_v48, %v6636_v9 }
 0x2e5   : > { %1934 = vst.msk [vmem:[%s6417_s30 + $0xd0] sm:$0xff] %vm1777_vm0, %v1902_v55  ;;  %v2769_v19 = vmul.f32 0.5, %v2737_v37 }
 0x2e6   : > { %4567 = vst.msk [vmem:[%s6417_s30 + $0x288] sm:$0xff] %vm1777_vm0, %v2798_v35  ;;  %v1869_v40 = vmul.f32 0.5, %v1837_v34  ;;  %v2121_v3 = vpop.xlane.xlu0 %2120  ;;  %v7828_v34 = vld [vmem:[#allocation43_spill] sm:$0xff] }
 0x2e7   : > { %v2568_v8 = vpop.xlane.xlu1 %2567  ;;  %v2803_v42 = vadd.f32 %v6778_v45, %v2769_v19  ;;  %v2288_v9 = vsub.f32 %v2121_v3, %v6649_v27 }
 0x2e8   : > { %v1903_v20 = vadd.f32 %v6403_v15, %v1869_v40  ;;  %v2738_v39 = vsub.f32 %v2568_v8, %v7823_v33 }
 0x2e9   : > { %4572 = vst.msk [vmem:[%s6417_s30 + $0x2b0] sm:$0xff] %vm1777_vm0, %v2803_v42  ;;  %v2320_v58 = vmul.f32 0.5, %v2288_v9 }
 0x2ea   : > { %1935 = vst.msk [vmem:[%s6417_s30 + $0xd8] sm:$0xff] %vm1777_vm0, %v1903_v20  ;;  %v2770_v54 = vmul.f32 0.5, %v2738_v39  ;;  %v2562_v32 = vpop.xlane.xlu0 %2561  ;;  %v7829_v20 = vld [vmem:[#allocation44_spill] sm:$0xff] }
 0x2eb   : > { %v2123_v53 = vpop.xlane.xlu1 %2122  ;;  %v2354_v23 = vadd.f32 %v6431_v43, %v2320_v58  ;;  %v2735_v63 = vsub.f32 %v2562_v32, %v7824_v51 }
 0x2ec   : > { %v2804_v29 = vadd.f32 %v6778_v45, %v2770_v54  ;;  %v2289_v2 = vsub.f32 %v2123_v53, %v6662_v62 }
 0x2ed   : > { %4447 = vst.msk [vmem:[%s6417_s30 + $0x1d0] sm:$0xff] %vm1777_vm0, %v2354_v23  ;;  %v2767_v22 = vmul.f32 0.5, %v2735_v63 }
 0x2ee   : > { %4573 = vst.msk [vmem:[%s6417_s30 + $0x2b8] sm:$0xff] %vm1777_vm0, %v2804_v29  ;;  %v2321_v27 = vmul.f32 0.5, %v2289_v2  ;;  %v1674_v36 = vpop.xlane.xlu0 %1673 }
 0x2ef   : > { %v2564_v25 = vpop.xlane.xlu1 %2563  ;;  %v2801_v57 = vadd.f32 %v6778_v45, %v2767_v22  ;;  %v1838_v62 = vsub.f32 %v1674_v36, %v6675_v52 }
 0x2f0   : > { %v2355_v17 = vadd.f32 %v6431_v43, %v2321_v27  ;;  %v2736_v5 = vsub.f32 %v2564_v25, %v7825_v50  ;;  %v7830_v25 = vld [vmem:[#allocation51_spill] sm:$0xff] }
 0x2f1   : > { %4570 = vst.msk [vmem:[%s6417_s30 + $0x2a0] sm:$0xff] %vm1777_vm0, %v2801_v57  ;;  %v1870_v44 = vmul.f32 0.5, %v1838_v62 }
 0x2f2   : > { %4448 = vst.msk [vmem:[%s6417_s30 + $0x1d8] sm:$0xff] %vm1777_vm0, %v2355_v17  ;;  %v2768_v41 = vmul.f32 0.5, %v2736_v5  ;;  %v2574_v7 = vpop.xlane.xlu0 %2573  ;;  %v7831_v5 = vld [vmem:[#allocation52_spill] sm:$0xff] }
 0x2f3   : > { %v1676_v49 = vpop.xlane.xlu1 %1675  ;;  %v1904_v16 = vadd.f32 %v6403_v15, %v1870_v44  ;;  %v2741_v24 = vsub.f32 %v2574_v7, %v7826_v6 }
 0x2f4   : > { %v2802_v38 = vadd.f32 %v6778_v45, %v2768_v41  ;;  %v1839_v59 = vsub.f32 %v1676_v49, %v6688_v60 }
 0x2f5   : > { %1936 = vst.msk [vmem:[%s6417_s30 + $0xe0] sm:$0xff] %vm1777_vm0, %v1904_v16  ;;  %v2773_v12 = vmul.f32 0.5, %v2741_v24 }
 0x2f6   : > { %4571 = vst.msk [vmem:[%s6417_s30 + $0x2a8] sm:$0xff] %vm1777_vm0, %v2802_v38  ;;  %v1871_v52 = vmul.f32 0.5, %v1839_v59  ;;  %v2125_v30 = vpop.xlane.xlu0 %2124  ;;  %v7833_v59 = vld [vmem:[#allocation48_spill] sm:$0xff] }
 0x2f7   : > { %v2576_v46 = vpop.xlane.xlu1 %2575  ;;  %v2807_v11 = vadd.f32 %v6778_v45, %v2773_v12  ;;  %v2290_v60 = vsub.f32 %v2125_v30, %v6701_v13  ;;  %v3084_v12 = vld [vmem:[%s5470_s26 + $0x8] sm:$0xff] (%p4999_p9)  ;;  %v3090_v30 = vld [vmem:[%s5470_s26 + $0x20] sm:$0xff] (%p4999_p9) }
 0x2f8   : > { %v1905_v47 = vadd.f32 %v6403_v15, %v1871_v52  ;;  %v2742_v31 = vsub.f32 %v2576_v46, %v7827_v4  ;;  %v3082_v52 = vld [vmem:[%s5470_s26] sm:$0xff] (%p4999_p9)  ;;  %v3086_v46 = vld [vmem:[%s5470_s26 + $0x10] sm:$0xff] (%p4999_p9)  ;;  %3085 = vst [vmem:[%s7043_s15 + $0x8] sm:$0xff] (%p4999_p9), %v3084_v12  ;;  %3091 = vst [vmem:[%s7043_s15 + $0x20] sm:$0xff] (%p4999_p9), %v3090_v30 }
 0x2f9   : > { %4576 = vst.msk [vmem:[%s6417_s30 + $0x2d0] sm:$0xff] %vm1777_vm0, %v2807_v11  ;;  %v2322_v56 = vmul.f32 0.5, %v2290_v60  ;;  %3083 = vst [vmem:[%s7043_s15] sm:$0xff] (%p4999_p9), %v3082_v52  ;;  %v3094_v11 = vld [vmem:[%s5470_s26 + $0x30] sm:$0xff] (%p4999_p9)  ;;  %v3096_v4 = vld [vmem:[%s5470_s26 + $0x38] sm:$0xff] (%p4999_p9) }
 0x2fa   : > { %1937 = vst.msk [vmem:[%s6417_s30 + $0xe8] sm:$0xff] %vm1777_vm0, %v1905_v47  ;;  %v2774_v1 = vmul.f32 0.5, %v2742_v31  ;;  %v2570_v48 = vpop.xlane.xlu0 %2569  ;;  %v3092_v47 = vld [vmem:[%s5470_s26 + $0x28] sm:$0xff] (%p4999_p9)  ;;  %3087 = vst [vmem:[%s7043_s15 + $0x10] sm:$0xff] (%p4999_p9), %v3086_v46  ;;  %v3098_v31 = vld [vmem:[%s5470_s26 + $0x40] sm:$0xff] (%p4999_p9) }
 0x2fb   : > { %v2127_v61 = vpop.xlane.xlu1 %2126  ;;  %v2356_v35 = vadd.f32 %v6431_v43, %v2322_v56  ;;  %v2739_v28 = vsub.f32 %v2570_v48, %v7828_v34  ;;  %3093 = vst [vmem:[%s7043_s15 + $0x28] sm:$0xff] (%p4999_p9), %v3092_v47  ;;  %3095 = vst [vmem:[%s7043_s15 + $0x30] sm:$0xff] (%p4999_p9), %v3094_v11  ;;  %v3100_v60 = vld [vmem:[%s5470_s26 + $0x48] sm:$0xff] (%p4999_p9)  ;;  %v3104_v56 = vld [vmem:[%s5470_s26 + $0x58] sm:$0xff] (%p4999_p9) }
 0x2fc   : > { %v2808_v14 = vadd.f32 %v6778_v45, %v2774_v1  ;;  %v2291_v55 = vsub.f32 %v2127_v61, %v6714_v0  ;;  %3097 = vst [vmem:[%s7043_s15 + $0x38] sm:$0xff] (%p4999_p9), %v3096_v4  ;;  %3099 = vst [vmem:[%s7043_s15 + $0x40] sm:$0xff] (%p4999_p9), %v3098_v31  ;;  %v3102_v1 = vld [vmem:[%s5470_s26 + $0x50] sm:$0xff] (%p4999_p9)  ;;  %v3106_v61 = vld [vmem:[%s5470_s26 + $0x60] sm:$0xff] (%p4999_p9) }
 0x2fd   : > { %4449 = vst.msk [vmem:[%s6417_s30 + $0x1e0] sm:$0xff] %vm1777_vm0, %v2356_v35  ;;  %v2771_v37 = vmul.f32 0.5, %v2739_v28  ;;  %3101 = vst [vmem:[%s7043_s15 + $0x48] sm:$0xff] (%p4999_p9), %v3100_v60  ;;  %v3108_v48 = vld [vmem:[%s5470_s26 + $0x68] sm:$0xff] (%p4999_p9)  ;;  %v3112_v35 = vld [vmem:[%s5470_s26 + $0x78] sm:$0xff] (%p4999_p9) }
 0x2fe   : > { %4577 = vst.msk [vmem:[%s6417_s30 + $0x2d8] sm:$0xff] %vm1777_vm0, %v2808_v14  ;;  %v2323_v13 = vmul.f32 0.5, %v2291_v55  ;;  %v1678_v19 = vpop.xlane.xlu0 %1677  ;;  %3103 = vst [vmem:[%s7043_s15 + $0x50] sm:$0xff] (%p4999_p9), %v3102_v1  ;;  %v3110_v14 = vld [vmem:[%s5470_s26 + $0x70] sm:$0xff] (%p4999_p9)  ;;  %v3114_v55 = vld [vmem:[%s5470_s26 + $0x80] sm:$0xff] (%p4999_p9) }
 0x2ff   : > { %v2572_v40 = vpop.xlane.xlu1 %2571  ;;  %v2805_v3 = vadd.f32 %v6778_v45, %v2771_v37  ;;  %v1840_v0 = vsub.f32 %v1678_v19, %v6727_v21  ;;  %3105 = vst [vmem:[%s7043_s15 + $0x58] sm:$0xff] (%p4999_p9), %v3104_v56  ;;  %3107 = vst [vmem:[%s7043_s15 + $0x60] sm:$0xff] (%p4999_p9), %v3106_v61  ;;  %v3116_v34 = vld [vmem:[%s5470_s26 + $0x88] sm:$0xff] (%p4999_p9)  ;;  %v3118_v28 = vld [vmem:[%s5470_s26 + $0x90] sm:$0xff] (%p4999_p9) }
 0x300   : > { %v2357_v8 = vadd.f32 %v6431_v43, %v2323_v13  ;;  %v2740_v42 = vsub.f32 %v2572_v40, %v7829_v20  ;;  %3109 = vst [vmem:[%s7043_s15 + $0x68] sm:$0xff] (%p4999_p9), %v3108_v48  ;;  %3111 = vst [vmem:[%s7043_s15 + $0x70] sm:$0xff] (%p4999_p9), %v3110_v14  ;;  %v3120_v13 = vld [vmem:[%s5470_s26 + $0x98] sm:$0xff] (%p4999_p9)  ;;  %v3122_v37 = vld [vmem:[%s5470_s26 + $0xa0] sm:$0xff] (%p4999_p9) }
 0x301   : > { %4574 = vst.msk [vmem:[%s6417_s30 + $0x2c0] sm:$0xff] %vm1777_vm0, %v2805_v3  ;;  %v1872_v39 = vmul.f32 0.5, %v1840_v0  ;;  %3113 = vst [vmem:[%s7043_s15 + $0x78] sm:$0xff] (%p4999_p9), %v3112_v35  ;;  %v3124_v40 = vld [vmem:[%s5470_s26 + $0xa8] sm:$0xff] (%p4999_p9)  ;;  %v3126_v19 = vld [vmem:[%s5470_s26 + $0xb0] sm:$0xff] (%p4999_p9) }
 0x302   : > { %4450 = vst.msk [vmem:[%s6417_s30 + $0x1e8] sm:$0xff] %vm1777_vm0, %v2357_v8  ;;  %v2772_v33 = vmul.f32 0.5, %v2740_v42  ;;  %v2129_v54 = vpop.xlane.xlu0 %2128  ;;  %3115 = vst [vmem:[%s7043_s15 + $0x80] sm:$0xff] (%p4999_p9), %v3114_v55  ;;  %v3128_v8 = vld [vmem:[%s5470_s26 + $0xb8] sm:$0xff] (%p4999_p9)  ;;  %v3130_v3 = vld [vmem:[%s5470_s26 + $0xc0] sm:$0xff] (%p4999_p9) }
 0x303   : > { %v1680_v9 = vpop.xlane.xlu1 %1679  ;;  %v1906_v53 = vadd.f32 %v6403_v15, %v1872_v39  ;;  %v2292_v29 = vsub.f32 %v2129_v54, %v6749_v18  ;;  %3117 = vst [vmem:[%s7043_s15 + $0x88] sm:$0xff] (%p4999_p9), %v3116_v34  ;;  %3119 = vst [vmem:[%s7043_s15 + $0x90] sm:$0xff] (%p4999_p9), %v3118_v28  ;;  %v3132_v20 = vld [vmem:[%s5470_s26 + $0xc8] sm:$0xff] (%p4999_p9)  ;;  %v3134_v42 = vld [vmem:[%s5470_s26 + $0xd0] sm:$0xff] (%p4999_p9) }
 0x304   : > { %v2806_v58 = vadd.f32 %v6778_v45, %v2772_v33  ;;  %v1841_v32 = vsub.f32 %v1680_v9, %v6738_v10  ;;  %3121 = vst [vmem:[%s7043_s15 + $0x98] sm:$0xff] (%p4999_p9), %v3120_v13  ;;  %3123 = vst [vmem:[%s7043_s15 + $0xa0] sm:$0xff] (%p4999_p9), %v3122_v37  ;;  %v3136_v0 = vld [vmem:[%s5470_s26 + $0xd8] sm:$0xff] (%p4999_p9)  ;;  %v3138_v33 = vld [vmem:[%s5470_s26 + $0xe0] sm:$0xff] (%p4999_p9) }
 0x305   : > { %1938 = vst.msk [vmem:[%s6417_s30 + $0xf0] sm:$0xff] %vm1777_vm0, %v1906_v53  ;;  %v2324_v23 = vmul.f32 0.5, %v2292_v29  ;;  %3125 = vst [vmem:[%s7043_s15 + $0xa8] sm:$0xff] (%p4999_p9), %v3124_v40  ;;  %v3140_v39 = vld [vmem:[%s5470_s26 + $0xe8] sm:$0xff] (%p4999_p9)  ;;  %v3142_v9 = vld [vmem:[%s5470_s26 + $0xf0] sm:$0xff] (%p4999_p9) }
 0x306   : > { %4575 = vst.msk [vmem:[%s6417_s30 + $0x2c8] sm:$0xff] %vm1777_vm0, %v2806_v58  ;;  %v1873_v21 = vmul.f32 0.5, %v1841_v32  ;;  %v2578_v51 = vpop.xlane.xlu0 %2577  ;;  %3127 = vst [vmem:[%s7043_s15 + $0xb0] sm:$0xff] (%p4999_p9), %v3126_v19  ;;  %v3144_v54 = vld [vmem:[%s5470_s26 + $0xf8] sm:$0xff] (%p4999_p9)  ;;  %v3146_v58 = vld [vmem:[%s5470_s26 + $0x100] sm:$0xff] (%p4999_p9) }
 0x307   : > { %v2131_v2 = vpop.xlane.xlu1 %2130  ;;  %v2358_v27 = vadd.f32 %v6431_v43, %v2324_v23  ;;  %v2743_v10 = vsub.f32 %v2578_v51, %v7830_v25  ;;  %3129 = vst [vmem:[%s7043_s15 + $0xb8] sm:$0xff] (%p4999_p9), %v3128_v8  ;;  %3131 = vst [vmem:[%s7043_s15 + $0xc0] sm:$0xff] (%p4999_p9), %v3130_v3  ;;  %v3148_v53 = vld [vmem:[%s5470_s26 + $0x108] sm:$0xff] (%p4999_p9)  ;;  %v3150_v32 = vld [vmem:[%s5470_s26 + $0x110] sm:$0xff] (%p4999_p9) }
 0x308   : > { %v1907_v63 = vadd.f32 %v6403_v15, %v1873_v21  ;;  %v2293_v22 = vsub.f32 %v2131_v2, %v6758_v26  ;;  %v7832_v26 = vld [vmem:[#allocation47_spill] sm:$0xff]  ;;  %3133 = vst [vmem:[%s7043_s15 + $0xc8] sm:$0xff] (%p4999_p9), %v3132_v20  ;;  %3135 = vst [vmem:[%s7043_s15 + $0xd0] sm:$0xff] (%p4999_p9), %v3134_v42  ;;  %v3154_v21 = vld [vmem:[%s5470_s26 + $0x120] sm:$0xff] (%p4999_p9) }
 0x309   : > { %4451 = vst.msk [vmem:[%s6417_s30 + $0x1f0] sm:$0xff] %vm1777_vm0, %v2358_v27  ;;  %v2775_v36 = vmul.f32 0.5, %v2743_v10  ;;  %3137 = vst [vmem:[%s7043_s15 + $0xd8] sm:$0xff] (%p4999_p9), %v3136_v0  ;;  %v3152_v29 = vld [vmem:[%s5470_s26 + $0x118] sm:$0xff] (%p4999_p9)  ;;  %v3156_v23 = vld [vmem:[%s5470_s26 + $0x128] sm:$0xff] (%p4999_p9) }
 0x30a   : > { %1939 = vst.msk [vmem:[%s6417_s30 + $0xf8] sm:$0xff] %vm1777_vm0, %v1907_v63  ;;  %v2325_v18 = vmul.f32 0.5, %v2293_v22  ;;  %v2582_v57 = vpop.xlane.xlu0 %2581  ;;  %3139 = vst [vmem:[%s7043_s15 + $0xe0] sm:$0xff] (%p4999_p9), %v3138_v33  ;;  %v3158_v2 = vld [vmem:[%s5470_s26 + $0x130] sm:$0xff] (%p4999_p9)  ;;  %v3160_v51 = vld [vmem:[%s5470_s26 + $0x138] sm:$0xff] (%p4999_p9) }
 0x30b   : > { %v2580_v17 = vpop.xlane.xlu1 %2579  ;;  %v2809_v15 = vadd.f32 %v6778_v45, %v2775_v36  ;;  %v2745_v41 = vsub.f32 %v2582_v57, %v7832_v26  ;;  %3141 = vst [vmem:[%s7043_s15 + $0xe8] sm:$0xff] (%p4999_p9), %v3140_v39  ;;  %3143 = vst [vmem:[%s7043_s15 + $0xf0] sm:$0xff] (%p4999_p9), %v3142_v9  ;;  %v3162_v63 = vld [vmem:[%s5470_s26 + $0x140] sm:$0xff] (%p4999_p9)  ;;  %v3164_v27 = vld [vmem:[%s5470_s26 + $0x148] sm:$0xff] (%p4999_p9) }
 0x30c   : > { %v2359_v50 = vadd.f32 %v6431_v43, %v2325_v18  ;;  %v2744_v62 = vsub.f32 %v2580_v17, %v7831_v5  ;;  %3145 = vst [vmem:[%s7043_s15 + $0xf8] sm:$0xff] (%p4999_p9), %v3144_v54  ;;  %3147 = vst [vmem:[%s7043_s15 + $0x200] sm:$0xff] (%p4999_p9), %v3146_v58  ;;  %v3166_v22 = vld [vmem:[%s5470_s26 + $0x150] sm:$0xff] (%p4999_p9)  ;;  %v3168_v25 = vld [vmem:[%s5470_s26 + $0x158] sm:$0xff] (%p4999_p9) }
 0x30d   : > { %4578 = vst.msk [vmem:[%s6417_s30 + $0x2e0] sm:$0xff] %vm1777_vm0, %v2809_v15  ;;  %v2777_v49 = vmul.f32 0.5, %v2745_v41  ;;  %3149 = vst [vmem:[%s7043_s15 + $0x208] sm:$0xff] (%p4999_p9), %v3148_v53  ;;  %v3170_v10 = vld [vmem:[%s5470_s26 + $0x160] sm:$0xff] (%p4999_p9)  ;;  %v3172_v18 = vld [vmem:[%s5470_s26 + $0x168] sm:$0xff] (%p4999_p9) }
 0x30e   : > { %4452 = vst.msk [vmem:[%s6417_s30 + $0x1f8] sm:$0xff] %vm1777_vm0, %v2359_v50  ;;  %v2776_v44 = vmul.f32 0.5, %v2744_v62  ;;  %3151 = vst [vmem:[%s7043_s15 + $0x210] sm:$0xff] (%p4999_p9), %v3150_v32  ;;  %v3174_v36 = vld [vmem:[%s5470_s26 + $0x170] sm:$0xff] (%p4999_p9)  ;;  %v3176_v17 = vld [vmem:[%s5470_s26 + $0x178] sm:$0xff] (%p4999_p9) }
 0x30f   : > { %v2584_v7 = vpop.xlane.xlu1 %2583  ;;  %v2811_v16 = vadd.f32 %v6778_v45, %v2777_v49  ;;  %3153 = vst [vmem:[%s7043_s15 + $0x218] sm:$0xff] (%p4999_p9), %v3152_v29  ;;  %3155 = vst [vmem:[%s7043_s15 + $0x220] sm:$0xff] (%p4999_p9), %v3154_v21  ;;  %v3178_v57 = vld [vmem:[%s5470_s26 + $0x180] sm:$0xff] (%p4999_p9)  ;;  %v3180_v50 = vld [vmem:[%s5470_s26 + $0x188] sm:$0xff] (%p4999_p9) }
 0x310   : > { %v2810_v38 = vadd.f32 %v6778_v45, %v2776_v44  ;;  %v2746_v43 = vsub.f32 %v2584_v7, %v7833_v59  ;;  %3157 = vst [vmem:[%s7043_s15 + $0x228] sm:$0xff] (%p4999_p9), %v3156_v23  ;;  %3159 = vst [vmem:[%s7043_s15 + $0x230] sm:$0xff] (%p4999_p9), %v3158_v2  ;;  %v3182_v15 = vld [vmem:[%s5470_s26 + $0x190] sm:$0xff] (%p4999_p9)  ;;  %v3184_v5 = vld [vmem:[%s5470_s26 + $0x198] sm:$0xff] (%p4999_p9) }
 0x311   : > { %4580 = vst.msk [vmem:[%s6417_s30 + $0x2f0] sm:$0xff] %vm1777_vm0, %v2811_v16  ;;  %3161 = vst [vmem:[%s7043_s15 + $0x238] sm:$0xff] (%p4999_p9), %v3160_v51  ;;  %v3186_v62 = vld [vmem:[%s5470_s26 + $0x1a0] sm:$0xff] (%p4999_p9)  ;;  %v3188_v26 = vld [vmem:[%s5470_s26 + $0x1a8] sm:$0xff] (%p4999_p9) }
 0x312   : > { %4579 = vst.msk [vmem:[%s6417_s30 + $0x2e8] sm:$0xff] %vm1777_vm0, %v2810_v38  ;;  %v2778_v6 = vmul.f32 0.5, %v2746_v43  ;;  %2860 = sbr.rel (!%p4999_p9) target bundleno = 816 (0x330), region = 44  ;;  %3163 = vst [vmem:[%s7043_s15 + $0x240] sm:$0xff] (%p4999_p9), %v3162_v63  ;;  %v3190_v41 = vld [vmem:[%s5470_s26 + $0x1b0] sm:$0xff] (%p4999_p9)  ;;  %v3192_v44 = vld [vmem:[%s5470_s26 + $0x1b8] sm:$0xff] (%p4999_p9) }
 0x313   : > { %3165 = vst [vmem:[%s7043_s15 + $0x248] sm:$0xff] (%p4999_p9), %v3164_v27  ;;  %3167 = vst [vmem:[%s7043_s15 + $0x250] sm:$0xff] (%p4999_p9), %v3166_v22  ;;  %v3194_v49 = vld [vmem:[%s5470_s26 + $0x1c0] sm:$0xff] (%p4999_p9)  ;;  %v3196_v7 = vld [vmem:[%s5470_s26 + $0x1c8] sm:$0xff] (%p4999_p9) }
 0x314   : > { %v2812_v24 = vadd.f32 %v6778_v45, %v2778_v6  ;;  %v3088_v45 = vld [vmem:[%s5470_s26 + $0x18] sm:$0xff] (%p4999_p9)  ;;  %3169 = vst [vmem:[%s7043_s15 + $0x258] sm:$0xff] (%p4999_p9), %v3168_v25  ;;  %3171 = vst [vmem:[%s7043_s15 + $0x260] sm:$0xff] (%p4999_p9), %v3170_v10  ;;  %v3198_v38 = vld [vmem:[%s5470_s26 + $0x1d0] sm:$0xff] (%p4999_p9) }
 0x315   : > { %3089 = vst [vmem:[%s7043_s15 + $0x18] sm:$0xff] (%p4999_p9), %v3088_v45  ;;  %3173 = vst [vmem:[%s7043_s15 + $0x268] sm:$0xff] (%p4999_p9), %v3172_v18  ;;  %v3200_v16 = vld [vmem:[%s5470_s26 + $0x1d8] sm:$0xff] (%p4999_p9)  ;;  %v3202_v59 = vld [vmem:[%s5470_s26 + $0x1e0] sm:$0xff] (%p4999_p9) }
 0x316   : > { %4581 = vst.msk [vmem:[%s6417_s30 + $0x2f8] sm:$0xff] %vm1777_vm0, %v2812_v24  ;;  %3175 = vst [vmem:[%s7043_s15 + $0x270] sm:$0xff] (%p4999_p9), %v3174_v36  ;;  %v3204_v43 = vld [vmem:[%s5470_s26 + $0x1e8] sm:$0xff] (%p4999_p9)  ;;  %v3206_v6 = vld [vmem:[%s5470_s26 + $0x1f0] sm:$0xff] (%p4999_p9) }
 0x317   : > { %3177 = vst [vmem:[%s7043_s15 + $0x278] sm:$0xff] %v3176_v17  ;;  %3179 = vst [vmem:[%s7043_s15 + $0x280] sm:$0xff] %v3178_v57  ;;  %v3208_v24 = vld [vmem:[%s5470_s26 + $0x1f8] sm:$0xff]  ;;  %v3210_v52 = vld [vmem:[%s5470_s26 + $0x200] sm:$0xff] }
 0x318   : > { %3181 = vst [vmem:[%s7043_s15 + $0x288] sm:$0xff] %v3180_v50  ;;  %3183 = vst [vmem:[%s7043_s15 + $0x290] sm:$0xff] %v3182_v15  ;;  %v3212_v12 = vld [vmem:[%s5470_s26 + $0x208] sm:$0xff]  ;;  %v3214_v46 = vld [vmem:[%s5470_s26 + $0x210] sm:$0xff] }
 0x319   : > { %3185 = vst [vmem:[%s7043_s15 + $0x298] sm:$0xff] %v3184_v5  ;;  %3187 = vst [vmem:[%s7043_s15 + $0x2a0] sm:$0xff] %v3186_v62  ;;  %v3216_v45 = vld [vmem:[%s5470_s26 + $0x218] sm:$0xff]  ;;  %v3218_v30 = vld [vmem:[%s5470_s26 + $0x220] sm:$0xff] }
 0x31a   : > { %3189 = vst [vmem:[%s7043_s15 + $0x2a8] sm:$0xff] %v3188_v26  ;;  %3191 = vst [vmem:[%s7043_s15 + $0x2b0] sm:$0xff] %v3190_v41  ;;  %v3220_v47 = vld [vmem:[%s5470_s26 + $0x228] sm:$0xff]  ;;  %v3222_v11 = vld [vmem:[%s5470_s26 + $0x230] sm:$0xff] }
 0x31b   : > { %3193 = vst [vmem:[%s7043_s15 + $0x2b8] sm:$0xff] %v3192_v44  ;;  %3195 = vst [vmem:[%s7043_s15 + $0x2c0] sm:$0xff] %v3194_v49  ;;  %v3224_v4 = vld [vmem:[%s5470_s26 + $0x238] sm:$0xff]  ;;  %v3226_v31 = vld [vmem:[%s5470_s26 + $0x240] sm:$0xff] }
 0x31c   : > { %3197 = vst [vmem:[%s7043_s15 + $0x2c8] sm:$0xff] %v3196_v7  ;;  %3199 = vst [vmem:[%s7043_s15 + $0x2d0] sm:$0xff] %v3198_v38  ;;  %v3228_v60 = vld [vmem:[%s5470_s26 + $0x248] sm:$0xff]  ;;  %v3230_v1 = vld [vmem:[%s5470_s26 + $0x250] sm:$0xff] }
 0x31d   : > { %3201 = vst [vmem:[%s7043_s15 + $0x2d8] sm:$0xff] %v3200_v16  ;;  %3203 = vst [vmem:[%s7043_s15 + $0x2e0] sm:$0xff] %v3202_v59  ;;  %v3232_v56 = vld [vmem:[%s5470_s26 + $0x258] sm:$0xff]  ;;  %v3234_v61 = vld [vmem:[%s5470_s26 + $0x260] sm:$0xff] }
 0x31e   : > { %3205 = vst [vmem:[%s7043_s15 + $0x2e8] sm:$0xff] %v3204_v43  ;;  %3207 = vst [vmem:[%s7043_s15 + $0x2f0] sm:$0xff] %v3206_v6  ;;  %v3236_v48 = vld [vmem:[%s5470_s26 + $0x268] sm:$0xff]  ;;  %v3238_v14 = vld [vmem:[%s5470_s26 + $0x270] sm:$0xff] }
 0x31f   : > { %3209 = vst [vmem:[%s7043_s15 + $0x2f8] sm:$0xff] %v3208_v24  ;;  %3211 = vst [vmem:[%s7043_s15 + $0x400] sm:$0xff] %v3210_v52  ;;  %v3240_v35 = vld [vmem:[%s5470_s26 + $0x278] sm:$0xff]  ;;  %v3242_v55 = vld [vmem:[%s5470_s26 + $0x280] sm:$0xff] }
 0x320   : > { %3213 = vst [vmem:[%s7043_s15 + $0x408] sm:$0xff] %v3212_v12  ;;  %3215 = vst [vmem:[%s7043_s15 + $0x410] sm:$0xff] %v3214_v46  ;;  %v3244_v34 = vld [vmem:[%s5470_s26 + $0x288] sm:$0xff]  ;;  %v3246_v28 = vld [vmem:[%s5470_s26 + $0x290] sm:$0xff] }
 0x321   : > { %3217 = vst [vmem:[%s7043_s15 + $0x418] sm:$0xff] %v3216_v45  ;;  %3219 = vst [vmem:[%s7043_s15 + $0x420] sm:$0xff] %v3218_v30  ;;  %v3248_v13 = vld [vmem:[%s5470_s26 + $0x298] sm:$0xff]  ;;  %v3250_v37 = vld [vmem:[%s5470_s26 + $0x2a0] sm:$0xff] }
 0x322   : > { %3221 = vst [vmem:[%s7043_s15 + $0x428] sm:$0xff] %v3220_v47  ;;  %3223 = vst [vmem:[%s7043_s15 + $0x430] sm:$0xff] %v3222_v11  ;;  %v3252_v40 = vld [vmem:[%s5470_s26 + $0x2a8] sm:$0xff]  ;;  %v3254_v19 = vld [vmem:[%s5470_s26 + $0x2b0] sm:$0xff] }
 0x323   : > { %3225 = vst [vmem:[%s7043_s15 + $0x438] sm:$0xff] %v3224_v4  ;;  %3227 = vst [vmem:[%s7043_s15 + $0x440] sm:$0xff] %v3226_v31  ;;  %v3256_v8 = vld [vmem:[%s5470_s26 + $0x2b8] sm:$0xff]  ;;  %v3258_v3 = vld [vmem:[%s5470_s26 + $0x2c0] sm:$0xff] }
 0x324   : > { %3229 = vst [vmem:[%s7043_s15 + $0x448] sm:$0xff] %v3228_v60  ;;  %3231 = vst [vmem:[%s7043_s15 + $0x450] sm:$0xff] %v3230_v1  ;;  %v3260_v20 = vld [vmem:[%s5470_s26 + $0x2c8] sm:$0xff]  ;;  %v3262_v42 = vld [vmem:[%s5470_s26 + $0x2d0] sm:$0xff] }
 0x325   : > { %3233 = vst [vmem:[%s7043_s15 + $0x458] sm:$0xff] %v3232_v56  ;;  %3235 = vst [vmem:[%s7043_s15 + $0x460] sm:$0xff] %v3234_v61  ;;  %v3264_v0 = vld [vmem:[%s5470_s26 + $0x2d8] sm:$0xff]  ;;  %v3266_v33 = vld [vmem:[%s5470_s26 + $0x2e0] sm:$0xff] }
 0x326   : > { %3237 = vst [vmem:[%s7043_s15 + $0x468] sm:$0xff] %v3236_v48  ;;  %3239 = vst [vmem:[%s7043_s15 + $0x470] sm:$0xff] %v3238_v14  ;;  %v3268_v39 = vld [vmem:[%s5470_s26 + $0x2e8] sm:$0xff]  ;;  %v3270_v9 = vld [vmem:[%s5470_s26 + $0x2f0] sm:$0xff] }
 0x327   : > { %3241 = vst [vmem:[%s7043_s15 + $0x478] sm:$0xff] %v3240_v35  ;;  %3243 = vst [vmem:[%s7043_s15 + $0x480] sm:$0xff] %v3242_v55  ;;  %v3272_v54 = vld [vmem:[%s5470_s26 + $0x2f8] sm:$0xff] }
 0x328   : > { %3245 = vst [vmem:[%s7043_s15 + $0x488] sm:$0xff] %v3244_v34  ;;  %3247 = vst [vmem:[%s7043_s15 + $0x490] sm:$0xff] %v3246_v28 }
 0x329   : > { %3249 = vst [vmem:[%s7043_s15 + $0x498] sm:$0xff] %v3248_v13  ;;  %3251 = vst [vmem:[%s7043_s15 + $0x4a0] sm:$0xff] %v3250_v37 }
 0x32a   : > { %3253 = vst [vmem:[%s7043_s15 + $0x4a8] sm:$0xff] %v3252_v40  ;;  %3255 = vst [vmem:[%s7043_s15 + $0x4b0] sm:$0xff] %v3254_v19 }
 0x32b   : > { %3257 = vst [vmem:[%s7043_s15 + $0x4b8] sm:$0xff] %v3256_v8  ;;  %3259 = vst [vmem:[%s7043_s15 + $0x4c0] sm:$0xff] %v3258_v3 }
 0x32c   : > { %3261 = vst [vmem:[%s7043_s15 + $0x4c8] sm:$0xff] %v3260_v20  ;;  %3263 = vst [vmem:[%s7043_s15 + $0x4d0] sm:$0xff] %v3262_v42 }
 0x32d   : > { %3265 = vst [vmem:[%s7043_s15 + $0x4d8] sm:$0xff] %v3264_v0  ;;  %3267 = vst [vmem:[%s7043_s15 + $0x4e0] sm:$0xff] %v3266_v33 }
 0x32e   : > { %3269 = vst [vmem:[%s7043_s15 + $0x4e8] sm:$0xff] %v3268_v39  ;;  %3271 = vst [vmem:[%s7043_s15 + $0x4f0] sm:$0xff] %v3270_v9 }
 0x32f   : > { %3273 = vst [vmem:[%s7043_s15 + $0x4f8] sm:$0xff] %v3272_v54 }
 0x330 PF: > { %3279 = sbr.rel (!%p4999_p9) target bundleno = 866 (0x362), region = 82  ;;  %s4591_s18 = sshll.u32 (%p4999_p9), %s4987_s0, 8  ;;  %v3501_v58 = vld [vmem:[%s6417_s30] sm:$0xff] (%p4999_p9)  ;;  %v3503_v53 = vld [vmem:[%s6417_s30 + $0x8] sm:$0xff] (%p4999_p9)  ;;  %v3505_v32 = vld [vmem:[%s6417_s30 + $0x10] sm:$0xff] (%p4999_p9) }
 0x331   : > { %s7243_s22 = scalar_lea.vmem (%p4999_p9), %s7651_s7, %s4591_s18  ;;  %v3507_v29 = vld [vmem:[%s6417_s30 + $0x18] sm:$0xff] (%p4999_p9)  ;;  %v3509_v21 = vld [vmem:[%s6417_s30 + $0x20] sm:$0xff] (%p4999_p9)  ;;  %v3511_v23 = vld [vmem:[%s6417_s30 + $0x28] sm:$0xff] (%p4999_p9) }
 0x332   : > { %3502 = vst [vmem:[%s7243_s22] sm:$0xff] (%p4999_p9), %v3501_v58  ;;  %3504 = vst [vmem:[%s7243_s22 + $0x8] sm:$0xff] (%p4999_p9), %v3503_v53  ;;  %v3513_v2 = vld [vmem:[%s6417_s30 + $0x30] sm:$0xff] (%p4999_p9)  ;;  %v3515_v51 = vld [vmem:[%s6417_s30 + $0x38] sm:$0xff] (%p4999_p9) }
 0x333   : > { %3506 = vst [vmem:[%s7243_s22 + $0x10] sm:$0xff] (%p4999_p9), %v3505_v32  ;;  %3508 = vst [vmem:[%s7243_s22 + $0x18] sm:$0xff] (%p4999_p9), %v3507_v29  ;;  %v3517_v63 = vld [vmem:[%s6417_s30 + $0x40] sm:$0xff] (%p4999_p9)  ;;  %v3519_v27 = vld [vmem:[%s6417_s30 + $0x48] sm:$0xff] (%p4999_p9) }
 0x334   : > { %3510 = vst [vmem:[%s7243_s22 + $0x20] sm:$0xff] (%p4999_p9), %v3509_v21  ;;  %3512 = vst [vmem:[%s7243_s22 + $0x28] sm:$0xff] (%p4999_p9), %v3511_v23  ;;  %v3521_v22 = vld [vmem:[%s6417_s30 + $0x50] sm:$0xff] (%p4999_p9)  ;;  %v3523_v25 = vld [vmem:[%s6417_s30 + $0x58] sm:$0xff] (%p4999_p9) }
 0x335   : > { %3514 = vst [vmem:[%s7243_s22 + $0x30] sm:$0xff] %v3513_v2  ;;  %3516 = vst [vmem:[%s7243_s22 + $0x38] sm:$0xff] %v3515_v51  ;;  %v3525_v10 = vld [vmem:[%s6417_s30 + $0x60] sm:$0xff]  ;;  %v3527_v18 = vld [vmem:[%s6417_s30 + $0x68] sm:$0xff] }
 0x336   : > { %3518 = vst [vmem:[%s7243_s22 + $0x40] sm:$0xff] %v3517_v63  ;;  %3520 = vst [vmem:[%s7243_s22 + $0x48] sm:$0xff] %v3519_v27  ;;  %v3529_v36 = vld [vmem:[%s6417_s30 + $0x70] sm:$0xff]  ;;  %v3531_v17 = vld [vmem:[%s6417_s30 + $0x78] sm:$0xff] }
 0x337   : > { %3522 = vst [vmem:[%s7243_s22 + $0x50] sm:$0xff] %v3521_v22  ;;  %3524 = vst [vmem:[%s7243_s22 + $0x58] sm:$0xff] %v3523_v25  ;;  %v3533_v57 = vld [vmem:[%s6417_s30 + $0x80] sm:$0xff]  ;;  %v3535_v50 = vld [vmem:[%s6417_s30 + $0x88] sm:$0xff] }
 0x338   : > { %3526 = vst [vmem:[%s7243_s22 + $0x60] sm:$0xff] %v3525_v10  ;;  %3528 = vst [vmem:[%s7243_s22 + $0x68] sm:$0xff] %v3527_v18  ;;  %v3537_v15 = vld [vmem:[%s6417_s30 + $0x90] sm:$0xff]  ;;  %v3539_v5 = vld [vmem:[%s6417_s30 + $0x98] sm:$0xff] }
 0x339   : > { %3530 = vst [vmem:[%s7243_s22 + $0x70] sm:$0xff] %v3529_v36  ;;  %3532 = vst [vmem:[%s7243_s22 + $0x78] sm:$0xff] %v3531_v17  ;;  %v3541_v62 = vld [vmem:[%s6417_s30 + $0xa0] sm:$0xff]  ;;  %v3543_v26 = vld [vmem:[%s6417_s30 + $0xa8] sm:$0xff] }
 0x33a   : > { %3534 = vst [vmem:[%s7243_s22 + $0x80] sm:$0xff] %v3533_v57  ;;  %3536 = vst [vmem:[%s7243_s22 + $0x88] sm:$0xff] %v3535_v50  ;;  %v3545_v41 = vld [vmem:[%s6417_s30 + $0xb0] sm:$0xff]  ;;  %v3547_v44 = vld [vmem:[%s6417_s30 + $0xb8] sm:$0xff] }
 0x33b   : > { %3538 = vst [vmem:[%s7243_s22 + $0x90] sm:$0xff] %v3537_v15  ;;  %3540 = vst [vmem:[%s7243_s22 + $0x98] sm:$0xff] %v3539_v5  ;;  %v3549_v49 = vld [vmem:[%s6417_s30 + $0xc0] sm:$0xff]  ;;  %v3551_v7 = vld [vmem:[%s6417_s30 + $0xc8] sm:$0xff] }
 0x33c   : > { %3542 = vst [vmem:[%s7243_s22 + $0xa0] sm:$0xff] %v3541_v62  ;;  %3544 = vst [vmem:[%s7243_s22 + $0xa8] sm:$0xff] %v3543_v26  ;;  %v3553_v38 = vld [vmem:[%s6417_s30 + $0xd0] sm:$0xff]  ;;  %v3555_v16 = vld [vmem:[%s6417_s30 + $0xd8] sm:$0xff] }
 0x33d   : > { %3546 = vst [vmem:[%s7243_s22 + $0xb0] sm:$0xff] %v3545_v41  ;;  %3548 = vst [vmem:[%s7243_s22 + $0xb8] sm:$0xff] %v3547_v44  ;;  %v3557_v59 = vld [vmem:[%s6417_s30 + $0xe0] sm:$0xff]  ;;  %v3559_v43 = vld [vmem:[%s6417_s30 + $0xe8] sm:$0xff] }
 0x33e   : > { %3550 = vst [vmem:[%s7243_s22 + $0xc0] sm:$0xff] %v3549_v49  ;;  %3552 = vst [vmem:[%s7243_s22 + $0xc8] sm:$0xff] %v3551_v7  ;;  %v3561_v6 = vld [vmem:[%s6417_s30 + $0xf0] sm:$0xff]  ;;  %v3563_v24 = vld [vmem:[%s6417_s30 + $0xf8] sm:$0xff] }
 0x33f   : > { %3554 = vst [vmem:[%s7243_s22 + $0xd0] sm:$0xff] %v3553_v38  ;;  %3556 = vst [vmem:[%s7243_s22 + $0xd8] sm:$0xff] %v3555_v16  ;;  %v3565_v52 = vld [vmem:[%s6417_s30 + $0x100] sm:$0xff]  ;;  %v3567_v12 = vld [vmem:[%s6417_s30 + $0x108] sm:$0xff] }
 0x340   : > { %3558 = vst [vmem:[%s7243_s22 + $0xe0] sm:$0xff] %v3557_v59  ;;  %3560 = vst [vmem:[%s7243_s22 + $0xe8] sm:$0xff] %v3559_v43  ;;  %v3569_v46 = vld [vmem:[%s6417_s30 + $0x110] sm:$0xff]  ;;  %v3571_v45 = vld [vmem:[%s6417_s30 + $0x118] sm:$0xff] }
 0x341   : > { %3562 = vst [vmem:[%s7243_s22 + $0xf0] sm:$0xff] %v3561_v6  ;;  %3564 = vst [vmem:[%s7243_s22 + $0xf8] sm:$0xff] %v3563_v24  ;;  %v3573_v30 = vld [vmem:[%s6417_s30 + $0x120] sm:$0xff]  ;;  %v3575_v47 = vld [vmem:[%s6417_s30 + $0x128] sm:$0xff] }
 0x342   : > { %3566 = vst [vmem:[%s7243_s22 + $0x200] sm:$0xff] %v3565_v52  ;;  %3568 = vst [vmem:[%s7243_s22 + $0x208] sm:$0xff] %v3567_v12  ;;  %v3577_v11 = vld [vmem:[%s6417_s30 + $0x130] sm:$0xff]  ;;  %v3579_v4 = vld [vmem:[%s6417_s30 + $0x138] sm:$0xff] }
 0x343   : > { %3570 = vst [vmem:[%s7243_s22 + $0x210] sm:$0xff] %v3569_v46  ;;  %3572 = vst [vmem:[%s7243_s22 + $0x218] sm:$0xff] %v3571_v45  ;;  %v3581_v31 = vld [vmem:[%s6417_s30 + $0x140] sm:$0xff]  ;;  %v3583_v60 = vld [vmem:[%s6417_s30 + $0x148] sm:$0xff] }
 0x344   : > { %3574 = vst [vmem:[%s7243_s22 + $0x220] sm:$0xff] %v3573_v30  ;;  %3576 = vst [vmem:[%s7243_s22 + $0x228] sm:$0xff] %v3575_v47  ;;  %v3585_v1 = vld [vmem:[%s6417_s30 + $0x150] sm:$0xff]  ;;  %v3587_v56 = vld [vmem:[%s6417_s30 + $0x158] sm:$0xff] }
 0x345   : > { %3578 = vst [vmem:[%s7243_s22 + $0x230] sm:$0xff] %v3577_v11  ;;  %3580 = vst [vmem:[%s7243_s22 + $0x238] sm:$0xff] %v3579_v4  ;;  %v3589_v61 = vld [vmem:[%s6417_s30 + $0x160] sm:$0xff]  ;;  %v3591_v48 = vld [vmem:[%s6417_s30 + $0x168] sm:$0xff] }
 0x346   : > { %3582 = vst [vmem:[%s7243_s22 + $0x240] sm:$0xff] %v3581_v31  ;;  %3584 = vst [vmem:[%s7243_s22 + $0x248] sm:$0xff] %v3583_v60  ;;  %v3593_v14 = vld [vmem:[%s6417_s30 + $0x170] sm:$0xff]  ;;  %v3595_v35 = vld [vmem:[%s6417_s30 + $0x178] sm:$0xff] }
 0x347   : > { %3586 = vst [vmem:[%s7243_s22 + $0x250] sm:$0xff] %v3585_v1  ;;  %3588 = vst [vmem:[%s7243_s22 + $0x258] sm:$0xff] %v3587_v56  ;;  %v3597_v55 = vld [vmem:[%s6417_s30 + $0x180] sm:$0xff]  ;;  %v3599_v34 = vld [vmem:[%s6417_s30 + $0x188] sm:$0xff] }
 0x348   : > { %3590 = vst [vmem:[%s7243_s22 + $0x260] sm:$0xff] %v3589_v61  ;;  %3592 = vst [vmem:[%s7243_s22 + $0x268] sm:$0xff] %v3591_v48  ;;  %v3601_v28 = vld [vmem:[%s6417_s30 + $0x190] sm:$0xff]  ;;  %v3603_v13 = vld [vmem:[%s6417_s30 + $0x198] sm:$0xff] }
 0x349   : > { %3594 = vst [vmem:[%s7243_s22 + $0x270] sm:$0xff] %v3593_v14  ;;  %3596 = vst [vmem:[%s7243_s22 + $0x278] sm:$0xff] %v3595_v35  ;;  %v3605_v37 = vld [vmem:[%s6417_s30 + $0x1a0] sm:$0xff]  ;;  %v3607_v40 = vld [vmem:[%s6417_s30 + $0x1a8] sm:$0xff] }
 0x34a   : > { %3598 = vst [vmem:[%s7243_s22 + $0x280] sm:$0xff] %v3597_v55  ;;  %3600 = vst [vmem:[%s7243_s22 + $0x288] sm:$0xff] %v3599_v34  ;;  %v3609_v19 = vld [vmem:[%s6417_s30 + $0x1b0] sm:$0xff]  ;;  %v3611_v8 = vld [vmem:[%s6417_s30 + $0x1b8] sm:$0xff] }
 0x34b   : > { %3602 = vst [vmem:[%s7243_s22 + $0x290] sm:$0xff] %v3601_v28  ;;  %3604 = vst [vmem:[%s7243_s22 + $0x298] sm:$0xff] %v3603_v13  ;;  %v3613_v3 = vld [vmem:[%s6417_s30 + $0x1c0] sm:$0xff]  ;;  %v3615_v20 = vld [vmem:[%s6417_s30 + $0x1c8] sm:$0xff] }
 0x34c   : > { %3606 = vst [vmem:[%s7243_s22 + $0x2a0] sm:$0xff] %v3605_v37  ;;  %3608 = vst [vmem:[%s7243_s22 + $0x2a8] sm:$0xff] %v3607_v40  ;;  %v3617_v42 = vld [vmem:[%s6417_s30 + $0x1d0] sm:$0xff]  ;;  %v3619_v0 = vld [vmem:[%s6417_s30 + $0x1d8] sm:$0xff] }
 0x34d   : > { %3610 = vst [vmem:[%s7243_s22 + $0x2b0] sm:$0xff] %v3609_v19  ;;  %3612 = vst [vmem:[%s7243_s22 + $0x2b8] sm:$0xff] %v3611_v8  ;;  %v3621_v33 = vld [vmem:[%s6417_s30 + $0x1e0] sm:$0xff]  ;;  %v3623_v39 = vld [vmem:[%s6417_s30 + $0x1e8] sm:$0xff] }
 0x34e   : > { %3614 = vst [vmem:[%s7243_s22 + $0x2c0] sm:$0xff] %v3613_v3  ;;  %3616 = vst [vmem:[%s7243_s22 + $0x2c8] sm:$0xff] %v3615_v20  ;;  %v3625_v9 = vld [vmem:[%s6417_s30 + $0x1f0] sm:$0xff]  ;;  %v3627_v54 = vld [vmem:[%s6417_s30 + $0x1f8] sm:$0xff] }
 0x34f   : > { %3618 = vst [vmem:[%s7243_s22 + $0x2d0] sm:$0xff] %v3617_v42  ;;  %3620 = vst [vmem:[%s7243_s22 + $0x2d8] sm:$0xff] %v3619_v0  ;;  %v3629_v58 = vld [vmem:[%s6417_s30 + $0x200] sm:$0xff]  ;;  %v3631_v53 = vld [vmem:[%s6417_s30 + $0x208] sm:$0xff] }
 0x350   : > { %3622 = vst [vmem:[%s7243_s22 + $0x2e0] sm:$0xff] %v3621_v33  ;;  %3624 = vst [vmem:[%s7243_s22 + $0x2e8] sm:$0xff] %v3623_v39  ;;  %v3633_v32 = vld [vmem:[%s6417_s30 + $0x210] sm:$0xff]  ;;  %v3635_v29 = vld [vmem:[%s6417_s30 + $0x218] sm:$0xff] }
 0x351   : > { %3626 = vst [vmem:[%s7243_s22 + $0x2f0] sm:$0xff] %v3625_v9  ;;  %3628 = vst [vmem:[%s7243_s22 + $0x2f8] sm:$0xff] %v3627_v54  ;;  %v3637_v21 = vld [vmem:[%s6417_s30 + $0x220] sm:$0xff]  ;;  %v3639_v23 = vld [vmem:[%s6417_s30 + $0x228] sm:$0xff] }
 0x352   : > { %3630 = vst [vmem:[%s7243_s22 + $0x400] sm:$0xff] %v3629_v58  ;;  %3632 = vst [vmem:[%s7243_s22 + $0x408] sm:$0xff] %v3631_v53  ;;  %v3641_v2 = vld [vmem:[%s6417_s30 + $0x230] sm:$0xff]  ;;  %v3643_v51 = vld [vmem:[%s6417_s30 + $0x238] sm:$0xff] }
 0x353   : > { %3634 = vst [vmem:[%s7243_s22 + $0x410] sm:$0xff] %v3633_v32  ;;  %3636 = vst [vmem:[%s7243_s22 + $0x418] sm:$0xff] %v3635_v29  ;;  %v3645_v63 = vld [vmem:[%s6417_s30 + $0x240] sm:$0xff]  ;;  %v3647_v27 = vld [vmem:[%s6417_s30 + $0x248] sm:$0xff] }
 0x354   : > { %3638 = vst [vmem:[%s7243_s22 + $0x420] sm:$0xff] %v3637_v21  ;;  %3640 = vst [vmem:[%s7243_s22 + $0x428] sm:$0xff] %v3639_v23  ;;  %v3649_v22 = vld [vmem:[%s6417_s30 + $0x250] sm:$0xff]  ;;  %v3651_v25 = vld [vmem:[%s6417_s30 + $0x258] sm:$0xff] }
 0x355   : > { %3642 = vst [vmem:[%s7243_s22 + $0x430] sm:$0xff] %v3641_v2  ;;  %3644 = vst [vmem:[%s7243_s22 + $0x438] sm:$0xff] %v3643_v51  ;;  %v3653_v10 = vld [vmem:[%s6417_s30 + $0x260] sm:$0xff]  ;;  %v3655_v18 = vld [vmem:[%s6417_s30 + $0x268] sm:$0xff] }
 0x356   : > { %3646 = vst [vmem:[%s7243_s22 + $0x440] sm:$0xff] %v3645_v63  ;;  %3648 = vst [vmem:[%s7243_s22 + $0x448] sm:$0xff] %v3647_v27  ;;  %v3657_v36 = vld [vmem:[%s6417_s30 + $0x270] sm:$0xff]  ;;  %v3659_v17 = vld [vmem:[%s6417_s30 + $0x278] sm:$0xff] }
 0x357   : > { %3650 = vst [vmem:[%s7243_s22 + $0x450] sm:$0xff] %v3649_v22  ;;  %3652 = vst [vmem:[%s7243_s22 + $0x458] sm:$0xff] %v3651_v25  ;;  %v3661_v57 = vld [vmem:[%s6417_s30 + $0x280] sm:$0xff]  ;;  %v3663_v50 = vld [vmem:[%s6417_s30 + $0x288] sm:$0xff] }
 0x358   : > { %3654 = vst [vmem:[%s7243_s22 + $0x460] sm:$0xff] %v3653_v10  ;;  %3656 = vst [vmem:[%s7243_s22 + $0x468] sm:$0xff] %v3655_v18  ;;  %v3665_v15 = vld [vmem:[%s6417_s30 + $0x290] sm:$0xff]  ;;  %v3667_v5 = vld [vmem:[%s6417_s30 + $0x298] sm:$0xff] }
 0x359   : > { %3658 = vst [vmem:[%s7243_s22 + $0x470] sm:$0xff] %v3657_v36  ;;  %3660 = vst [vmem:[%s7243_s22 + $0x478] sm:$0xff] %v3659_v17  ;;  %v3669_v62 = vld [vmem:[%s6417_s30 + $0x2a0] sm:$0xff]  ;;  %v3671_v26 = vld [vmem:[%s6417_s30 + $0x2a8] sm:$0xff] }
 0x35a   : > { %3662 = vst [vmem:[%s7243_s22 + $0x480] sm:$0xff] %v3661_v57  ;;  %3664 = vst [vmem:[%s7243_s22 + $0x488] sm:$0xff] %v3663_v50  ;;  %v3673_v41 = vld [vmem:[%s6417_s30 + $0x2b0] sm:$0xff]  ;;  %v3675_v44 = vld [vmem:[%s6417_s30 + $0x2b8] sm:$0xff] }
 0x35b   : > { %3666 = vst [vmem:[%s7243_s22 + $0x490] sm:$0xff] %v3665_v15  ;;  %3668 = vst [vmem:[%s7243_s22 + $0x498] sm:$0xff] %v3667_v5  ;;  %v3677_v49 = vld [vmem:[%s6417_s30 + $0x2c0] sm:$0xff]  ;;  %v3679_v7 = vld [vmem:[%s6417_s30 + $0x2c8] sm:$0xff] }
 0x35c   : > { %3670 = vst [vmem:[%s7243_s22 + $0x4a0] sm:$0xff] %v3669_v62  ;;  %3672 = vst [vmem:[%s7243_s22 + $0x4a8] sm:$0xff] %v3671_v26  ;;  %v3681_v38 = vld [vmem:[%s6417_s30 + $0x2d0] sm:$0xff]  ;;  %v3683_v16 = vld [vmem:[%s6417_s30 + $0x2d8] sm:$0xff] }
 0x35d   : > { %3674 = vst [vmem:[%s7243_s22 + $0x4b0] sm:$0xff] %v3673_v41  ;;  %3676 = vst [vmem:[%s7243_s22 + $0x4b8] sm:$0xff] %v3675_v44  ;;  %v3685_v59 = vld [vmem:[%s6417_s30 + $0x2e0] sm:$0xff]  ;;  %v3687_v43 = vld [vmem:[%s6417_s30 + $0x2e8] sm:$0xff] }
 0x35e   : > { %3678 = vst [vmem:[%s7243_s22 + $0x4c0] sm:$0xff] %v3677_v49  ;;  %3680 = vst [vmem:[%s7243_s22 + $0x4c8] sm:$0xff] %v3679_v7  ;;  %v3689_v6 = vld [vmem:[%s6417_s30 + $0x2f0] sm:$0xff]  ;;  %v3691_v24 = vld [vmem:[%s6417_s30 + $0x2f8] sm:$0xff] }
 0x35f   : > { %3682 = vst [vmem:[%s7243_s22 + $0x4d0] sm:$0xff] %v3681_v38  ;;  %3684 = vst [vmem:[%s7243_s22 + $0x4d8] sm:$0xff] %v3683_v16 }
 0x360   : > { %3686 = vst [vmem:[%s7243_s22 + $0x4e0] sm:$0xff] %v3685_v59  ;;  %3688 = vst [vmem:[%s7243_s22 + $0x4e8] sm:$0xff] %v3687_v43 }
 0x361   : > { %3690 = vst [vmem:[%s7243_s22 + $0x4f0] sm:$0xff] %v3689_v6  ;;  %3692 = vst [vmem:[%s7243_s22 + $0x4f8] sm:$0xff] %v3691_v24 }
 0x362 PF: > { %3698 = sbr.rel (!%p4999_p9) target bundleno = 916 (0x394), region = 120  ;;  %s4592_s23 = sshll.u32 (%p4999_p9), %s4987_s0, 8  ;;  %v3920_v52 = vld [vmem:[%s5779_s28] sm:$0xff] (%p4999_p9)  ;;  %v3922_v12 = vld [vmem:[%s5779_s28 + $0x8] sm:$0xff] (%p4999_p9)  ;;  %v3924_v46 = vld [vmem:[%s5779_s28 + $0x10] sm:$0xff] (%p4999_p9) }
 0x363   : > { %s7443_s10 = scalar_lea.vmem (%p4999_p9), %s7652_s8, %s4592_s23  ;;  %v3926_v45 = vld [vmem:[%s5779_s28 + $0x18] sm:$0xff] (%p4999_p9)  ;;  %v3928_v30 = vld [vmem:[%s5779_s28 + $0x20] sm:$0xff] (%p4999_p9)  ;;  %v3930_v47 = vld [vmem:[%s5779_s28 + $0x28] sm:$0xff] (%p4999_p9) }
 0x364   : > { %3921 = vst [vmem:[%s7443_s10] sm:$0xff] (%p4999_p9), %v3920_v52  ;;  %3923 = vst [vmem:[%s7443_s10 + $0x8] sm:$0xff] (%p4999_p9), %v3922_v12  ;;  %v3932_v11 = vld [vmem:[%s5779_s28 + $0x30] sm:$0xff] (%p4999_p9)  ;;  %v3934_v4 = vld [vmem:[%s5779_s28 + $0x38] sm:$0xff] (%p4999_p9) }
 0x365   : > { %3925 = vst [vmem:[%s7443_s10 + $0x10] sm:$0xff] (%p4999_p9), %v3924_v46  ;;  %3927 = vst [vmem:[%s7443_s10 + $0x18] sm:$0xff] (%p4999_p9), %v3926_v45  ;;  %v3936_v31 = vld [vmem:[%s5779_s28 + $0x40] sm:$0xff] (%p4999_p9)  ;;  %v3938_v60 = vld [vmem:[%s5779_s28 + $0x48] sm:$0xff] (%p4999_p9) }
 0x366   : > { %3929 = vst [vmem:[%s7443_s10 + $0x20] sm:$0xff] (%p4999_p9), %v3928_v30  ;;  %3931 = vst [vmem:[%s7443_s10 + $0x28] sm:$0xff] (%p4999_p9), %v3930_v47  ;;  %v3940_v1 = vld [vmem:[%s5779_s28 + $0x50] sm:$0xff] (%p4999_p9)  ;;  %v3942_v56 = vld [vmem:[%s5779_s28 + $0x58] sm:$0xff] (%p4999_p9) }
 0x367   : > { %3933 = vst [vmem:[%s7443_s10 + $0x30] sm:$0xff] %v3932_v11  ;;  %3935 = vst [vmem:[%s7443_s10 + $0x38] sm:$0xff] %v3934_v4  ;;  %v3944_v61 = vld [vmem:[%s5779_s28 + $0x60] sm:$0xff]  ;;  %v3946_v48 = vld [vmem:[%s5779_s28 + $0x68] sm:$0xff] }
 0x368   : > { %3937 = vst [vmem:[%s7443_s10 + $0x40] sm:$0xff] %v3936_v31  ;;  %3939 = vst [vmem:[%s7443_s10 + $0x48] sm:$0xff] %v3938_v60  ;;  %v3948_v14 = vld [vmem:[%s5779_s28 + $0x70] sm:$0xff]  ;;  %v3950_v35 = vld [vmem:[%s5779_s28 + $0x78] sm:$0xff] }
 0x369   : > { %3941 = vst [vmem:[%s7443_s10 + $0x50] sm:$0xff] %v3940_v1  ;;  %3943 = vst [vmem:[%s7443_s10 + $0x58] sm:$0xff] %v3942_v56  ;;  %v3952_v55 = vld [vmem:[%s5779_s28 + $0x80] sm:$0xff]  ;;  %v3954_v34 = vld [vmem:[%s5779_s28 + $0x88] sm:$0xff] }
 0x36a   : > { %3945 = vst [vmem:[%s7443_s10 + $0x60] sm:$0xff] %v3944_v61  ;;  %3947 = vst [vmem:[%s7443_s10 + $0x68] sm:$0xff] %v3946_v48  ;;  %v3956_v28 = vld [vmem:[%s5779_s28 + $0x90] sm:$0xff]  ;;  %v3958_v13 = vld [vmem:[%s5779_s28 + $0x98] sm:$0xff] }
 0x36b   : > { %3949 = vst [vmem:[%s7443_s10 + $0x70] sm:$0xff] %v3948_v14  ;;  %3951 = vst [vmem:[%s7443_s10 + $0x78] sm:$0xff] %v3950_v35  ;;  %v3960_v37 = vld [vmem:[%s5779_s28 + $0xa0] sm:$0xff]  ;;  %v3962_v40 = vld [vmem:[%s5779_s28 + $0xa8] sm:$0xff] }
 0x36c   : > { %3953 = vst [vmem:[%s7443_s10 + $0x80] sm:$0xff] %v3952_v55  ;;  %3955 = vst [vmem:[%s7443_s10 + $0x88] sm:$0xff] %v3954_v34  ;;  %v3964_v19 = vld [vmem:[%s5779_s28 + $0xb0] sm:$0xff]  ;;  %v3966_v8 = vld [vmem:[%s5779_s28 + $0xb8] sm:$0xff] }
 0x36d   : > { %3957 = vst [vmem:[%s7443_s10 + $0x90] sm:$0xff] %v3956_v28  ;;  %3959 = vst [vmem:[%s7443_s10 + $0x98] sm:$0xff] %v3958_v13  ;;  %v3968_v3 = vld [vmem:[%s5779_s28 + $0xc0] sm:$0xff]  ;;  %v3970_v20 = vld [vmem:[%s5779_s28 + $0xc8] sm:$0xff] }
 0x36e   : > { %3961 = vst [vmem:[%s7443_s10 + $0xa0] sm:$0xff] %v3960_v37  ;;  %3963 = vst [vmem:[%s7443_s10 + $0xa8] sm:$0xff] %v3962_v40  ;;  %v3972_v42 = vld [vmem:[%s5779_s28 + $0xd0] sm:$0xff]  ;;  %v3974_v0 = vld [vmem:[%s5779_s28 + $0xd8] sm:$0xff] }
 0x36f   : > { %3965 = vst [vmem:[%s7443_s10 + $0xb0] sm:$0xff] %v3964_v19  ;;  %3967 = vst [vmem:[%s7443_s10 + $0xb8] sm:$0xff] %v3966_v8  ;;  %v3976_v33 = vld [vmem:[%s5779_s28 + $0xe0] sm:$0xff]  ;;  %v3978_v39 = vld [vmem:[%s5779_s28 + $0xe8] sm:$0xff] }
 0x370   : > { %3969 = vst [vmem:[%s7443_s10 + $0xc0] sm:$0xff] %v3968_v3  ;;  %3971 = vst [vmem:[%s7443_s10 + $0xc8] sm:$0xff] %v3970_v20  ;;  %v3980_v9 = vld [vmem:[%s5779_s28 + $0xf0] sm:$0xff]  ;;  %v3982_v54 = vld [vmem:[%s5779_s28 + $0xf8] sm:$0xff] }
 0x371   : > { %3973 = vst [vmem:[%s7443_s10 + $0xd0] sm:$0xff] %v3972_v42  ;;  %3975 = vst [vmem:[%s7443_s10 + $0xd8] sm:$0xff] %v3974_v0  ;;  %v3984_v58 = vld [vmem:[%s5779_s28 + $0x100] sm:$0xff]  ;;  %v3986_v53 = vld [vmem:[%s5779_s28 + $0x108] sm:$0xff] }
 0x372   : > { %3977 = vst [vmem:[%s7443_s10 + $0xe0] sm:$0xff] %v3976_v33  ;;  %3979 = vst [vmem:[%s7443_s10 + $0xe8] sm:$0xff] %v3978_v39  ;;  %v3988_v32 = vld [vmem:[%s5779_s28 + $0x110] sm:$0xff]  ;;  %v3990_v29 = vld [vmem:[%s5779_s28 + $0x118] sm:$0xff] }
 0x373   : > { %3981 = vst [vmem:[%s7443_s10 + $0xf0] sm:$0xff] %v3980_v9  ;;  %3983 = vst [vmem:[%s7443_s10 + $0xf8] sm:$0xff] %v3982_v54  ;;  %v3992_v21 = vld [vmem:[%s5779_s28 + $0x120] sm:$0xff]  ;;  %v3994_v23 = vld [vmem:[%s5779_s28 + $0x128] sm:$0xff] }
 0x374   : > { %3985 = vst [vmem:[%s7443_s10 + $0x200] sm:$0xff] %v3984_v58  ;;  %3987 = vst [vmem:[%s7443_s10 + $0x208] sm:$0xff] %v3986_v53  ;;  %v3996_v2 = vld [vmem:[%s5779_s28 + $0x130] sm:$0xff]  ;;  %v3998_v51 = vld [vmem:[%s5779_s28 + $0x138] sm:$0xff] }
 0x375   : > { %3989 = vst [vmem:[%s7443_s10 + $0x210] sm:$0xff] %v3988_v32  ;;  %3991 = vst [vmem:[%s7443_s10 + $0x218] sm:$0xff] %v3990_v29  ;;  %v4000_v63 = vld [vmem:[%s5779_s28 + $0x140] sm:$0xff]  ;;  %v4002_v27 = vld [vmem:[%s5779_s28 + $0x148] sm:$0xff] }
 0x376   : > { %3993 = vst [vmem:[%s7443_s10 + $0x220] sm:$0xff] %v3992_v21  ;;  %3995 = vst [vmem:[%s7443_s10 + $0x228] sm:$0xff] %v3994_v23  ;;  %v4004_v22 = vld [vmem:[%s5779_s28 + $0x150] sm:$0xff]  ;;  %v4006_v25 = vld [vmem:[%s5779_s28 + $0x158] sm:$0xff] }
 0x377   : > { %3997 = vst [vmem:[%s7443_s10 + $0x230] sm:$0xff] %v3996_v2  ;;  %3999 = vst [vmem:[%s7443_s10 + $0x238] sm:$0xff] %v3998_v51  ;;  %v4008_v10 = vld [vmem:[%s5779_s28 + $0x160] sm:$0xff]  ;;  %v4010_v18 = vld [vmem:[%s5779_s28 + $0x168] sm:$0xff] }
 0x378   : > { %4001 = vst [vmem:[%s7443_s10 + $0x240] sm:$0xff] %v4000_v63  ;;  %4003 = vst [vmem:[%s7443_s10 + $0x248] sm:$0xff] %v4002_v27  ;;  %v4012_v36 = vld [vmem:[%s5779_s28 + $0x170] sm:$0xff]  ;;  %v4014_v17 = vld [vmem:[%s5779_s28 + $0x178] sm:$0xff] }
 0x379   : > { %4005 = vst [vmem:[%s7443_s10 + $0x250] sm:$0xff] %v4004_v22  ;;  %4007 = vst [vmem:[%s7443_s10 + $0x258] sm:$0xff] %v4006_v25  ;;  %v4016_v57 = vld [vmem:[%s5779_s28 + $0x180] sm:$0xff]  ;;  %v4018_v50 = vld [vmem:[%s5779_s28 + $0x188] sm:$0xff] }
 0x37a   : > { %4009 = vst [vmem:[%s7443_s10 + $0x260] sm:$0xff] %v4008_v10  ;;  %4011 = vst [vmem:[%s7443_s10 + $0x268] sm:$0xff] %v4010_v18  ;;  %v4020_v15 = vld [vmem:[%s5779_s28 + $0x190] sm:$0xff]  ;;  %v4022_v5 = vld [vmem:[%s5779_s28 + $0x198] sm:$0xff] }
 0x37b   : > { %4013 = vst [vmem:[%s7443_s10 + $0x270] sm:$0xff] %v4012_v36  ;;  %4015 = vst [vmem:[%s7443_s10 + $0x278] sm:$0xff] %v4014_v17  ;;  %v4024_v62 = vld [vmem:[%s5779_s28 + $0x1a0] sm:$0xff]  ;;  %v4026_v26 = vld [vmem:[%s5779_s28 + $0x1a8] sm:$0xff] }
 0x37c   : > { %4017 = vst [vmem:[%s7443_s10 + $0x280] sm:$0xff] %v4016_v57  ;;  %4019 = vst [vmem:[%s7443_s10 + $0x288] sm:$0xff] %v4018_v50  ;;  %v4028_v41 = vld [vmem:[%s5779_s28 + $0x1b0] sm:$0xff]  ;;  %v4030_v44 = vld [vmem:[%s5779_s28 + $0x1b8] sm:$0xff] }
 0x37d   : > { %4021 = vst [vmem:[%s7443_s10 + $0x290] sm:$0xff] %v4020_v15  ;;  %4023 = vst [vmem:[%s7443_s10 + $0x298] sm:$0xff] %v4022_v5  ;;  %v4032_v49 = vld [vmem:[%s5779_s28 + $0x1c0] sm:$0xff]  ;;  %v4034_v7 = vld [vmem:[%s5779_s28 + $0x1c8] sm:$0xff] }
 0x37e   : > { %4025 = vst [vmem:[%s7443_s10 + $0x2a0] sm:$0xff] %v4024_v62  ;;  %4027 = vst [vmem:[%s7443_s10 + $0x2a8] sm:$0xff] %v4026_v26  ;;  %v4036_v38 = vld [vmem:[%s5779_s28 + $0x1d0] sm:$0xff]  ;;  %v4038_v16 = vld [vmem:[%s5779_s28 + $0x1d8] sm:$0xff] }
 0x37f   : > { %4029 = vst [vmem:[%s7443_s10 + $0x2b0] sm:$0xff] %v4028_v41  ;;  %4031 = vst [vmem:[%s7443_s10 + $0x2b8] sm:$0xff] %v4030_v44  ;;  %v4040_v59 = vld [vmem:[%s5779_s28 + $0x1e0] sm:$0xff]  ;;  %v4042_v43 = vld [vmem:[%s5779_s28 + $0x1e8] sm:$0xff] }
 0x380   : > { %4033 = vst [vmem:[%s7443_s10 + $0x2c0] sm:$0xff] %v4032_v49  ;;  %4035 = vst [vmem:[%s7443_s10 + $0x2c8] sm:$0xff] %v4034_v7  ;;  %v4044_v6 = vld [vmem:[%s5779_s28 + $0x1f0] sm:$0xff]  ;;  %v4046_v24 = vld [vmem:[%s5779_s28 + $0x1f8] sm:$0xff] }
 0x381   : > { %4037 = vst [vmem:[%s7443_s10 + $0x2d0] sm:$0xff] %v4036_v38  ;;  %4039 = vst [vmem:[%s7443_s10 + $0x2d8] sm:$0xff] %v4038_v16  ;;  %v4048_v52 = vld [vmem:[%s5779_s28 + $0x200] sm:$0xff]  ;;  %v4050_v12 = vld [vmem:[%s5779_s28 + $0x208] sm:$0xff] }
 0x382   : > { %4041 = vst [vmem:[%s7443_s10 + $0x2e0] sm:$0xff] %v4040_v59  ;;  %4043 = vst [vmem:[%s7443_s10 + $0x2e8] sm:$0xff] %v4042_v43  ;;  %v4052_v46 = vld [vmem:[%s5779_s28 + $0x210] sm:$0xff]  ;;  %v4054_v45 = vld [vmem:[%s5779_s28 + $0x218] sm:$0xff] }
 0x383   : > { %4045 = vst [vmem:[%s7443_s10 + $0x2f0] sm:$0xff] %v4044_v6  ;;  %4047 = vst [vmem:[%s7443_s10 + $0x2f8] sm:$0xff] %v4046_v24  ;;  %v4056_v30 = vld [vmem:[%s5779_s28 + $0x220] sm:$0xff]  ;;  %v4058_v47 = vld [vmem:[%s5779_s28 + $0x228] sm:$0xff] }
 0x384   : > { %4049 = vst [vmem:[%s7443_s10 + $0x400] sm:$0xff] %v4048_v52  ;;  %4051 = vst [vmem:[%s7443_s10 + $0x408] sm:$0xff] %v4050_v12  ;;  %v4060_v11 = vld [vmem:[%s5779_s28 + $0x230] sm:$0xff]  ;;  %v4062_v4 = vld [vmem:[%s5779_s28 + $0x238] sm:$0xff] }
 0x385   : > { %4053 = vst [vmem:[%s7443_s10 + $0x410] sm:$0xff] %v4052_v46  ;;  %4055 = vst [vmem:[%s7443_s10 + $0x418] sm:$0xff] %v4054_v45  ;;  %v4064_v31 = vld [vmem:[%s5779_s28 + $0x240] sm:$0xff]  ;;  %v4066_v60 = vld [vmem:[%s5779_s28 + $0x248] sm:$0xff] }
 0x386   : > { %4057 = vst [vmem:[%s7443_s10 + $0x420] sm:$0xff] %v4056_v30  ;;  %4059 = vst [vmem:[%s7443_s10 + $0x428] sm:$0xff] %v4058_v47  ;;  %v4068_v1 = vld [vmem:[%s5779_s28 + $0x250] sm:$0xff]  ;;  %v4070_v56 = vld [vmem:[%s5779_s28 + $0x258] sm:$0xff] }
 0x387   : > { %4061 = vst [vmem:[%s7443_s10 + $0x430] sm:$0xff] %v4060_v11  ;;  %4063 = vst [vmem:[%s7443_s10 + $0x438] sm:$0xff] %v4062_v4  ;;  %v4072_v61 = vld [vmem:[%s5779_s28 + $0x260] sm:$0xff]  ;;  %v4074_v48 = vld [vmem:[%s5779_s28 + $0x268] sm:$0xff] }
 0x388   : > { %4065 = vst [vmem:[%s7443_s10 + $0x440] sm:$0xff] %v4064_v31  ;;  %4067 = vst [vmem:[%s7443_s10 + $0x448] sm:$0xff] %v4066_v60  ;;  %v4076_v14 = vld [vmem:[%s5779_s28 + $0x270] sm:$0xff]  ;;  %v4078_v35 = vld [vmem:[%s5779_s28 + $0x278] sm:$0xff] }
 0x389   : > { %4069 = vst [vmem:[%s7443_s10 + $0x450] sm:$0xff] %v4068_v1  ;;  %4071 = vst [vmem:[%s7443_s10 + $0x458] sm:$0xff] %v4070_v56  ;;  %v4080_v55 = vld [vmem:[%s5779_s28 + $0x280] sm:$0xff]  ;;  %v4082_v34 = vld [vmem:[%s5779_s28 + $0x288] sm:$0xff] }
 0x38a   : > { %4073 = vst [vmem:[%s7443_s10 + $0x460] sm:$0xff] %v4072_v61  ;;  %4075 = vst [vmem:[%s7443_s10 + $0x468] sm:$0xff] %v4074_v48  ;;  %v4084_v28 = vld [vmem:[%s5779_s28 + $0x290] sm:$0xff]  ;;  %v4086_v13 = vld [vmem:[%s5779_s28 + $0x298] sm:$0xff] }
 0x38b   : > { %4077 = vst [vmem:[%s7443_s10 + $0x470] sm:$0xff] %v4076_v14  ;;  %4079 = vst [vmem:[%s7443_s10 + $0x478] sm:$0xff] %v4078_v35  ;;  %v4088_v37 = vld [vmem:[%s5779_s28 + $0x2a0] sm:$0xff]  ;;  %v4090_v40 = vld [vmem:[%s5779_s28 + $0x2a8] sm:$0xff] }
 0x38c   : > { %4081 = vst [vmem:[%s7443_s10 + $0x480] sm:$0xff] %v4080_v55  ;;  %4083 = vst [vmem:[%s7443_s10 + $0x488] sm:$0xff] %v4082_v34  ;;  %v4092_v19 = vld [vmem:[%s5779_s28 + $0x2b0] sm:$0xff]  ;;  %v4094_v8 = vld [vmem:[%s5779_s28 + $0x2b8] sm:$0xff] }
 0x38d   : > { %4085 = vst [vmem:[%s7443_s10 + $0x490] sm:$0xff] %v4084_v28  ;;  %4087 = vst [vmem:[%s7443_s10 + $0x498] sm:$0xff] %v4086_v13  ;;  %v4096_v3 = vld [vmem:[%s5779_s28 + $0x2c0] sm:$0xff]  ;;  %v4098_v20 = vld [vmem:[%s5779_s28 + $0x2c8] sm:$0xff] }
 0x38e   : > { %4089 = vst [vmem:[%s7443_s10 + $0x4a0] sm:$0xff] %v4088_v37  ;;  %4091 = vst [vmem:[%s7443_s10 + $0x4a8] sm:$0xff] %v4090_v40  ;;  %v4100_v42 = vld [vmem:[%s5779_s28 + $0x2d0] sm:$0xff]  ;;  %v4102_v0 = vld [vmem:[%s5779_s28 + $0x2d8] sm:$0xff] }
 0x38f   : > { %4093 = vst [vmem:[%s7443_s10 + $0x4b0] sm:$0xff] %v4092_v19  ;;  %4095 = vst [vmem:[%s7443_s10 + $0x4b8] sm:$0xff] %v4094_v8  ;;  %v4104_v33 = vld [vmem:[%s5779_s28 + $0x2e0] sm:$0xff]  ;;  %v4106_v39 = vld [vmem:[%s5779_s28 + $0x2e8] sm:$0xff] }
 0x390   : > { %4097 = vst [vmem:[%s7443_s10 + $0x4c0] sm:$0xff] %v4096_v3  ;;  %4099 = vst [vmem:[%s7443_s10 + $0x4c8] sm:$0xff] %v4098_v20  ;;  %v4108_v9 = vld [vmem:[%s5779_s28 + $0x2f0] sm:$0xff]  ;;  %v4110_v54 = vld [vmem:[%s5779_s28 + $0x2f8] sm:$0xff] }
 0x391   : > { %4101 = vst [vmem:[%s7443_s10 + $0x4d0] sm:$0xff] %v4100_v42  ;;  %4103 = vst [vmem:[%s7443_s10 + $0x4d8] sm:$0xff] %v4102_v0 }
 0x392   : > { %4105 = vst [vmem:[%s7443_s10 + $0x4e0] sm:$0xff] %v4104_v33  ;;  %4107 = vst [vmem:[%s7443_s10 + $0x4e8] sm:$0xff] %v4106_v39 }
 0x393   : > { %4109 = vst [vmem:[%s7443_s10 + $0x4f0] sm:$0xff] %v4108_v9  ;;  %4111 = vst [vmem:[%s7443_s10 + $0x4f8] sm:$0xff] %v4110_v54 }
 0x394 PF: > { %p22_p13 = scmp.ge.s32.totalorder %s4989_s13, 4   ;;  %s7834_s10 = smov %s4918_s11 }
 0x395   : > { %s7835_s11 = smov %s4997_s16  ;;  %s7836_s12 = smov %s4989_s13 }
 0x396   :  { %24 = sbr.rel (!%p22_p13) target bundleno = 17 (0x11), region = 214 }

</bundles_post_ra>
